<compile_context>
chip_gen: v7x
topology: tpu7x:2x2x1
jax: 0.10.0
libtpu: 0.0.40
codegen_flags: <defaults>
</compile_context>

<pallas_src>
import functools

import numpy as np
import jax
import jax.numpy as jnp
from jax.experimental import pallas as pl
from jax.experimental.pallas import tpu as pltpu

# ---------------------------------------------------------------------------
# Problem sizes (small demo; the real module uses C=64 and 17 blocks/scale).
# ---------------------------------------------------------------------------
N, C, H, W = 2, 8, 16, 16          # batch, channels (in == out == num), spatial
SCALES = [2, 3, 4]                 # module default scales
NUM_CONV_LAYERS = 2                # module default is 17; kept small for the demo
BN_EPS = 1e-5
HW = H * W
CONVS_PER_SCALE = 2 * NUM_CONV_LAYERS + 1          # conv1,conv2 per block + final conv
NUM_LAYERS = len(SCALES) * CONVS_PER_SCALE         # 15
KDIM = 9 * C                                       # im2col contraction depth (72)

# Batch folded into lanes: one grid step over (C, BATCH_TILE * HW) lanes.
BATCH_TILE = N                                     # whole batch per step (v5e/v6e best)
TILE_LANES = BATCH_TILE * HW                       # 512 lanes -> full (8,128) vregs
NUM_BATCH_TILES = N // BATCH_TILE                  # 1


# ---------------------------------------------------------------------------
# Fused Pallas kernel: the entire HybridFormer forward for one batch tile.
# ---------------------------------------------------------------------------
def _hybridformer_kernel(x_ref, w_ref, b_ref, m_ref, *out_refs,
                         n_scales, n_blocks, width, lanes):
    # x_ref : (C, lanes)     activations, batch folded into the lane axis
    # w_ref : (L, C, 9C)     folded conv weights, K index = (kh*3+kw)*C + cin
    # b_ref : (L, C, 1)      folded conv biases
    # m_ref : (9, lanes)     3x3 boundary-validity masks (per pixel, batch-tiled)
    # outs  : n_scales x (C, lanes)
    x = x_ref[...]                                       # (C, lanes) f32

    # Hoisted mask loads: each of the 9 rows is read once per kernel and
    # reused as a value across all layers (they are loop-invariant).
    masks = [m_ref[k:k + 1, :] for k in range(9)]        # nine (1, lanes) rows

    def im2col(v):
        # taps[(kh*3+kw)*C + cin, p] = v[cin, p + (kh-1)*W + (kw-1)] when that
        # source pixel lies inside the same image, else 0 (== 3x3 'SAME' pad).
        taps = []
        for k in range(9):
            dh, dw = k // 3 - 1, k % 3 - 1
            d = dh * width + dw                          # flat source offset
            s = (-d) % lanes                             # static, non-negative
            # shifted[:, p] = v[:, (p + d) % lanes]  (jnp.roll(v, -d) semantics).
            # Wrapped / cross-image source pixels are zeroed by the mask below.
            # pltpu.roll runs on the XLU, which is otherwise idle here.
            shifted = v if s == 0 else pltpu.roll(v, shift=s, axis=1)
            if not (dh == 0 and dw == 0):
                shifted = shifted * masks[k]             # (1, lanes) broadcast
            taps.append(shifted)
        return jnp.concatenate(taps, axis=0)             # (9C, lanes) value

    def conv3x3(v, layer, relu, residual=None):
        # One MXU matmul (C, 9C) @ (9C, lanes); BatchNorm folded into w/b.
        out = jnp.dot(w_ref[layer], im2col(v),
                      preferred_element_type=jnp.float32)
        out = out + b_ref[layer]                         # (C, 1) lane-broadcast
        if residual is not None:
            out = out + residual
        if relu:
            out = jnp.maximum(out, 0.0)
        return out

    layer = 0
    for si in range(n_scales):
        identity = x
        for _ in range(n_blocks):
            res = x
            h1 = conv3x3(x, layer, relu=True)                    # conv1+bn1+relu
            layer += 1
            x = conv3x3(h1, layer, relu=True, residual=res)      # conv2+bn2+res+relu
            layer += 1
        # TODO(synk): SwinTransformer is an empty stub in the reference module
        # (no forward defined), so it is treated as identity here.
        x = conv3x3(x, layer, relu=False, residual=identity)     # conv + identity add
        layer += 1
        out_refs[si][...] = x


def _build_forward():
    kernel = functools.partial(_hybridformer_kernel, n_scales=len(SCALES),
                               n_blocks=NUM_CONV_LAYERS, width=W,
                               lanes=TILE_LANES)
    out_sd = jax.ShapeDtypeStruct((C, N * HW), jnp.float32)
    return pl.pallas_call(
        kernel,
        out_shape=tuple(out_sd for _ in SCALES),
        grid=(NUM_BATCH_TILES,),                                   # 1 step
        in_specs=[
            pl.BlockSpec((C, TILE_LANES), lambda i: (0, i)),           # activations
            pl.BlockSpec((NUM_LAYERS, C, KDIM), lambda i: (0, 0, 0)),  # folded weights
            pl.BlockSpec((NUM_LAYERS, C, 1), lambda i: (0, 0, 0)),     # folded biases
            pl.BlockSpec((9, TILE_LANES), lambda i: (0, 0)),           # 3x3 masks
        ],
        out_specs=tuple(pl.BlockSpec((C, TILE_LANES), lambda i: (0, i))
                        for _ in SCALES),
        compiler_params=pltpu.CompilerParams(
            dimension_semantics=("arbitrary",)),
    )


_FORWARD = _build_forward()


# ---------------------------------------------------------------------------
# Static 3x3 boundary masks (constant, tiny; computed once on host).
# ---------------------------------------------------------------------------
def _build_masks():
    hh, ww = np.meshgrid(np.arange(H), np.arange(W), indexing="ij")
    hh = hh.reshape(-1)
    ww = ww.reshape(-1)
    m = np.zeros((9, HW), np.float32)
    for k in range(9):
        dh, dw = k // 3 - 1, k % 3 - 1
        valid = ((hh + dh >= 0) & (hh + dh < H) &
                 (ww + dw >= 0) & (ww + dw < W))
        m[k] = valid.astype(np.float32)
    # Tile the per-image mask across the batch tile folded into the lanes.
    return jnp.asarray(np.tile(m, (1, BATCH_TILE)))      # (9, TILE_LANES)


# ---------------------------------------------------------------------------
# Parameters (deterministic init) with BatchNorm folded into conv weight/bias.
# ---------------------------------------------------------------------------
def _fold_bn(w, b, gamma, beta, mean, var):
    s = gamma / jnp.sqrt(var + BN_EPS)           # per-output-channel scale
    return w * s, (b - mean) * s + beta


def init_params(key):
    def convp(k, cin, cout):
        k1, k2 = jax.random.split(k)
        w = jax.random.normal(k1, (3, 3, cin, cout), jnp.float32) / np.sqrt(9 * cin)
        b = 0.01 * jax.random.normal(k2, (cout,), jnp.float32)
        return w, b

    def bnp(k, c):
        k1, k2, k3 = jax.random.split(k, 3)
        gamma = 1.0 + 0.1 * jax.random.normal(k1, (c,), jnp.float32)
        beta = 0.1 * jax.random.normal(k2, (c,), jnp.float32)
        mean = 0.1 * jax.random.normal(k3, (c,), jnp.float32)
        var = jnp.ones((c,), jnp.float32)
        return gamma, beta, mean, var

    params = []
    for _ in SCALES:
        blocks = []
        for _ in range(NUM_CONV_LAYERS):
            key, kc1, kb1, kc2, kb2 = jax.random.split(key, 5)
            w1, b1 = convp(kc1, C, C)
            w1, b1 = _fold_bn(w1, b1, *bnp(kb1, C))
            w2, b2 = convp(kc2, C, C)
            w2, b2 = _fold_bn(w2, b2, *bnp(kb2, C))
            blocks.append({"w1": w1, "b1": b1, "w2": w2, "b2": b2})
        key, kc = jax.random.split(key)
        wc, bc = convp(kc, C, C)
        params.append({"blocks": blocks, "wc": wc, "bc": bc})
    return params


def pack_params(params):
    """Stack every folded HWIO conv into the kernel's (L, C, 9C)/(L, C, 1) layout."""
    ws, bs = [], []

    def add(w_hwio, b):
        # (3,3,Cin,Cout) -> (Cout, 9*Cin), K index = (kh*3+kw)*Cin + cin
        ws.append(jnp.transpose(w_hwio.reshape(9 * C, C)))
        bs.append(b.reshape(C, 1))

    for sp in params:                      # layer order must match the kernel
        for blk in sp["blocks"]:
            add(blk["w1"], blk["b1"])
            add(blk["w2"], blk["b2"])
        add(sp["wc"], sp["bc"])
    return jnp.stack(ws, axis=0), jnp.stack(bs, axis=0)


# ---------------------------------------------------------------------------
# Forward pass (mirrors HybridFormer.forward) — a single pallas_call.
# ---------------------------------------------------------------------------
@jax.jit
def hybridformer_forward(x_nchw, w_stack, b_stack, masks):
    n, c, h, w = x_nchw.shape
    # NCHW -> channel-major lane-dense (C, N*HW).  Wrapper-side layout plumbing
    # only; inside the kernel everything is full-vreg, unmasked.
    x_cm = jnp.transpose(x_nchw, (1, 0, 2, 3)).reshape(c, n * h * w)
    outs = _FORWARD(x_cm, w_stack, b_stack, masks)
    return [jnp.transpose(o.reshape(c, n, h, w), (1, 0, 2, 3)) for o in outs]


# ---------------------------------------------------------------------------
# Pure-JAX reference (for a correctness check).
# ---------------------------------------------------------------------------
def _ref_conv3x3(x, w, b, relu, residual=None):
    out = jax.lax.conv_general_dilated(
        x, w, window_strides=(1, 1), padding="SAME",
        dimension_numbers=("NHWC", "HWIO", "NHWC"),
        precision=jax.lax.Precision.HIGHEST)
    out = out + b
    if residual is not None:
        out = out + residual
    if relu:
        out = jnp.maximum(out, 0.0)
    return out


def ref_forward(x_nchw, params):
    x = jnp.transpose(x_nchw, (0, 2, 3, 1))
    outputs = []
    for sp in params:
        identity = x
        for blk in sp["blocks"]:
            res = x
            out = _ref_conv3x3(x, blk["w1"], blk["b1"], relu=True)
            x = _ref_conv3x3(out, blk["w2"], blk["b2"], relu=True, residual=res)
        x = _ref_conv3x3(x, sp["wc"], sp["bc"], relu=False, residual=identity)
        outputs.append(x)
    return [jnp.transpose(o, (0, 3, 1, 2)) for o in outputs]


if __name__ == "__main__":
    key = jax.random.PRNGKey(0)
    kx, kp = jax.random.split(key)
    x = jax.random.normal(kx, (N, C, H, W), jnp.float32)   # NCHW, like the PyTorch module
    params = init_params(kp)
    w_stack, b_stack = pack_params(params)
    masks = _build_masks()

    outs = hybridformer_forward(x, w_stack, b_stack, masks)
    outs = jax.block_until_ready(outs)

    refs = ref_forward(x, params)
    for o, r in zip(outs, refs):
        np.testing.assert_allclose(np.asarray(o), np.asarray(r),
                                   rtol=1e-3, atol=1e-3)

    print("KERNEL_OK")
</pallas_src>

<mosaic_0001>
module attributes {stable_mosaic.version = 11 : i64} {
  func.func @_hybridformer_kernel(%arg0: i32, %arg1: memref<8x512xf32, #tpu.memory_space<vmem>>, %arg2: memref<15x8x72xf32, #tpu.memory_space<vmem>>, %arg3: memref<15x8x1xf32, #tpu.memory_space<vmem>>, %arg4: memref<9x512xf32, #tpu.memory_space<vmem>>, %arg5: memref<8x512xf32, #tpu.memory_space<vmem>>, %arg6: memref<8x512xf32, #tpu.memory_space<vmem>>, %arg7: memref<8x512xf32, #tpu.memory_space<vmem>>) attributes {dimension_semantics = [#tpu.dimension_semantics<arbitrary>], iteration_bounds = array<i64: 1>, scalar_prefetch = 0 : i64, scratch_operands = 0 : i64, tpu.core_type = #tpu.core_type<tc>, window_params = [{transform_indices = @transform_0, window_bounds = array<i64: 8, 512>}, {pipeline_mode = #tpu.pipeline_mode<synchronous>, transform_indices = @transform_1, window_bounds = array<i64: 15, 8, 72>}, {pipeline_mode = #tpu.pipeline_mode<synchronous>, transform_indices = @transform_2, window_bounds = array<i64: 15, 8, 1>}, {pipeline_mode = #tpu.pipeline_mode<synchronous>, transform_indices = @transform_3, window_bounds = array<i64: 9, 512>}, {transform_indices = @transform_4, window_bounds = array<i64: 8, 512>}, {transform_indices = @transform_5, window_bounds = array<i64: 8, 512>}, {transform_indices = @transform_6, window_bounds = array<i64: 8, 512>}]} {
    %c0 = arith.constant 0 : index
    %c0_0 = arith.constant 0 : index
    %0 = vector.load %arg1[%c0, %c0_0] : memref<8x512xf32, #tpu.memory_space<vmem>>, vector<8x512xf32>
    %c0_1 = arith.constant 0 : index
    %c0_2 = arith.constant 0 : index
    %1 = vector.load %arg4[%c0_1, %c0_2] : memref<9x512xf32, #tpu.memory_space<vmem>>, vector<1x512xf32>
    %c1 = arith.constant 1 : index
    %c0_3 = arith.constant 0 : index
    %2 = vector.load %arg4[%c1, %c0_3] : memref<9x512xf32, #tpu.memory_space<vmem>>, vector<1x512xf32>
    %c2 = arith.constant 2 : index
    %c0_4 = arith.constant 0 : index
    %3 = vector.load %arg4[%c2, %c0_4] : memref<9x512xf32, #tpu.memory_space<vmem>>, vector<1x512xf32>
    %c3 = arith.constant 3 : index
    %c0_5 = arith.constant 0 : index
    %4 = vector.load %arg4[%c3, %c0_5] : memref<9x512xf32, #tpu.memory_space<vmem>>, vector<1x512xf32>
    %c5 = arith.constant 5 : index
    %c0_6 = arith.constant 0 : index
    %5 = vector.load %arg4[%c5, %c0_6] : memref<9x512xf32, #tpu.memory_space<vmem>>, vector<1x512xf32>
    %c6 = arith.constant 6 : index
    %c0_7 = arith.constant 0 : index
    %6 = vector.load %arg4[%c6, %c0_7] : memref<9x512xf32, #tpu.memory_space<vmem>>, vector<1x512xf32>
    %c7 = arith.constant 7 : index
    %c0_8 = arith.constant 0 : index
    %7 = vector.load %arg4[%c7, %c0_8] : memref<9x512xf32, #tpu.memory_space<vmem>>, vector<1x512xf32>
    %c8 = arith.constant 8 : index
    %c0_9 = arith.constant 0 : index
    %8 = vector.load %arg4[%c8, %c0_9] : memref<9x512xf32, #tpu.memory_space<vmem>>, vector<1x512xf32>
    %c0_10 = arith.constant 0 : index
    %c0_11 = arith.constant 0 : index
    %c0_12 = arith.constant 0 : index
    %9 = vector.load %arg2[%c0_10, %c0_11, %c0_12] : memref<15x8x72xf32, #tpu.memory_space<vmem>>, vector<1x8x72xf32>
    %10 = vector.shape_cast %9 : vector<1x8x72xf32> to vector<8x72xf32>
    %c17_i32 = arith.constant 17 : i32
    %11 = tpu.dynamic_rotate %0 by %c17_i32 dim 1 : vector<8x512xf32>, i32 -> vector<8x512xf32>
    %12 = vector.broadcast %1 : vector<1x512xf32> to vector<8x512xf32>
    %13 = arith.mulf %11, %12 : vector<8x512xf32>
    %c16_i32 = arith.constant 16 : i32
    %14 = tpu.dynamic_rotate %0 by %c16_i32 dim 1 : vector<8x512xf32>, i32 -> vector<8x512xf32>
    %15 = vector.broadcast %2 : vector<1x512xf32> to vector<8x512xf32>
    %16 = arith.mulf %14, %15 : vector<8x512xf32>
    %c15_i32 = arith.constant 15 : i32
    %17 = tpu.dynamic_rotate %0 by %c15_i32 dim 1 : vector<8x512xf32>, i32 -> vector<8x512xf32>
    %18 = vector.broadcast %3 : vector<1x512xf32> to vector<8x512xf32>
    %19 = arith.mulf %17, %18 : vector<8x512xf32>
    %c1_i32 = arith.constant 1 : i32
    %20 = tpu.dynamic_rotate %0 by %c1_i32 dim 1 : vector<8x512xf32>, i32 -> vector<8x512xf32>
    %21 = vector.broadcast %4 : vector<1x512xf32> to vector<8x512xf32>
    %22 = arith.mulf %20, %21 : vector<8x512xf32>
    %c511_i32 = arith.constant 511 : i32
    %23 = tpu.dynamic_rotate %0 by %c511_i32 dim 1 : vector<8x512xf32>, i32 -> vector<8x512xf32>
    %24 = vector.broadcast %5 : vector<1x512xf32> to vector<8x512xf32>
    %25 = arith.mulf %23, %24 : vector<8x512xf32>
    %c497_i32 = arith.constant 497 : i32
    %26 = tpu.dynamic_rotate %0 by %c497_i32 dim 1 : vector<8x512xf32>, i32 -> vector<8x512xf32>
    %27 = vector.broadcast %6 : vector<1x512xf32> to vector<8x512xf32>
    %28 = arith.mulf %26, %27 : vector<8x512xf32>
    %c496_i32 = arith.constant 496 : i32
    %29 = tpu.dynamic_rotate %0 by %c496_i32 dim 1 : vector<8x512xf32>, i32 -> vector<8x512xf32>
    %30 = vector.broadcast %7 : vector<1x512xf32> to vector<8x512xf32>
    %31 = arith.mulf %29, %30 : vector<8x512xf32>
    %c495_i32 = arith.constant 495 : i32
    %32 = tpu.dynamic_rotate %0 by %c495_i32 dim 1 : vector<8x512xf32>, i32 -> vector<8x512xf32>
    %33 = vector.broadcast %8 : vector<1x512xf32> to vector<8x512xf32>
    %34 = arith.mulf %32, %33 : vector<8x512xf32>
    %35 = tpu.concatenate %13, %16, %19, %22, %0, %25, %28, %31, %34 in 0 : vector<8x512xf32>, vector<8x512xf32>, vector<8x512xf32>, vector<8x512xf32>, vector<8x512xf32>, vector<8x512xf32>, vector<8x512xf32>, vector<8x512xf32>, vector<8x512xf32> -> vector<72x512xf32>
    %cst = arith.constant dense<0.000000e+00> : vector<8x512xf32>
    %36 = tpu.matmul %10, %35, %cst {dimension_numbers = #tpu.dot_dimension_numbers<[1], [0], [0], [1], [0, 0, 1, 1], [], []>} : vector<8x72xf32>, vector<72x512xf32>, vector<8x512xf32> -> vector<8x512xf32>
    %c0_13 = arith.constant 0 : index
    %c0_14 = arith.constant 0 : index
    %c0_15 = arith.constant 0 : index
    %37 = vector.load %arg3[%c0_13, %c0_14, %c0_15] : memref<15x8x1xf32, #tpu.memory_space<vmem>>, vector<1x8x1xf32>
    %38 = vector.shape_cast %37 : vector<1x8x1xf32> to vector<8x1xf32>
    %39 = vector.broadcast %38 : vector<8x1xf32> to vector<8x512xf32>
    %40 = arith.addf %36, %39 : vector<8x512xf32>
    %cst_16 = arith.constant 0.000000e+00 : f32
    %41 = vector.broadcast %cst_16 : f32 to vector<8x512xf32>
    %42 = arith.maximumf %40, %41 : vector<8x512xf32>
    %c1_17 = arith.constant 1 : index
    %c0_18 = arith.constant 0 : index
    %c0_19 = arith.constant 0 : index
    %43 = vector.load %arg2[%c1_17, %c0_18, %c0_19] : memref<15x8x72xf32, #tpu.memory_space<vmem>>, vector<1x8x72xf32>
    %44 = vector.shape_cast %43 : vector<1x8x72xf32> to vector<8x72xf32>
    %c17_i32_20 = arith.constant 17 : i32
    %45 = tpu.dynamic_rotate %42 by %c17_i32_20 dim 1 : vector<8x512xf32>, i32 -> vector<8x512xf32>
    %46 = vector.broadcast %1 : vector<1x512xf32> to vector<8x512xf32>
    %47 = arith.mulf %45, %46 : vector<8x512xf32>
    %c16_i32_21 = arith.constant 16 : i32
    %48 = tpu.dynamic_rotate %42 by %c16_i32_21 dim 1 : vector<8x512xf32>, i32 -> vector<8x512xf32>
    %49 = vector.broadcast %2 : vector<1x512xf32> to vector<8x512xf32>
    %50 = arith.mulf %48, %49 : vector<8x512xf32>
    %c15_i32_22 = arith.constant 15 : i32
    %51 = tpu.dynamic_rotate %42 by %c15_i32_22 dim 1 : vector<8x512xf32>, i32 -> vector<8x512xf32>
    %52 = vector.broadcast %3 : vector<1x512xf32> to vector<8x512xf32>
    %53 = arith.mulf %51, %52 : vector<8x512xf32>
    %c1_i32_23 = arith.constant 1 : i32
    %54 = tpu.dynamic_rotate %42 by %c1_i32_23 dim 1 : vector<8x512xf32>, i32 -> vector<8x512xf32>
    %55 = vector.broadcast %4 : vector<1x512xf32> to vector<8x512xf32>
    %56 = arith.mulf %54, %55 : vector<8x512xf32>
    %c511_i32_24 = arith.constant 511 : i32
    %57 = tpu.dynamic_rotate %42 by %c511_i32_24 dim 1 : vector<8x512xf32>, i32 -> vector<8x512xf32>
    %58 = vector.broadcast %5 : vector<1x512xf32> to vector<8x512xf32>
    %59 = arith.mulf %57, %58 : vector<8x512xf32>
    %c497_i32_25 = arith.constant 497 : i32
    %60 = tpu.dynamic_rotate %42 by %c497_i32_25 dim 1 : vector<8x512xf32>, i32 -> vector<8x512xf32>
    %61 = vector.broadcast %6 : vector<1x512xf32> to vector<8x512xf32>
    %62 = arith.mulf %60, %61 : vector<8x512xf32>
    %c496_i32_26 = arith.constant 496 : i32
    %63 = tpu.dynamic_rotate %42 by %c496_i32_26 dim 1 : vector<8x512xf32>, i32 -> vector<8x512xf32>
    %64 = vector.broadcast %7 : vector<1x512xf32> to vector<8x512xf32>
    %65 = arith.mulf %63, %64 : vector<8x512xf32>
    %c495_i32_27 = arith.constant 495 : i32
    %66 = tpu.dynamic_rotate %42 by %c495_i32_27 dim 1 : vector<8x512xf32>, i32 -> vector<8x512xf32>
    %67 = vector.broadcast %8 : vector<1x512xf32> to vector<8x512xf32>
    %68 = arith.mulf %66, %67 : vector<8x512xf32>
    %69 = tpu.concatenate %47, %50, %53, %56, %42, %59, %62, %65, %68 in 0 : vector<8x512xf32>, vector<8x512xf32>, vector<8x512xf32>, vector<8x512xf32>, vector<8x512xf32>, vector<8x512xf32>, vector<8x512xf32>, vector<8x512xf32>, vector<8x512xf32> -> vector<72x512xf32>
    %cst_28 = arith.constant dense<0.000000e+00> : vector<8x512xf32>
    %70 = tpu.matmul %44, %69, %cst_28 {dimension_numbers = #tpu.dot_dimension_numbers<[1], [0], [0], [1], [0, 0, 1, 1], [], []>} : vector<8x72xf32>, vector<72x512xf32>, vector<8x512xf32> -> vector<8x512xf32>
    %c1_29 = arith.constant 1 : index
    %c0_30 = arith.constant 0 : index
    %c0_31 = arith.constant 0 : index
    %71 = vector.load %arg3[%c1_29, %c0_30, %c0_31] : memref<15x8x1xf32, #tpu.memory_space<vmem>>, vector<1x8x1xf32>
    %72 = vector.shape_cast %71 : vector<1x8x1xf32> to vector<8x1xf32>
    %73 = vector.broadcast %72 : vector<8x1xf32> to vector<8x512xf32>
    %74 = arith.addf %70, %73 : vector<8x512xf32>
    %75 = arith.addf %74, %0 : vector<8x512xf32>
    %cst_32 = arith.constant 0.000000e+00 : f32
    %76 = vector.broadcast %cst_32 : f32 to vector<8x512xf32>
    %77 = arith.maximumf %75, %76 : vector<8x512xf32>
    %c2_33 = arith.constant 2 : index
    %c0_34 = arith.constant 0 : index
    %c0_35 = arith.constant 0 : index
    %78 = vector.load %arg2[%c2_33, %c0_34, %c0_35] : memref<15x8x72xf32, #tpu.memory_space<vmem>>, vector<1x8x72xf32>
    %79 = vector.shape_cast %78 : vector<1x8x72xf32> to vector<8x72xf32>
    %c17_i32_36 = arith.constant 17 : i32
    %80 = tpu.dynamic_rotate %77 by %c17_i32_36 dim 1 : vector<8x512xf32>, i32 -> vector<8x512xf32>
    %81 = vector.broadcast %1 : vector<1x512xf32> to vector<8x512xf32>
    %82 = arith.mulf %80, %81 : vector<8x512xf32>
    %c16_i32_37 = arith.constant 16 : i32
    %83 = tpu.dynamic_rotate %77 by %c16_i32_37 dim 1 : vector<8x512xf32>, i32 -> vector<8x512xf32>
    %84 = vector.broadcast %2 : vector<1x512xf32> to vector<8x512xf32>
    %85 = arith.mulf %83, %84 : vector<8x512xf32>
    %c15_i32_38 = arith.constant 15 : i32
    %86 = tpu.dynamic_rotate %77 by %c15_i32_38 dim 1 : vector<8x512xf32>, i32 -> vector<8x512xf32>
    %87 = vector.broadcast %3 : vector<1x512xf32> to vector<8x512xf32>
    %88 = arith.mulf %86, %87 : vector<8x512xf32>
    %c1_i32_39 = arith.constant 1 : i32
    %89 = tpu.dynamic_rotate %77 by %c1_i32_39 dim 1 : vector<8x512xf32>, i32 -> vector<8x512xf32>
    %90 = vector.broadcast %4 : vector<1x512xf32> to vector<8x512xf32>
    %91 = arith.mulf %89, %90 : vector<8x512xf32>
    %c511_i32_40 = arith.constant 511 : i32
    %92 = tpu.dynamic_rotate %77 by %c511_i32_40 dim 1 : vector<8x512xf32>, i32 -> vector<8x512xf32>
    %93 = vector.broadcast %5 : vector<1x512xf32> to vector<8x512xf32>
    %94 = arith.mulf %92, %93 : vector<8x512xf32>
    %c497_i32_41 = arith.constant 497 : i32
    %95 = tpu.dynamic_rotate %77 by %c497_i32_41 dim 1 : vector<8x512xf32>, i32 -> vector<8x512xf32>
    %96 = vector.broadcast %6 : vector<1x512xf32> to vector<8x512xf32>
    %97 = arith.mulf %95, %96 : vector<8x512xf32>
    %c496_i32_42 = arith.constant 496 : i32
    %98 = tpu.dynamic_rotate %77 by %c496_i32_42 dim 1 : vector<8x512xf32>, i32 -> vector<8x512xf32>
    %99 = vector.broadcast %7 : vector<1x512xf32> to vector<8x512xf32>
    %100 = arith.mulf %98, %99 : vector<8x512xf32>
    %c495_i32_43 = arith.constant 495 : i32
    %101 = tpu.dynamic_rotate %77 by %c495_i32_43 dim 1 : vector<8x512xf32>, i32 -> vector<8x512xf32>
    %102 = vector.broadcast %8 : vector<1x512xf32> to vector<8x512xf32>
    %103 = arith.mulf %101, %102 : vector<8x512xf32>
    %104 = tpu.concatenate %82, %85, %88, %91, %77, %94, %97, %100, %103 in 0 : vector<8x512xf32>, vector<8x512xf32>, vector<8x512xf32>, vector<8x512xf32>, vector<8x512xf32>, vector<8x512xf32>, vector<8x512xf32>, vector<8x512xf32>, vector<8x512xf32> -> vector<72x512xf32>
    %cst_44 = arith.constant dense<0.000000e+00> : vector<8x512xf32>
    %105 = tpu.matmul %79, %104, %cst_44 {dimension_numbers = #tpu.dot_dimension_numbers<[1], [0], [0], [1], [0, 0, 1, 1], [], []>} : vector<8x72xf32>, vector<72x512xf32>, vector<8x512xf32> -> vector<8x512xf32>
    %c2_45 = arith.constant 2 : index
    %c0_46 = arith.constant 0 : index
    %c0_47 = arith.constant 0 : index
    %106 = vector.load %arg3[%c2_45, %c0_46, %c0_47] : memref<15x8x1xf32, #tpu.memory_space<vmem>>, vector<1x8x1xf32>
    %107 = vector.shape_cast %106 : vector<1x8x1xf32> to vector<8x1xf32>
    %108 = vector.broadcast %107 : vector<8x1xf32> to vector<8x512xf32>
    %109 = arith.addf %105, %108 : vector<8x512xf32>
    %cst_48 = arith.constant 0.000000e+00 : f32
    %110 = vector.broadcast %cst_48 : f32 to vector<8x512xf32>
    %111 = arith.maximumf %109, %110 : vector<8x512xf32>
    %c3_49 = arith.constant 3 : index
    %c0_50 = arith.constant 0 : index
    %c0_51 = arith.constant 0 : index
    %112 = vector.load %arg2[%c3_49, %c0_50, %c0_51] : memref<15x8x72xf32, #tpu.memory_space<vmem>>, vector<1x8x72xf32>
    %113 = vector.shape_cast %112 : vector<1x8x72xf32> to vector<8x72xf32>
    %c17_i32_52 = arith.constant 17 : i32
    %114 = tpu.dynamic_rotate %111 by %c17_i32_52 dim 1 : vector<8x512xf32>, i32 -> vector<8x512xf32>
    %115 = vector.broadcast %1 : vector<1x512xf32> to vector<8x512xf32>
    %116 = arith.mulf %114, %115 : vector<8x512xf32>
    %c16_i32_53 = arith.constant 16 : i32
    %117 = tpu.dynamic_rotate %111 by %c16_i32_53 dim 1 : vector<8x512xf32>, i32 -> vector<8x512xf32>
    %118 = vector.broadcast %2 : vector<1x512xf32> to vector<8x512xf32>
    %119 = arith.mulf %117, %118 : vector<8x512xf32>
    %c15_i32_54 = arith.constant 15 : i32
    %120 = tpu.dynamic_rotate %111 by %c15_i32_54 dim 1 : vector<8x512xf32>, i32 -> vector<8x512xf32>
    %121 = vector.broadcast %3 : vector<1x512xf32> to vector<8x512xf32>
    %122 = arith.mulf %120, %121 : vector<8x512xf32>
    %c1_i32_55 = arith.constant 1 : i32
    %123 = tpu.dynamic_rotate %111 by %c1_i32_55 dim 1 : vector<8x512xf32>, i32 -> vector<8x512xf32>
    %124 = vector.broadcast %4 : vector<1x512xf32> to vector<8x512xf32>
    %125 = arith.mulf %123, %124 : vector<8x512xf32>
    %c511_i32_56 = arith.constant 511 : i32
    %126 = tpu.dynamic_rotate %111 by %c511_i32_56 dim 1 : vector<8x512xf32>, i32 -> vector<8x512xf32>
    %127 = vector.broadcast %5 : vector<1x512xf32> to vector<8x512xf32>
    %128 = arith.mulf %126, %127 : vector<8x512xf32>
    %c497_i32_57 = arith.constant 497 : i32
    %129 = tpu.dynamic_rotate %111 by %c497_i32_57 dim 1 : vector<8x512xf32>, i32 -> vector<8x512xf32>
    %130 = vector.broadcast %6 : vector<1x512xf32> to vector<8x512xf32>
    %131 = arith.mulf %129, %130 : vector<8x512xf32>
    %c496_i32_58 = arith.constant 496 : i32
    %132 = tpu.dynamic_rotate %111 by %c496_i32_58 dim 1 : vector<8x512xf32>, i32 -> vector<8x512xf32>
    %133 = vector.broadcast %7 : vector<1x512xf32> to vector<8x512xf32>
    %134 = arith.mulf %132, %133 : vector<8x512xf32>
    %c495_i32_59 = arith.constant 495 : i32
    %135 = tpu.dynamic_rotate %111 by %c495_i32_59 dim 1 : vector<8x512xf32>, i32 -> vector<8x512xf32>
    %136 = vector.broadcast %8 : vector<1x512xf32> to vector<8x512xf32>
    %137 = arith.mulf %135, %136 : vector<8x512xf32>
    %138 = tpu.concatenate %116, %119, %122, %125, %111, %128, %131, %134, %137 in 0 : vector<8x512xf32>, vector<8x512xf32>, vector<8x512xf32>, vector<8x512xf32>, vector<8x512xf32>, vector<8x512xf32>, vector<8x512xf32>, vector<8x512xf32>, vector<8x512xf32> -> vector<72x512xf32>
    %cst_60 = arith.constant dense<0.000000e+00> : vector<8x512xf32>
    %139 = tpu.matmul %113, %138, %cst_60 {dimension_numbers = #tpu.dot_dimension_numbers<[1], [0], [0], [1], [0, 0, 1, 1], [], []>} : vector<8x72xf32>, vector<72x512xf32>, vector<8x512xf32> -> vector<8x512xf32>
    %c3_61 = arith.constant 3 : index
    %c0_62 = arith.constant 0 : index
    %c0_63 = arith.constant 0 : index
    %140 = vector.load %arg3[%c3_61, %c0_62, %c0_63] : memref<15x8x1xf32, #tpu.memory_space<vmem>>, vector<1x8x1xf32>
    %141 = vector.shape_cast %140 : vector<1x8x1xf32> to vector<8x1xf32>
    %142 = vector.broadcast %141 : vector<8x1xf32> to vector<8x512xf32>
    %143 = arith.addf %139, %142 : vector<8x512xf32>
    %144 = arith.addf %143, %77 : vector<8x512xf32>
    %cst_64 = arith.constant 0.000000e+00 : f32
    %145 = vector.broadcast %cst_64 : f32 to vector<8x512xf32>
    %146 = arith.maximumf %144, %145 : vector<8x512xf32>
    %c4 = arith.constant 4 : index
    %c0_65 = arith.constant 0 : index
    %c0_66 = arith.constant 0 : index
    %147 = vector.load %arg2[%c4, %c0_65, %c0_66] : memref<15x8x72xf32, #tpu.memory_space<vmem>>, vector<1x8x72xf32>
    %148 = vector.shape_cast %147 : vector<1x8x72xf32> to vector<8x72xf32>
    %c17_i32_67 = arith.constant 17 : i32
    %149 = tpu.dynamic_rotate %146 by %c17_i32_67 dim 1 : vector<8x512xf32>, i32 -> vector<8x512xf32>
    %150 = vector.broadcast %1 : vector<1x512xf32> to vector<8x512xf32>
    %151 = arith.mulf %149, %150 : vector<8x512xf32>
    %c16_i32_68 = arith.constant 16 : i32
    %152 = tpu.dynamic_rotate %146 by %c16_i32_68 dim 1 : vector<8x512xf32>, i32 -> vector<8x512xf32>
    %153 = vector.broadcast %2 : vector<1x512xf32> to vector<8x512xf32>
    %154 = arith.mulf %152, %153 : vector<8x512xf32>
    %c15_i32_69 = arith.constant 15 : i32
    %155 = tpu.dynamic_rotate %146 by %c15_i32_69 dim 1 : vector<8x512xf32>, i32 -> vector<8x512xf32>
    %156 = vector.broadcast %3 : vector<1x512xf32> to vector<8x512xf32>
    %157 = arith.mulf %155, %156 : vector<8x512xf32>
    %c1_i32_70 = arith.constant 1 : i32
    %158 = tpu.dynamic_rotate %146 by %c1_i32_70 dim 1 : vector<8x512xf32>, i32 -> vector<8x512xf32>
    %159 = vector.broadcast %4 : vector<1x512xf32> to vector<8x512xf32>
    %160 = arith.mulf %158, %159 : vector<8x512xf32>
    %c511_i32_71 = arith.constant 511 : i32
    %161 = tpu.dynamic_rotate %146 by %c511_i32_71 dim 1 : vector<8x512xf32>, i32 -> vector<8x512xf32>
    %162 = vector.broadcast %5 : vector<1x512xf32> to vector<8x512xf32>
    %163 = arith.mulf %161, %162 : vector<8x512xf32>
    %c497_i32_72 = arith.constant 497 : i32
    %164 = tpu.dynamic_rotate %146 by %c497_i32_72 dim 1 : vector<8x512xf32>, i32 -> vector<8x512xf32>
    %165 = vector.broadcast %6 : vector<1x512xf32> to vector<8x512xf32>
    %166 = arith.mulf %164, %165 : vector<8x512xf32>
    %c496_i32_73 = arith.constant 496 : i32
    %167 = tpu.dynamic_rotate %146 by %c496_i32_73 dim 1 : vector<8x512xf32>, i32 -> vector<8x512xf32>
    %168 = vector.broadcast %7 : vector<1x512xf32> to vector<8x512xf32>
    %169 = arith.mulf %167, %168 : vector<8x512xf32>
    %c495_i32_74 = arith.constant 495 : i32
    %170 = tpu.dynamic_rotate %146 by %c495_i32_74 dim 1 : vector<8x512xf32>, i32 -> vector<8x512xf32>
    %171 = vector.broadcast %8 : vector<1x512xf32> to vector<8x512xf32>
    %172 = arith.mulf %170, %171 : vector<8x512xf32>
    %173 = tpu.concatenate %151, %154, %157, %160, %146, %163, %166, %169, %172 in 0 : vector<8x512xf32>, vector<8x512xf32>, vector<8x512xf32>, vector<8x512xf32>, vector<8x512xf32>, vector<8x512xf32>, vector<8x512xf32>, vector<8x512xf32>, vector<8x512xf32> -> vector<72x512xf32>
    %cst_75 = arith.constant dense<0.000000e+00> : vector<8x512xf32>
    %174 = tpu.matmul %148, %173, %cst_75 {dimension_numbers = #tpu.dot_dimension_numbers<[1], [0], [0], [1], [0, 0, 1, 1], [], []>} : vector<8x72xf32>, vector<72x512xf32>, vector<8x512xf32> -> vector<8x512xf32>
    %c4_76 = arith.constant 4 : index
    %c0_77 = arith.constant 0 : index
    %c0_78 = arith.constant 0 : index
    %175 = vector.load %arg3[%c4_76, %c0_77, %c0_78] : memref<15x8x1xf32, #tpu.memory_space<vmem>>, vector<1x8x1xf32>
    %176 = vector.shape_cast %175 : vector<1x8x1xf32> to vector<8x1xf32>
    %177 = vector.broadcast %176 : vector<8x1xf32> to vector<8x512xf32>
    %178 = arith.addf %174, %177 : vector<8x512xf32>
    %179 = arith.addf %178, %0 : vector<8x512xf32>
    %c0_79 = arith.constant 0 : index
    %c0_80 = arith.constant 0 : index
    %180 = vector.load %arg5[%c0_79, %c0_80] : memref<8x512xf32, #tpu.memory_space<vmem>>, vector<8x512xf32>
    tpu.vector_store %arg5[%c0_79, %c0_80], %179 {strides = array<i32>} : memref<8x512xf32, #tpu.memory_space<vmem>>, vector<8x512xf32>,
    %c5_81 = arith.constant 5 : index
    %c0_82 = arith.constant 0 : index
    %c0_83 = arith.constant 0 : index
    %181 = vector.load %arg2[%c5_81, %c0_82, %c0_83] : memref<15x8x72xf32, #tpu.memory_space<vmem>>, vector<1x8x72xf32>
    %182 = vector.shape_cast %181 : vector<1x8x72xf32> to vector<8x72xf32>
    %c17_i32_84 = arith.constant 17 : i32
    %183 = tpu.dynamic_rotate %179 by %c17_i32_84 dim 1 : vector<8x512xf32>, i32 -> vector<8x512xf32>
    %184 = vector.broadcast %1 : vector<1x512xf32> to vector<8x512xf32>
    %185 = arith.mulf %183, %184 : vector<8x512xf32>
    %c16_i32_85 = arith.constant 16 : i32
    %186 = tpu.dynamic_rotate %179 by %c16_i32_85 dim 1 : vector<8x512xf32>, i32 -> vector<8x512xf32>
    %187 = vector.broadcast %2 : vector<1x512xf32> to vector<8x512xf32>
    %188 = arith.mulf %186, %187 : vector<8x512xf32>
    %c15_i32_86 = arith.constant 15 : i32
    %189 = tpu.dynamic_rotate %179 by %c15_i32_86 dim 1 : vector<8x512xf32>, i32 -> vector<8x512xf32>
    %190 = vector.broadcast %3 : vector<1x512xf32> to vector<8x512xf32>
    %191 = arith.mulf %189, %190 : vector<8x512xf32>
    %c1_i32_87 = arith.constant 1 : i32
    %192 = tpu.dynamic_rotate %179 by %c1_i32_87 dim 1 : vector<8x512xf32>, i32 -> vector<8x512xf32>
    %193 = vector.broadcast %4 : vector<1x512xf32> to vector<8x512xf32>
    %194 = arith.mulf %192, %193 : vector<8x512xf32>
    %c511_i32_88 = arith.constant 511 : i32
    %195 = tpu.dynamic_rotate %179 by %c511_i32_88 dim 1 : vector<8x512xf32>, i32 -> vector<8x512xf32>
    %196 = vector.broadcast %5 : vector<1x512xf32> to vector<8x512xf32>
    %197 = arith.mulf %195, %196 : vector<8x512xf32>
    %c497_i32_89 = arith.constant 497 : i32
    %198 = tpu.dynamic_rotate %179 by %c497_i32_89 dim 1 : vector<8x512xf32>, i32 -> vector<8x512xf32>
    %199 = vector.broadcast %6 : vector<1x512xf32> to vector<8x512xf32>
    %200 = arith.mulf %198, %199 : vector<8x512xf32>
    %c496_i32_90 = arith.constant 496 : i32
    %201 = tpu.dynamic_rotate %179 by %c496_i32_90 dim 1 : vector<8x512xf32>, i32 -> vector<8x512xf32>
    %202 = vector.broadcast %7 : vector<1x512xf32> to vector<8x512xf32>
    %203 = arith.mulf %201, %202 : vector<8x512xf32>
    %c495_i32_91 = arith.constant 495 : i32
    %204 = tpu.dynamic_rotate %179 by %c495_i32_91 dim 1 : vector<8x512xf32>, i32 -> vector<8x512xf32>
    %205 = vector.broadcast %8 : vector<1x512xf32> to vector<8x512xf32>
    %206 = arith.mulf %204, %205 : vector<8x512xf32>
    %207 = tpu.concatenate %185, %188, %191, %194, %179, %197, %200, %203, %206 in 0 : vector<8x512xf32>, vector<8x512xf32>, vector<8x512xf32>, vector<8x512xf32>, vector<8x512xf32>, vector<8x512xf32>, vector<8x512xf32>, vector<8x512xf32>, vector<8x512xf32> -> vector<72x512xf32>
    %cst_92 = arith.constant dense<0.000000e+00> : vector<8x512xf32>
    %208 = tpu.matmul %182, %207, %cst_92 {dimension_numbers = #tpu.dot_dimension_numbers<[1], [0], [0], [1], [0, 0, 1, 1], [], []>} : vector<8x72xf32>, vector<72x512xf32>, vector<8x512xf32> -> vector<8x512xf32>
    %c5_93 = arith.constant 5 : index
    %c0_94 = arith.constant 0 : index
    %c0_95 = arith.constant 0 : index
    %209 = vector.load %arg3[%c5_93, %c0_94, %c0_95] : memref<15x8x1xf32, #tpu.memory_space<vmem>>, vector<1x8x1xf32>
    %210 = vector.shape_cast %209 : vector<1x8x1xf32> to vector<8x1xf32>
    %211 = vector.broadcast %210 : vector<8x1xf32> to vector<8x512xf32>
    %212 = arith.addf %208, %211 : vector<8x512xf32>
    %cst_96 = arith.constant 0.000000e+00 : f32
    %213 = vector.broadcast %cst_96 : f32 to vector<8x512xf32>
    %214 = arith.maximumf %212, %213 : vector<8x512xf32>
    %c6_97 = arith.constant 6 : index
    %c0_98 = arith.constant 0 : index
    %c0_99 = arith.constant 0 : index
    %215 = vector.load %arg2[%c6_97, %c0_98, %c0_99] : memref<15x8x72xf32, #tpu.memory_space<vmem>>, vector<1x8x72xf32>
    %216 = vector.shape_cast %215 : vector<1x8x72xf32> to vector<8x72xf32>
    %c17_i32_100 = arith.constant 17 : i32
    %217 = tpu.dynamic_rotate %214 by %c17_i32_100 dim 1 : vector<8x512xf32>, i32 -> vector<8x512xf32>
    %218 = vector.broadcast %1 : vector<1x512xf32> to vector<8x512xf32>
    %219 = arith.mulf %217, %218 : vector<8x512xf32>
    %c16_i32_101 = arith.constant 16 : i32
    %220 = tpu.dynamic_rotate %214 by %c16_i32_101 dim 1 : vector<8x512xf32>, i32 -> vector<8x512xf32>
    %221 = vector.broadcast %2 : vector<1x512xf32> to vector<8x512xf32>
    %222 = arith.mulf %220, %221 : vector<8x512xf32>
    %c15_i32_102 = arith.constant 15 : i32
    %223 = tpu.dynamic_rotate %214 by %c15_i32_102 dim 1 : vector<8x512xf32>, i32 -> vector<8x512xf32>
    %224 = vector.broadcast %3 : vector<1x512xf32> to vector<8x512xf32>
    %225 = arith.mulf %223, %224 : vector<8x512xf32>
    %c1_i32_103 = arith.constant 1 : i32
    %226 = tpu.dynamic_rotate %214 by %c1_i32_103 dim 1 : vector<8x512xf32>, i32 -> vector<8x512xf32>
    %227 = vector.broadcast %4 : vector<1x512xf32> to vector<8x512xf32>
    %228 = arith.mulf %226, %227 : vector<8x512xf32>
    %c511_i32_104 = arith.constant 511 : i32
    %229 = tpu.dynamic_rotate %214 by %c511_i32_104 dim 1 : vector<8x512xf32>, i32 -> vector<8x512xf32>
    %230 = vector.broadcast %5 : vector<1x512xf32> to vector<8x512xf32>
    %231 = arith.mulf %229, %230 : vector<8x512xf32>
    %c497_i32_105 = arith.constant 497 : i32
    %232 = tpu.dynamic_rotate %214 by %c497_i32_105 dim 1 : vector<8x512xf32>, i32 -> vector<8x512xf32>
    %233 = vector.broadcast %6 : vector<1x512xf32> to vector<8x512xf32>
    %234 = arith.mulf %232, %233 : vector<8x512xf32>
    %c496_i32_106 = arith.constant 496 : i32
    %235 = tpu.dynamic_rotate %214 by %c496_i32_106 dim 1 : vector<8x512xf32>, i32 -> vector<8x512xf32>
    %236 = vector.broadcast %7 : vector<1x512xf32> to vector<8x512xf32>
    %237 = arith.mulf %235, %236 : vector<8x512xf32>
    %c495_i32_107 = arith.constant 495 : i32
    %238 = tpu.dynamic_rotate %214 by %c495_i32_107 dim 1 : vector<8x512xf32>, i32 -> vector<8x512xf32>
    %239 = vector.broadcast %8 : vector<1x512xf32> to vector<8x512xf32>
    %240 = arith.mulf %238, %239 : vector<8x512xf32>
    %241 = tpu.concatenate %219, %222, %225, %228, %214, %231, %234, %237, %240 in 0 : vector<8x512xf32>, vector<8x512xf32>, vector<8x512xf32>, vector<8x512xf32>, vector<8x512xf32>, vector<8x512xf32>, vector<8x512xf32>, vector<8x512xf32>, vector<8x512xf32> -> vector<72x512xf32>
    %cst_108 = arith.constant dense<0.000000e+00> : vector<8x512xf32>
    %242 = tpu.matmul %216, %241, %cst_108 {dimension_numbers = #tpu.dot_dimension_numbers<[1], [0], [0], [1], [0, 0, 1, 1], [], []>} : vector<8x72xf32>, vector<72x512xf32>, vector<8x512xf32> -> vector<8x512xf32>
    %c6_109 = arith.constant 6 : index
    %c0_110 = arith.constant 0 : index
    %c0_111 = arith.constant 0 : index
    %243 = vector.load %arg3[%c6_109, %c0_110, %c0_111] : memref<15x8x1xf32, #tpu.memory_space<vmem>>, vector<1x8x1xf32>
    %244 = vector.shape_cast %243 : vector<1x8x1xf32> to vector<8x1xf32>
    %245 = vector.broadcast %244 : vector<8x1xf32> to vector<8x512xf32>
    %246 = arith.addf %242, %245 : vector<8x512xf32>
    %247 = arith.addf %246, %179 : vector<8x512xf32>
    %cst_112 = arith.constant 0.000000e+00 : f32
    %248 = vector.broadcast %cst_112 : f32 to vector<8x512xf32>
    %249 = arith.maximumf %247, %248 : vector<8x512xf32>
    %c7_113 = arith.constant 7 : index
    %c0_114 = arith.constant 0 : index
    %c0_115 = arith.constant 0 : index
    %250 = vector.load %arg2[%c7_113, %c0_114, %c0_115] : memref<15x8x72xf32, #tpu.memory_space<vmem>>, vector<1x8x72xf32>
    %251 = vector.shape_cast %250 : vector<1x8x72xf32> to vector<8x72xf32>
    %c17_i32_116 = arith.constant 17 : i32
    %252 = tpu.dynamic_rotate %249 by %c17_i32_116 dim 1 : vector<8x512xf32>, i32 -> vector<8x512xf32>
    %253 = vector.broadcast %1 : vector<1x512xf32> to vector<8x512xf32>
    %254 = arith.mulf %252, %253 : vector<8x512xf32>
    %c16_i32_117 = arith.constant 16 : i32
    %255 = tpu.dynamic_rotate %249 by %c16_i32_117 dim 1 : vector<8x512xf32>, i32 -> vector<8x512xf32>
    %256 = vector.broadcast %2 : vector<1x512xf32> to vector<8x512xf32>
    %257 = arith.mulf %255, %256 : vector<8x512xf32>
    %c15_i32_118 = arith.constant 15 : i32
    %258 = tpu.dynamic_rotate %249 by %c15_i32_118 dim 1 : vector<8x512xf32>, i32 -> vector<8x512xf32>
    %259 = vector.broadcast %3 : vector<1x512xf32> to vector<8x512xf32>
    %260 = arith.mulf %258, %259 : vector<8x512xf32>
    %c1_i32_119 = arith.constant 1 : i32
    %261 = tpu.dynamic_rotate %249 by %c1_i32_119 dim 1 : vector<8x512xf32>, i32 -> vector<8x512xf32>
    %262 = vector.broadcast %4 : vector<1x512xf32> to vector<8x512xf32>
    %263 = arith.mulf %261, %262 : vector<8x512xf32>
    %c511_i32_120 = arith.constant 511 : i32
    %264 = tpu.dynamic_rotate %249 by %c511_i32_120 dim 1 : vector<8x512xf32>, i32 -> vector<8x512xf32>
    %265 = vector.broadcast %5 : vector<1x512xf32> to vector<8x512xf32>
    %266 = arith.mulf %264, %265 : vector<8x512xf32>
    %c497_i32_121 = arith.constant 497 : i32
    %267 = tpu.dynamic_rotate %249 by %c497_i32_121 dim 1 : vector<8x512xf32>, i32 -> vector<8x512xf32>
    %268 = vector.broadcast %6 : vector<1x512xf32> to vector<8x512xf32>
    %269 = arith.mulf %267, %268 : vector<8x512xf32>
    %c496_i32_122 = arith.constant 496 : i32
    %270 = tpu.dynamic_rotate %249 by %c496_i32_122 dim 1 : vector<8x512xf32>, i32 -> vector<8x512xf32>
    %271 = vector.broadcast %7 : vector<1x512xf32> to vector<8x512xf32>
    %272 = arith.mulf %270, %271 : vector<8x512xf32>
    %c495_i32_123 = arith.constant 495 : i32
    %273 = tpu.dynamic_rotate %249 by %c495_i32_123 dim 1 : vector<8x512xf32>, i32 -> vector<8x512xf32>
    %274 = vector.broadcast %8 : vector<1x512xf32> to vector<8x512xf32>
    %275 = arith.mulf %273, %274 : vector<8x512xf32>
    %276 = tpu.concatenate %254, %257, %260, %263, %249, %266, %269, %272, %275 in 0 : vector<8x512xf32>, vector<8x512xf32>, vector<8x512xf32>, vector<8x512xf32>, vector<8x512xf32>, vector<8x512xf32>, vector<8x512xf32>, vector<8x512xf32>, vector<8x512xf32> -> vector<72x512xf32>
    %cst_124 = arith.constant dense<0.000000e+00> : vector<8x512xf32>
    %277 = tpu.matmul %251, %276, %cst_124 {dimension_numbers = #tpu.dot_dimension_numbers<[1], [0], [0], [1], [0, 0, 1, 1], [], []>} : vector<8x72xf32>, vector<72x512xf32>, vector<8x512xf32> -> vector<8x512xf32>
    %c7_125 = arith.constant 7 : index
    %c0_126 = arith.constant 0 : index
    %c0_127 = arith.constant 0 : index
    %278 = vector.load %arg3[%c7_125, %c0_126, %c0_127] : memref<15x8x1xf32, #tpu.memory_space<vmem>>, vector<1x8x1xf32>
    %279 = vector.shape_cast %278 : vector<1x8x1xf32> to vector<8x1xf32>
    %280 = vector.broadcast %279 : vector<8x1xf32> to vector<8x512xf32>
    %281 = arith.addf %277, %280 : vector<8x512xf32>
    %cst_128 = arith.constant 0.000000e+00 : f32
    %282 = vector.broadcast %cst_128 : f32 to vector<8x512xf32>
    %283 = arith.maximumf %281, %282 : vector<8x512xf32>
    %c8_129 = arith.constant 8 : index
    %c0_130 = arith.constant 0 : index
    %c0_131 = arith.constant 0 : index
    %284 = vector.load %arg2[%c8_129, %c0_130, %c0_131] : memref<15x8x72xf32, #tpu.memory_space<vmem>>, vector<1x8x72xf32>
    %285 = vector.shape_cast %284 : vector<1x8x72xf32> to vector<8x72xf32>
    %c17_i32_132 = arith.constant 17 : i32
    %286 = tpu.dynamic_rotate %283 by %c17_i32_132 dim 1 : vector<8x512xf32>, i32 -> vector<8x512xf32>
    %287 = vector.broadcast %1 : vector<1x512xf32> to vector<8x512xf32>
    %288 = arith.mulf %286, %287 : vector<8x512xf32>
    %c16_i32_133 = arith.constant 16 : i32
    %289 = tpu.dynamic_rotate %283 by %c16_i32_133 dim 1 : vector<8x512xf32>, i32 -> vector<8x512xf32>
    %290 = vector.broadcast %2 : vector<1x512xf32> to vector<8x512xf32>
    %291 = arith.mulf %289, %290 : vector<8x512xf32>
    %c15_i32_134 = arith.constant 15 : i32
    %292 = tpu.dynamic_rotate %283 by %c15_i32_134 dim 1 : vector<8x512xf32>, i32 -> vector<8x512xf32>
    %293 = vector.broadcast %3 : vector<1x512xf32> to vector<8x512xf32>
    %294 = arith.mulf %292, %293 : vector<8x512xf32>
    %c1_i32_135 = arith.constant 1 : i32
    %295 = tpu.dynamic_rotate %283 by %c1_i32_135 dim 1 : vector<8x512xf32>, i32 -> vector<8x512xf32>
    %296 = vector.broadcast %4 : vector<1x512xf32> to vector<8x512xf32>
    %297 = arith.mulf %295, %296 : vector<8x512xf32>
    %c511_i32_136 = arith.constant 511 : i32
    %298 = tpu.dynamic_rotate %283 by %c511_i32_136 dim 1 : vector<8x512xf32>, i32 -> vector<8x512xf32>
    %299 = vector.broadcast %5 : vector<1x512xf32> to vector<8x512xf32>
    %300 = arith.mulf %298, %299 : vector<8x512xf32>
    %c497_i32_137 = arith.constant 497 : i32
    %301 = tpu.dynamic_rotate %283 by %c497_i32_137 dim 1 : vector<8x512xf32>, i32 -> vector<8x512xf32>
    %302 = vector.broadcast %6 : vector<1x512xf32> to vector<8x512xf32>
    %303 = arith.mulf %301, %302 : vector<8x512xf32>
    %c496_i32_138 = arith.constant 496 : i32
    %304 = tpu.dynamic_rotate %283 by %c496_i32_138 dim 1 : vector<8x512xf32>, i32 -> vector<8x512xf32>
    %305 = vector.broadcast %7 : vector<1x512xf32> to vector<8x512xf32>
    %306 = arith.mulf %304, %305 : vector<8x512xf32>
    %c495_i32_139 = arith.constant 495 : i32
    %307 = tpu.dynamic_rotate %283 by %c495_i32_139 dim 1 : vector<8x512xf32>, i32 -> vector<8x512xf32>
    %308 = vector.broadcast %8 : vector<1x512xf32> to vector<8x512xf32>
    %309 = arith.mulf %307, %308 : vector<8x512xf32>
    %310 = tpu.concatenate %288, %291, %294, %297, %283, %300, %303, %306, %309 in 0 : vector<8x512xf32>, vector<8x512xf32>, vector<8x512xf32>, vector<8x512xf32>, vector<8x512xf32>, vector<8x512xf32>, vector<8x512xf32>, vector<8x512xf32>, vector<8x512xf32> -> vector<72x512xf32>
    %cst_140 = arith.constant dense<0.000000e+00> : vector<8x512xf32>
    %311 = tpu.matmul %285, %310, %cst_140 {dimension_numbers = #tpu.dot_dimension_numbers<[1], [0], [0], [1], [0, 0, 1, 1], [], []>} : vector<8x72xf32>, vector<72x512xf32>, vector<8x512xf32> -> vector<8x512xf32>
    %c8_141 = arith.constant 8 : index
    %c0_142 = arith.constant 0 : index
    %c0_143 = arith.constant 0 : index
    %312 = vector.load %arg3[%c8_141, %c0_142, %c0_143] : memref<15x8x1xf32, #tpu.memory_space<vmem>>, vector<1x8x1xf32>
    %313 = vector.shape_cast %312 : vector<1x8x1xf32> to vector<8x1xf32>
    %314 = vector.broadcast %313 : vector<8x1xf32> to vector<8x512xf32>
    %315 = arith.addf %311, %314 : vector<8x512xf32>
    %316 = arith.addf %315, %249 : vector<8x512xf32>
    %cst_144 = arith.constant 0.000000e+00 : f32
    %317 = vector.broadcast %cst_144 : f32 to vector<8x512xf32>
    %318 = arith.maximumf %316, %317 : vector<8x512xf32>
    %c9 = arith.constant 9 : index
    %c0_145 = arith.constant 0 : index
    %c0_146 = arith.constant 0 : index
    %319 = vector.load %arg2[%c9, %c0_145, %c0_146] : memref<15x8x72xf32, #tpu.memory_space<vmem>>, vector<1x8x72xf32>
    %320 = vector.shape_cast %319 : vector<1x8x72xf32> to vector<8x72xf32>
    %c17_i32_147 = arith.constant 17 : i32
    %321 = tpu.dynamic_rotate %318 by %c17_i32_147 dim 1 : vector<8x512xf32>, i32 -> vector<8x512xf32>
    %322 = vector.broadcast %1 : vector<1x512xf32> to vector<8x512xf32>
    %323 = arith.mulf %321, %322 : vector<8x512xf32>
    %c16_i32_148 = arith.constant 16 : i32
    %324 = tpu.dynamic_rotate %318 by %c16_i32_148 dim 1 : vector<8x512xf32>, i32 -> vector<8x512xf32>
    %325 = vector.broadcast %2 : vector<1x512xf32> to vector<8x512xf32>
    %326 = arith.mulf %324, %325 : vector<8x512xf32>
    %c15_i32_149 = arith.constant 15 : i32
    %327 = tpu.dynamic_rotate %318 by %c15_i32_149 dim 1 : vector<8x512xf32>, i32 -> vector<8x512xf32>
    %328 = vector.broadcast %3 : vector<1x512xf32> to vector<8x512xf32>
    %329 = arith.mulf %327, %328 : vector<8x512xf32>
    %c1_i32_150 = arith.constant 1 : i32
    %330 = tpu.dynamic_rotate %318 by %c1_i32_150 dim 1 : vector<8x512xf32>, i32 -> vector<8x512xf32>
    %331 = vector.broadcast %4 : vector<1x512xf32> to vector<8x512xf32>
    %332 = arith.mulf %330, %331 : vector<8x512xf32>
    %c511_i32_151 = arith.constant 511 : i32
    %333 = tpu.dynamic_rotate %318 by %c511_i32_151 dim 1 : vector<8x512xf32>, i32 -> vector<8x512xf32>
    %334 = vector.broadcast %5 : vector<1x512xf32> to vector<8x512xf32>
    %335 = arith.mulf %333, %334 : vector<8x512xf32>
    %c497_i32_152 = arith.constant 497 : i32
    %336 = tpu.dynamic_rotate %318 by %c497_i32_152 dim 1 : vector<8x512xf32>, i32 -> vector<8x512xf32>
    %337 = vector.broadcast %6 : vector<1x512xf32> to vector<8x512xf32>
    %338 = arith.mulf %336, %337 : vector<8x512xf32>
    %c496_i32_153 = arith.constant 496 : i32
    %339 = tpu.dynamic_rotate %318 by %c496_i32_153 dim 1 : vector<8x512xf32>, i32 -> vector<8x512xf32>
    %340 = vector.broadcast %7 : vector<1x512xf32> to vector<8x512xf32>
    %341 = arith.mulf %339, %340 : vector<8x512xf32>
    %c495_i32_154 = arith.constant 495 : i32
    %342 = tpu.dynamic_rotate %318 by %c495_i32_154 dim 1 : vector<8x512xf32>, i32 -> vector<8x512xf32>
    %343 = vector.broadcast %8 : vector<1x512xf32> to vector<8x512xf32>
    %344 = arith.mulf %342, %343 : vector<8x512xf32>
    %345 = tpu.concatenate %323, %326, %329, %332, %318, %335, %338, %341, %344 in 0 : vector<8x512xf32>, vector<8x512xf32>, vector<8x512xf32>, vector<8x512xf32>, vector<8x512xf32>, vector<8x512xf32>, vector<8x512xf32>, vector<8x512xf32>, vector<8x512xf32> -> vector<72x512xf32>
    %cst_155 = arith.constant dense<0.000000e+00> : vector<8x512xf32>
    %346 = tpu.matmul %320, %345, %cst_155 {dimension_numbers = #tpu.dot_dimension_numbers<[1], [0], [0], [1], [0, 0, 1, 1], [], []>} : vector<8x72xf32>, vector<72x512xf32>, vector<8x512xf32> -> vector<8x512xf32>
    %c9_156 = arith.constant 9 : index
    %c0_157 = arith.constant 0 : index
    %c0_158 = arith.constant 0 : index
    %347 = vector.load %arg3[%c9_156, %c0_157, %c0_158] : memref<15x8x1xf32, #tpu.memory_space<vmem>>, vector<1x8x1xf32>
    %348 = vector.shape_cast %347 : vector<1x8x1xf32> to vector<8x1xf32>
    %349 = vector.broadcast %348 : vector<8x1xf32> to vector<8x512xf32>
    %350 = arith.addf %346, %349 : vector<8x512xf32>
    %351 = arith.addf %350, %179 : vector<8x512xf32>
    %c0_159 = arith.constant 0 : index
    %c0_160 = arith.constant 0 : index
    %352 = vector.load %arg6[%c0_159, %c0_160] : memref<8x512xf32, #tpu.memory_space<vmem>>, vector<8x512xf32>
    tpu.vector_store %arg6[%c0_159, %c0_160], %351 {strides = array<i32>} : memref<8x512xf32, #tpu.memory_space<vmem>>, vector<8x512xf32>,
    %c10 = arith.constant 10 : index
    %c0_161 = arith.constant 0 : index
    %c0_162 = arith.constant 0 : index
    %353 = vector.load %arg2[%c10, %c0_161, %c0_162] : memref<15x8x72xf32, #tpu.memory_space<vmem>>, vector<1x8x72xf32>
    %354 = vector.shape_cast %353 : vector<1x8x72xf32> to vector<8x72xf32>
    %c17_i32_163 = arith.constant 17 : i32
    %355 = tpu.dynamic_rotate %351 by %c17_i32_163 dim 1 : vector<8x512xf32>, i32 -> vector<8x512xf32>
    %356 = vector.broadcast %1 : vector<1x512xf32> to vector<8x512xf32>
    %357 = arith.mulf %355, %356 : vector<8x512xf32>
    %c16_i32_164 = arith.constant 16 : i32
    %358 = tpu.dynamic_rotate %351 by %c16_i32_164 dim 1 : vector<8x512xf32>, i32 -> vector<8x512xf32>
    %359 = vector.broadcast %2 : vector<1x512xf32> to vector<8x512xf32>
    %360 = arith.mulf %358, %359 : vector<8x512xf32>
    %c15_i32_165 = arith.constant 15 : i32
    %361 = tpu.dynamic_rotate %351 by %c15_i32_165 dim 1 : vector<8x512xf32>, i32 -> vector<8x512xf32>
    %362 = vector.broadcast %3 : vector<1x512xf32> to vector<8x512xf32>
    %363 = arith.mulf %361, %362 : vector<8x512xf32>
    %c1_i32_166 = arith.constant 1 : i32
    %364 = tpu.dynamic_rotate %351 by %c1_i32_166 dim 1 : vector<8x512xf32>, i32 -> vector<8x512xf32>
    %365 = vector.broadcast %4 : vector<1x512xf32> to vector<8x512xf32>
    %366 = arith.mulf %364, %365 : vector<8x512xf32>
    %c511_i32_167 = arith.constant 511 : i32
    %367 = tpu.dynamic_rotate %351 by %c511_i32_167 dim 1 : vector<8x512xf32>, i32 -> vector<8x512xf32>
    %368 = vector.broadcast %5 : vector<1x512xf32> to vector<8x512xf32>
    %369 = arith.mulf %367, %368 : vector<8x512xf32>
    %c497_i32_168 = arith.constant 497 : i32
    %370 = tpu.dynamic_rotate %351 by %c497_i32_168 dim 1 : vector<8x512xf32>, i32 -> vector<8x512xf32>
    %371 = vector.broadcast %6 : vector<1x512xf32> to vector<8x512xf32>
    %372 = arith.mulf %370, %371 : vector<8x512xf32>
    %c496_i32_169 = arith.constant 496 : i32
    %373 = tpu.dynamic_rotate %351 by %c496_i32_169 dim 1 : vector<8x512xf32>, i32 -> vector<8x512xf32>
    %374 = vector.broadcast %7 : vector<1x512xf32> to vector<8x512xf32>
    %375 = arith.mulf %373, %374 : vector<8x512xf32>
    %c495_i32_170 = arith.constant 495 : i32
    %376 = tpu.dynamic_rotate %351 by %c495_i32_170 dim 1 : vector<8x512xf32>, i32 -> vector<8x512xf32>
    %377 = vector.broadcast %8 : vector<1x512xf32> to vector<8x512xf32>
    %378 = arith.mulf %376, %377 : vector<8x512xf32>
    %379 = tpu.concatenate %357, %360, %363, %366, %351, %369, %372, %375, %378 in 0 : vector<8x512xf32>, vector<8x512xf32>, vector<8x512xf32>, vector<8x512xf32>, vector<8x512xf32>, vector<8x512xf32>, vector<8x512xf32>, vector<8x512xf32>, vector<8x512xf32> -> vector<72x512xf32>
    %cst_171 = arith.constant dense<0.000000e+00> : vector<8x512xf32>
    %380 = tpu.matmul %354, %379, %cst_171 {dimension_numbers = #tpu.dot_dimension_numbers<[1], [0], [0], [1], [0, 0, 1, 1], [], []>} : vector<8x72xf32>, vector<72x512xf32>, vector<8x512xf32> -> vector<8x512xf32>
    %c10_172 = arith.constant 10 : index
    %c0_173 = arith.constant 0 : index
    %c0_174 = arith.constant 0 : index
    %381 = vector.load %arg3[%c10_172, %c0_173, %c0_174] : memref<15x8x1xf32, #tpu.memory_space<vmem>>, vector<1x8x1xf32>
    %382 = vector.shape_cast %381 : vector<1x8x1xf32> to vector<8x1xf32>
    %383 = vector.broadcast %382 : vector<8x1xf32> to vector<8x512xf32>
    %384 = arith.addf %380, %383 : vector<8x512xf32>
    %cst_175 = arith.constant 0.000000e+00 : f32
    %385 = vector.broadcast %cst_175 : f32 to vector<8x512xf32>
    %386 = arith.maximumf %384, %385 : vector<8x512xf32>
    %c11 = arith.constant 11 : index
    %c0_176 = arith.constant 0 : index
    %c0_177 = arith.constant 0 : index
    %387 = vector.load %arg2[%c11, %c0_176, %c0_177] : memref<15x8x72xf32, #tpu.memory_space<vmem>>, vector<1x8x72xf32>
    %388 = vector.shape_cast %387 : vector<1x8x72xf32> to vector<8x72xf32>
    %c17_i32_178 = arith.constant 17 : i32
    %389 = tpu.dynamic_rotate %386 by %c17_i32_178 dim 1 : vector<8x512xf32>, i32 -> vector<8x512xf32>
    %390 = vector.broadcast %1 : vector<1x512xf32> to vector<8x512xf32>
    %391 = arith.mulf %389, %390 : vector<8x512xf32>
    %c16_i32_179 = arith.constant 16 : i32
    %392 = tpu.dynamic_rotate %386 by %c16_i32_179 dim 1 : vector<8x512xf32>, i32 -> vector<8x512xf32>
    %393 = vector.broadcast %2 : vector<1x512xf32> to vector<8x512xf32>
    %394 = arith.mulf %392, %393 : vector<8x512xf32>
    %c15_i32_180 = arith.constant 15 : i32
    %395 = tpu.dynamic_rotate %386 by %c15_i32_180 dim 1 : vector<8x512xf32>, i32 -> vector<8x512xf32>
    %396 = vector.broadcast %3 : vector<1x512xf32> to vector<8x512xf32>
    %397 = arith.mulf %395, %396 : vector<8x512xf32>
    %c1_i32_181 = arith.constant 1 : i32
    %398 = tpu.dynamic_rotate %386 by %c1_i32_181 dim 1 : vector<8x512xf32>, i32 -> vector<8x512xf32>
    %399 = vector.broadcast %4 : vector<1x512xf32> to vector<8x512xf32>
    %400 = arith.mulf %398, %399 : vector<8x512xf32>
    %c511_i32_182 = arith.constant 511 : i32
    %401 = tpu.dynamic_rotate %386 by %c511_i32_182 dim 1 : vector<8x512xf32>, i32 -> vector<8x512xf32>
    %402 = vector.broadcast %5 : vector<1x512xf32> to vector<8x512xf32>
    %403 = arith.mulf %401, %402 : vector<8x512xf32>
    %c497_i32_183 = arith.constant 497 : i32
    %404 = tpu.dynamic_rotate %386 by %c497_i32_183 dim 1 : vector<8x512xf32>, i32 -> vector<8x512xf32>
    %405 = vector.broadcast %6 : vector<1x512xf32> to vector<8x512xf32>
    %406 = arith.mulf %404, %405 : vector<8x512xf32>
    %c496_i32_184 = arith.constant 496 : i32
    %407 = tpu.dynamic_rotate %386 by %c496_i32_184 dim 1 : vector<8x512xf32>, i32 -> vector<8x512xf32>
    %408 = vector.broadcast %7 : vector<1x512xf32> to vector<8x512xf32>
    %409 = arith.mulf %407, %408 : vector<8x512xf32>
    %c495_i32_185 = arith.constant 495 : i32
    %410 = tpu.dynamic_rotate %386 by %c495_i32_185 dim 1 : vector<8x512xf32>, i32 -> vector<8x512xf32>
    %411 = vector.broadcast %8 : vector<1x512xf32> to vector<8x512xf32>
    %412 = arith.mulf %410, %411 : vector<8x512xf32>
    %413 = tpu.concatenate %391, %394, %397, %400, %386, %403, %406, %409, %412 in 0 : vector<8x512xf32>, vector<8x512xf32>, vector<8x512xf32>, vector<8x512xf32>, vector<8x512xf32>, vector<8x512xf32>, vector<8x512xf32>, vector<8x512xf32>, vector<8x512xf32> -> vector<72x512xf32>
    %cst_186 = arith.constant dense<0.000000e+00> : vector<8x512xf32>
    %414 = tpu.matmul %388, %413, %cst_186 {dimension_numbers = #tpu.dot_dimension_numbers<[1], [0], [0], [1], [0, 0, 1, 1], [], []>} : vector<8x72xf32>, vector<72x512xf32>, vector<8x512xf32> -> vector<8x512xf32>
    %c11_187 = arith.constant 11 : index
    %c0_188 = arith.constant 0 : index
    %c0_189 = arith.constant 0 : index
    %415 = vector.load %arg3[%c11_187, %c0_188, %c0_189] : memref<15x8x1xf32, #tpu.memory_space<vmem>>, vector<1x8x1xf32>
    %416 = vector.shape_cast %415 : vector<1x8x1xf32> to vector<8x1xf32>
    %417 = vector.broadcast %416 : vector<8x1xf32> to vector<8x512xf32>
    %418 = arith.addf %414, %417 : vector<8x512xf32>
    %419 = arith.addf %418, %351 : vector<8x512xf32>
    %cst_190 = arith.constant 0.000000e+00 : f32
    %420 = vector.broadcast %cst_190 : f32 to vector<8x512xf32>
    %421 = arith.maximumf %419, %420 : vector<8x512xf32>
    %c12 = arith.constant 12 : index
    %c0_191 = arith.constant 0 : index
    %c0_192 = arith.constant 0 : index
    %422 = vector.load %arg2[%c12, %c0_191, %c0_192] : memref<15x8x72xf32, #tpu.memory_space<vmem>>, vector<1x8x72xf32>
    %423 = vector.shape_cast %422 : vector<1x8x72xf32> to vector<8x72xf32>
    %c17_i32_193 = arith.constant 17 : i32
    %424 = tpu.dynamic_rotate %421 by %c17_i32_193 dim 1 : vector<8x512xf32>, i32 -> vector<8x512xf32>
    %425 = vector.broadcast %1 : vector<1x512xf32> to vector<8x512xf32>
    %426 = arith.mulf %424, %425 : vector<8x512xf32>
    %c16_i32_194 = arith.constant 16 : i32
    %427 = tpu.dynamic_rotate %421 by %c16_i32_194 dim 1 : vector<8x512xf32>, i32 -> vector<8x512xf32>
    %428 = vector.broadcast %2 : vector<1x512xf32> to vector<8x512xf32>
    %429 = arith.mulf %427, %428 : vector<8x512xf32>
    %c15_i32_195 = arith.constant 15 : i32
    %430 = tpu.dynamic_rotate %421 by %c15_i32_195 dim 1 : vector<8x512xf32>, i32 -> vector<8x512xf32>
    %431 = vector.broadcast %3 : vector<1x512xf32> to vector<8x512xf32>
    %432 = arith.mulf %430, %431 : vector<8x512xf32>
    %c1_i32_196 = arith.constant 1 : i32
    %433 = tpu.dynamic_rotate %421 by %c1_i32_196 dim 1 : vector<8x512xf32>, i32 -> vector<8x512xf32>
    %434 = vector.broadcast %4 : vector<1x512xf32> to vector<8x512xf32>
    %435 = arith.mulf %433, %434 : vector<8x512xf32>
    %c511_i32_197 = arith.constant 511 : i32
    %436 = tpu.dynamic_rotate %421 by %c511_i32_197 dim 1 : vector<8x512xf32>, i32 -> vector<8x512xf32>
    %437 = vector.broadcast %5 : vector<1x512xf32> to vector<8x512xf32>
    %438 = arith.mulf %436, %437 : vector<8x512xf32>
    %c497_i32_198 = arith.constant 497 : i32
    %439 = tpu.dynamic_rotate %421 by %c497_i32_198 dim 1 : vector<8x512xf32>, i32 -> vector<8x512xf32>
    %440 = vector.broadcast %6 : vector<1x512xf32> to vector<8x512xf32>
    %441 = arith.mulf %439, %440 : vector<8x512xf32>
    %c496_i32_199 = arith.constant 496 : i32
    %442 = tpu.dynamic_rotate %421 by %c496_i32_199 dim 1 : vector<8x512xf32>, i32 -> vector<8x512xf32>
    %443 = vector.broadcast %7 : vector<1x512xf32> to vector<8x512xf32>
    %444 = arith.mulf %442, %443 : vector<8x512xf32>
    %c495_i32_200 = arith.constant 495 : i32
    %445 = tpu.dynamic_rotate %421 by %c495_i32_200 dim 1 : vector<8x512xf32>, i32 -> vector<8x512xf32>
    %446 = vector.broadcast %8 : vector<1x512xf32> to vector<8x512xf32>
    %447 = arith.mulf %445, %446 : vector<8x512xf32>
    %448 = tpu.concatenate %426, %429, %432, %435, %421, %438, %441, %444, %447 in 0 : vector<8x512xf32>, vector<8x512xf32>, vector<8x512xf32>, vector<8x512xf32>, vector<8x512xf32>, vector<8x512xf32>, vector<8x512xf32>, vector<8x512xf32>, vector<8x512xf32> -> vector<72x512xf32>
    %cst_201 = arith.constant dense<0.000000e+00> : vector<8x512xf32>
    %449 = tpu.matmul %423, %448, %cst_201 {dimension_numbers = #tpu.dot_dimension_numbers<[1], [0], [0], [1], [0, 0, 1, 1], [], []>} : vector<8x72xf32>, vector<72x512xf32>, vector<8x512xf32> -> vector<8x512xf32>
    %c12_202 = arith.constant 12 : index
    %c0_203 = arith.constant 0 : index
    %c0_204 = arith.constant 0 : index
    %450 = vector.load %arg3[%c12_202, %c0_203, %c0_204] : memref<15x8x1xf32, #tpu.memory_space<vmem>>, vector<1x8x1xf32>
    %451 = vector.shape_cast %450 : vector<1x8x1xf32> to vector<8x1xf32>
    %452 = vector.broadcast %451 : vector<8x1xf32> to vector<8x512xf32>
    %453 = arith.addf %449, %452 : vector<8x512xf32>
    %cst_205 = arith.constant 0.000000e+00 : f32
    %454 = vector.broadcast %cst_205 : f32 to vector<8x512xf32>
    %455 = arith.maximumf %453, %454 : vector<8x512xf32>
    %c13 = arith.constant 13 : index
    %c0_206 = arith.constant 0 : index
    %c0_207 = arith.constant 0 : index
    %456 = vector.load %arg2[%c13, %c0_206, %c0_207] : memref<15x8x72xf32, #tpu.memory_space<vmem>>, vector<1x8x72xf32>
    %457 = vector.shape_cast %456 : vector<1x8x72xf32> to vector<8x72xf32>
    %c17_i32_208 = arith.constant 17 : i32
    %458 = tpu.dynamic_rotate %455 by %c17_i32_208 dim 1 : vector<8x512xf32>, i32 -> vector<8x512xf32>
    %459 = vector.broadcast %1 : vector<1x512xf32> to vector<8x512xf32>
    %460 = arith.mulf %458, %459 : vector<8x512xf32>
    %c16_i32_209 = arith.constant 16 : i32
    %461 = tpu.dynamic_rotate %455 by %c16_i32_209 dim 1 : vector<8x512xf32>, i32 -> vector<8x512xf32>
    %462 = vector.broadcast %2 : vector<1x512xf32> to vector<8x512xf32>
    %463 = arith.mulf %461, %462 : vector<8x512xf32>
    %c15_i32_210 = arith.constant 15 : i32
    %464 = tpu.dynamic_rotate %455 by %c15_i32_210 dim 1 : vector<8x512xf32>, i32 -> vector<8x512xf32>
    %465 = vector.broadcast %3 : vector<1x512xf32> to vector<8x512xf32>
    %466 = arith.mulf %464, %465 : vector<8x512xf32>
    %c1_i32_211 = arith.constant 1 : i32
    %467 = tpu.dynamic_rotate %455 by %c1_i32_211 dim 1 : vector<8x512xf32>, i32 -> vector<8x512xf32>
    %468 = vector.broadcast %4 : vector<1x512xf32> to vector<8x512xf32>
    %469 = arith.mulf %467, %468 : vector<8x512xf32>
    %c511_i32_212 = arith.constant 511 : i32
    %470 = tpu.dynamic_rotate %455 by %c511_i32_212 dim 1 : vector<8x512xf32>, i32 -> vector<8x512xf32>
    %471 = vector.broadcast %5 : vector<1x512xf32> to vector<8x512xf32>
    %472 = arith.mulf %470, %471 : vector<8x512xf32>
    %c497_i32_213 = arith.constant 497 : i32
    %473 = tpu.dynamic_rotate %455 by %c497_i32_213 dim 1 : vector<8x512xf32>, i32 -> vector<8x512xf32>
    %474 = vector.broadcast %6 : vector<1x512xf32> to vector<8x512xf32>
    %475 = arith.mulf %473, %474 : vector<8x512xf32>
    %c496_i32_214 = arith.constant 496 : i32
    %476 = tpu.dynamic_rotate %455 by %c496_i32_214 dim 1 : vector<8x512xf32>, i32 -> vector<8x512xf32>
    %477 = vector.broadcast %7 : vector<1x512xf32> to vector<8x512xf32>
    %478 = arith.mulf %476, %477 : vector<8x512xf32>
    %c495_i32_215 = arith.constant 495 : i32
    %479 = tpu.dynamic_rotate %455 by %c495_i32_215 dim 1 : vector<8x512xf32>, i32 -> vector<8x512xf32>
    %480 = vector.broadcast %8 : vector<1x512xf32> to vector<8x512xf32>
    %481 = arith.mulf %479, %480 : vector<8x512xf32>
    %482 = tpu.concatenate %460, %463, %466, %469, %455, %472, %475, %478, %481 in 0 : vector<8x512xf32>, vector<8x512xf32>, vector<8x512xf32>, vector<8x512xf32>, vector<8x512xf32>, vector<8x512xf32>, vector<8x512xf32>, vector<8x512xf32>, vector<8x512xf32> -> vector<72x512xf32>
    %cst_216 = arith.constant dense<0.000000e+00> : vector<8x512xf32>
    %483 = tpu.matmul %457, %482, %cst_216 {dimension_numbers = #tpu.dot_dimension_numbers<[1], [0], [0], [1], [0, 0, 1, 1], [], []>} : vector<8x72xf32>, vector<72x512xf32>, vector<8x512xf32> -> vector<8x512xf32>
    %c13_217 = arith.constant 13 : index
    %c0_218 = arith.constant 0 : index
    %c0_219 = arith.constant 0 : index
    %484 = vector.load %arg3[%c13_217, %c0_218, %c0_219] : memref<15x8x1xf32, #tpu.memory_space<vmem>>, vector<1x8x1xf32>
    %485 = vector.shape_cast %484 : vector<1x8x1xf32> to vector<8x1xf32>
    %486 = vector.broadcast %485 : vector<8x1xf32> to vector<8x512xf32>
    %487 = arith.addf %483, %486 : vector<8x512xf32>
    %488 = arith.addf %487, %421 : vector<8x512xf32>
    %cst_220 = arith.constant 0.000000e+00 : f32
    %489 = vector.broadcast %cst_220 : f32 to vector<8x512xf32>
    %490 = arith.maximumf %488, %489 : vector<8x512xf32>
    %c14 = arith.constant 14 : index
    %c0_221 = arith.constant 0 : index
    %c0_222 = arith.constant 0 : index
    %491 = vector.load %arg2[%c14, %c0_221, %c0_222] : memref<15x8x72xf32, #tpu.memory_space<vmem>>, vector<1x8x72xf32>
    %492 = vector.shape_cast %491 : vector<1x8x72xf32> to vector<8x72xf32>
    %c17_i32_223 = arith.constant 17 : i32
    %493 = tpu.dynamic_rotate %490 by %c17_i32_223 dim 1 : vector<8x512xf32>, i32 -> vector<8x512xf32>
    %494 = vector.broadcast %1 : vector<1x512xf32> to vector<8x512xf32>
    %495 = arith.mulf %493, %494 : vector<8x512xf32>
    %c16_i32_224 = arith.constant 16 : i32
    %496 = tpu.dynamic_rotate %490 by %c16_i32_224 dim 1 : vector<8x512xf32>, i32 -> vector<8x512xf32>
    %497 = vector.broadcast %2 : vector<1x512xf32> to vector<8x512xf32>
    %498 = arith.mulf %496, %497 : vector<8x512xf32>
    %c15_i32_225 = arith.constant 15 : i32
    %499 = tpu.dynamic_rotate %490 by %c15_i32_225 dim 1 : vector<8x512xf32>, i32 -> vector<8x512xf32>
    %500 = vector.broadcast %3 : vector<1x512xf32> to vector<8x512xf32>
    %501 = arith.mulf %499, %500 : vector<8x512xf32>
    %c1_i32_226 = arith.constant 1 : i32
    %502 = tpu.dynamic_rotate %490 by %c1_i32_226 dim 1 : vector<8x512xf32>, i32 -> vector<8x512xf32>
    %503 = vector.broadcast %4 : vector<1x512xf32> to vector<8x512xf32>
    %504 = arith.mulf %502, %503 : vector<8x512xf32>
    %c511_i32_227 = arith.constant 511 : i32
    %505 = tpu.dynamic_rotate %490 by %c511_i32_227 dim 1 : vector<8x512xf32>, i32 -> vector<8x512xf32>
    %506 = vector.broadcast %5 : vector<1x512xf32> to vector<8x512xf32>
    %507 = arith.mulf %505, %506 : vector<8x512xf32>
    %c497_i32_228 = arith.constant 497 : i32
    %508 = tpu.dynamic_rotate %490 by %c497_i32_228 dim 1 : vector<8x512xf32>, i32 -> vector<8x512xf32>
    %509 = vector.broadcast %6 : vector<1x512xf32> to vector<8x512xf32>
    %510 = arith.mulf %508, %509 : vector<8x512xf32>
    %c496_i32_229 = arith.constant 496 : i32
    %511 = tpu.dynamic_rotate %490 by %c496_i32_229 dim 1 : vector<8x512xf32>, i32 -> vector<8x512xf32>
    %512 = vector.broadcast %7 : vector<1x512xf32> to vector<8x512xf32>
    %513 = arith.mulf %511, %512 : vector<8x512xf32>
    %c495_i32_230 = arith.constant 495 : i32
    %514 = tpu.dynamic_rotate %490 by %c495_i32_230 dim 1 : vector<8x512xf32>, i32 -> vector<8x512xf32>
    %515 = vector.broadcast %8 : vector<1x512xf32> to vector<8x512xf32>
    %516 = arith.mulf %514, %515 : vector<8x512xf32>
    %517 = tpu.concatenate %495, %498, %501, %504, %490, %507, %510, %513, %516 in 0 : vector<8x512xf32>, vector<8x512xf32>, vector<8x512xf32>, vector<8x512xf32>, vector<8x512xf32>, vector<8x512xf32>, vector<8x512xf32>, vector<8x512xf32>, vector<8x512xf32> -> vector<72x512xf32>
    %cst_231 = arith.constant dense<0.000000e+00> : vector<8x512xf32>
    %518 = tpu.matmul %492, %517, %cst_231 {dimension_numbers = #tpu.dot_dimension_numbers<[1], [0], [0], [1], [0, 0, 1, 1], [], []>} : vector<8x72xf32>, vector<72x512xf32>, vector<8x512xf32> -> vector<8x512xf32>
    %c14_232 = arith.constant 14 : index
    %c0_233 = arith.constant 0 : index
    %c0_234 = arith.constant 0 : index
    %519 = vector.load %arg3[%c14_232, %c0_233, %c0_234] : memref<15x8x1xf32, #tpu.memory_space<vmem>>, vector<1x8x1xf32>
    %520 = vector.shape_cast %519 : vector<1x8x1xf32> to vector<8x1xf32>
    %521 = vector.broadcast %520 : vector<8x1xf32> to vector<8x512xf32>
    %522 = arith.addf %518, %521 : vector<8x512xf32>
    %523 = arith.addf %522, %351 : vector<8x512xf32>
    %c0_235 = arith.constant 0 : index
    %c0_236 = arith.constant 0 : index
    %524 = vector.load %arg7[%c0_235, %c0_236] : memref<8x512xf32, #tpu.memory_space<vmem>>, vector<8x512xf32>
    tpu.vector_store %arg7[%c0_235, %c0_236], %523 {strides = array<i32>} : memref<8x512xf32, #tpu.memory_space<vmem>>, vector<8x512xf32>,
    return
  }
  func.func @transform_0(%arg0: i32) -> (i32, i32) {
    %c0_i32 = arith.constant 0 : i32
    %c0_i32_0 = arith.constant 0 : i32
    return %c0_i32, %arg0 : i32, i32
  }
  func.func @transform_1(%arg0: i32) -> (i32, i32, i32) {
    %c0_i32 = arith.constant 0 : i32
    %c0_i32_0 = arith.constant 0 : i32
    %c0_i32_1 = arith.constant 0 : i32
    %c0_i32_2 = arith.constant 0 : i32
    return %c0_i32, %c0_i32_0, %c0_i32_1 : i32, i32, i32
  }
  func.func @transform_2(%arg0: i32) -> (i32, i32, i32) {
    %c0_i32 = arith.constant 0 : i32
    %c0_i32_0 = arith.constant 0 : i32
    %c0_i32_1 = arith.constant 0 : i32
    %c0_i32_2 = arith.constant 0 : i32
    return %c0_i32, %c0_i32_0, %c0_i32_1 : i32, i32, i32
  }
  func.func @transform_3(%arg0: i32) -> (i32, i32) {
    %c0_i32 = arith.constant 0 : i32
    %c0_i32_0 = arith.constant 0 : i32
    %c0_i32_1 = arith.constant 0 : i32
    return %c0_i32, %c0_i32_0 : i32, i32
  }
  func.func @transform_4(%arg0: i32) -> (i32, i32) {
    %c0_i32 = arith.constant 0 : i32
    %c0_i32_0 = arith.constant 0 : i32
    return %c0_i32, %arg0 : i32, i32
  }
  func.func @transform_5(%arg0: i32) -> (i32, i32) {
    %c0_i32 = arith.constant 0 : i32
    %c0_i32_0 = arith.constant 0 : i32
    return %c0_i32, %arg0 : i32, i32
  }
  func.func @transform_6(%arg0: i32) -> (i32, i32) {
    %c0_i32 = arith.constant 0 : i32
    %c0_i32_0 = arith.constant 0 : i32
    return %c0_i32, %arg0 : i32, i32
  }
}

</mosaic_0001>

<bundles_post_ra>
// kernel: hybridformer_forward.1
= control target key start
LH: loop header
LB: loop body
LE: loop exit
PB: predicated region body
PF: predicated region fallthrough
CT: control target
= control target key end

     0   :  { %s5123_s25 = smov 17   ;;  %s5124_s30 = smov 16   ;;  %v5130_v4 = vmov 0.0   ;;  %v5131_v5 = vmov 0   ;;  %v48_v7 = vlaneseq  ;;  %vm352_vm8 = vcmask 588800   ;;  %s8152_s0 = inlined_call_operand.vmem [shape: f32[8,512], index: 0, kind: input, shape index: {}]   ;;  %s8153_s2 = inlined_call_operand.vmem [shape: f32[15,8,1], index: 2, kind: input, shape index: {}]   ;;  %s8154_s3 = inlined_call_operand.vmem [shape: f32[9,512], index: 3, kind: input, shape index: {}]   ;;  %s8155_s1 = inlined_call_operand.vmem [shape: f32[15,8,72], index: 1, kind: input, shape index: {}]   ;;  %s8156_s4 = inlined_call_operand.vmem [shape: f32[8,512], index: 4, kind: output, shape index: {0}]   ;;  %s8157_s5 = inlined_call_operand.vmem [shape: f32[8,512], index: 5, kind: output, shape index: {1}]   ;;  %s8158_s6 = inlined_call_operand.vmem [shape: f32[8,512], index: 6, kind: output, shape index: {2}]  }
   0x1   :  { %v5171_v0 = vld [vmem:[%s8152_s0 + $0x10] sm:$0xff]  ;;  %v5176_v1 = vld [vmem:[%s8152_s0] sm:$0xff]  ;;  %v5185_v2 = vld [vmem:[%s8152_s0 + $0x18] sm:$0xff]  ;;  %s5125_s7 = smov 15   ;;  %s5126_s8 = smov 1   ;;  %420 = vmatprep.mubr.f32.mxu0 %v5130_v4  ;;  %491 = vmatprep.mubr.f32.mxu1 %v5130_v4 }
   0x2   :  { %44 = vrot.lane.b32.xlu1 %v5171_v0, %s5123_s25  ;;  %40 = vrot.lane.b32.xlu0 %v5176_v1, %s5123_s25  ;;  %v5190_v3 = vld [vmem:[%s8152_s0 + $0x8] sm:$0xff]  ;;  %s5127_s9 = smov 127   ;;  %s5128_s10 = smov 113   ;;  %v346_v6 = vld [vmem:[%s8153_s2] sm:$0xff]  ;;  %v57_v8 = vshrl.u32 %v48_v7, 7  ;;  %v5257_v11 = vand.u32 127, %v48_v7 }
   0x3   :  { %s5129_s11 = smov 112   ;;  %5109 = vset.pattern.permute.xlu0 %v5131_v5  ;;  %5110 = vset.pattern.permute.xlu1 %v5131_v5  ;;  %s5132_s12 = smov 111   ;;  %v24_v13 = vld [vmem:[%s8154_s3] ss:$8 sm:$0xf] }
   0x4   :  { %v5259_v12 = vsub.s32 1, %v57_v8  ;;  %v4554_v14 = vld [vmem:[%s8154_s3 + $0x1] ss:$8 sm:$0xf]  ;;  %vm50_vm0 = vcmp.lt.s32.totalorder %v5257_v11, 17  ;;  %v5268_v17 = vsub.s32 0, %v57_v8 }
   0x5   :  { %v5270_v18 = vsub.s32 3, %v57_v8  ;;  %v5272_v19 = vsub.s32 2, %v57_v8  ;;  %vm88_vm1 = vcmp.lt.s32.totalorder %v5257_v11, 16  ;;  %v4555_v54 = vld [vmem:[%s8154_s3 + $0x2] ss:$8 sm:$0xf] }
   0x6   :  { %46 = vrot.lane.b32.xlu1 %v5185_v2, %s5123_s25  ;;  %42 = vrot.lane.b32.xlu0 %v5190_v3, %s5123_s25  ;;  %v5276_v20 = vrot.slane %v24_v13, %v5259_v12  ;;  %v5279_v21 = vrot.slane %v4554_v14, %v5259_v12  ;;  %v5284_v25 = vrot.slane %v24_v13, %v5268_v17  ;;  %v4556_v55 = vld [vmem:[%s8154_s3 + $0x3] ss:$8 sm:$0xf]  ;;  %vm126_vm2 = vcmp.lt.s32.totalorder %v5257_v11, 15 }
   0x7   :  { %v5287_v26 = vrot.slane %v4554_v14, %v5268_v17  ;;  %v5290_v27 = vrot.slane %v24_v13, %v5270_v18  ;;  %v5297_v30 = vrot.slane %v4554_v14, %v5270_v18  ;;  %v5300_v31 = vrot.slane %v24_v13, %v5272_v19 }
   0x8   :  { %v5307_v35 = vrot.slane %v4554_v14, %v5272_v19  ;;  %vm164_vm3 = vcmp.lt.s32.totalorder %v5257_v11, 1  ;;  %v5332_v58 = vrot.slane %v4555_v54, %v5259_v12  ;;  %v5335_v59 = vrot.slane %v4556_v55, %v5259_v12 }
   0x9   :  { %v5340_v61 = vrot.slane %v4555_v54, %v5268_v17  ;;  %v5343_v62 = vrot.slane %v4555_v54, %v5272_v19  ;;  %v5346_v63 = vrot.slane %v4555_v54, %v5270_v18  ;;  %vm202_vm4 = vcmp.lt.s32.totalorder %v5257_v11, 127 }
   0xa   :  { %82 = vrot.lane.b32.xlu1 %v5190_v3, %s5124_s30  ;;  %80 = vrot.lane.b32.xlu0 %v5176_v1, %s5124_s30  ;;  %vm278_vm5 = vcmp.lt.s32.totalorder %v5257_v11, 112  ;;  %vm240_vm6 = vcmp.lt.s32.totalorder %v5257_v11, 113  ;;  %vm316_vm7 = vcmp.lt.s32.totalorder %v5257_v11, 111 }
   0xe   :  { %86 = vrot.lane.b32.xlu1 %v5185_v2, %s5124_s30  ;;  %84 = vrot.lane.b32.xlu0 %v5171_v0, %s5124_s30 }
  0x12   :  { %120 = vrot.lane.b32.xlu1 %v5190_v3, %s5125_s7  ;;  %118 = vrot.lane.b32.xlu0 %v5176_v1, %s5125_s7 }
  0x16   :  { %124 = vrot.lane.b32.xlu1 %v5185_v2, %s5125_s7  ;;  %122 = vrot.lane.b32.xlu0 %v5171_v0, %s5125_s7 }
  0x1a   :  { %158 = vrot.lane.b32.xlu1 %v5190_v3, %s5126_s8  ;;  %156 = vrot.lane.b32.xlu0 %v5176_v1, %s5126_s8 }
  0x1e   :  { %162 = vrot.lane.b32.xlu1 %v5185_v2, %s5126_s8  ;;  %160 = vrot.lane.b32.xlu0 %v5171_v0, %s5126_s8 }
  0x22   :  { %196 = vrot.lane.b32.xlu1 %v5190_v3, %s5127_s9  ;;  %194 = vrot.lane.b32.xlu0 %v5176_v1, %s5127_s9 }
  0x26   :  { %200 = vrot.lane.b32.xlu1 %v5185_v2, %s5127_s9  ;;  %198 = vrot.lane.b32.xlu0 %v5171_v0, %s5127_s9 }
  0x2a   :  { %234 = vrot.lane.b32.xlu1 %v5190_v3, %s5128_s10  ;;  %232 = vrot.lane.b32.xlu0 %v5176_v1, %s5128_s10 }
  0x2e   :  { %238 = vrot.lane.b32.xlu1 %v5185_v2, %s5128_s10  ;;  %236 = vrot.lane.b32.xlu0 %v5171_v0, %s5128_s10 }
  0x32   :  { %272 = vrot.lane.b32.xlu1 %v5190_v3, %s5129_s11  ;;  %270 = vrot.lane.b32.xlu0 %v5176_v1, %s5129_s11 }
  0x36   :  { %276 = vrot.lane.b32.xlu1 %v5185_v2, %s5129_s11  ;;  %274 = vrot.lane.b32.xlu0 %v5171_v0, %s5129_s11 }
  0x3a   :  { %310 = vrot.lane.b32.xlu1 %v5190_v3, %s5132_s12  ;;  %308 = vrot.lane.b32.xlu0 %v5176_v1, %s5132_s12 }
  0x3e   :  { %314 = vrot.lane.b32.xlu1 %v5185_v2, %s5132_s12  ;;  %312 = vrot.lane.b32.xlu0 %v5171_v0, %s5132_s12 }
  0x42   :  { %349 = vperm.xlu0 %5109, %v346_v6  }
  0x74   :  { %v45_v9 = vpop.permute.xlu1 %44  ;;  %v41_v10 = vpop.permute.xlu0 %40 }
  0x78   :  { %v47_v15 = vpop.permute.xlu1 %46  ;;  %v43_v16 = vpop.permute.xlu0 %42 }
  0x79   :  { %v53_v22 = vsel %vm50_vm0, %v41_v10, %v43_v16  ;;  %v54_v28 = vsel %vm50_vm0, %v47_v15, %v41_v10  ;;  %v51_v34 = vsel %vm50_vm0, %v45_v9, %v47_v15  ;;  %v52_v36 = vsel %vm50_vm0, %v43_v16, %v45_v9 }
  0x7a   :  { %v77_v32 = vmul.f32 %v5276_v20, %v53_v22  ;;  %v76_v40 = vmul.f32 %v5284_v25, %v54_v28  ;;  %v79_v43 = vmul.f32 %v5290_v27, %v51_v34  ;;  %v78_v47 = vmul.f32 %v5300_v31, %v52_v36 }
  0x7b   :  { %v5353_v9 = vrot.slane %v4556_v55, %v5268_v17  ;;  %v5356_v10 = vrot.slane %v4556_v55, %v5272_v19  ;;  %v5363_v16 = vrot.slane %v4556_v55, %v5270_v18 }
  0x7c   :  { %v83_v23 = vpop.permute.xlu1 %82  ;;  %v81_v24 = vpop.permute.xlu0 %80 }
  0x7d   :  { %v91_v29 = vsel %vm88_vm1, %v81_v24, %v83_v23 }
  0x7e   :  { %v115_v33 = vmul.f32 %v5279_v21, %v91_v29 }
  0x80   :  { %v87_v37 = vpop.permute.xlu1 %86  ;;  %v85_v38 = vpop.permute.xlu0 %84  ;;  %v4619_v39 = vpack.c.bf16 %v115_v33, %v77_v32 }
  0x81   :  { %v92_v41 = vsel %vm88_vm1, %v87_v37, %v81_v24  ;;  %v90_v42 = vsel %vm88_vm1, %v83_v23, %v85_v38  ;;  %v89_v44 = vsel %vm88_vm1, %v85_v38, %v87_v37 }
  0x82   :  { %4620 = vmatprep.subr.bf16.mxu0 %v4619_v39  ;;  %v114_v45 = vmul.f32 %v5287_v26, %v92_v41  ;;  %v117_v46 = vmul.f32 %v5297_v30, %v89_v44  ;;  %v116_v48 = vmul.f32 %v5307_v35, %v90_v42  ;;  %v4557_v41 = vld [vmem:[%s8154_s3 + $0x5] ss:$8 sm:$0xf] }
  0x84   :  { %v121_v49 = vpop.permute.xlu1 %120  ;;  %v119_v50 = vpop.permute.xlu0 %118  ;;  %v4621_v51 = vpack.c.bf16 %v114_v45, %v76_v40  ;;  %v4635_v52 = vpack.c.bf16 %v117_v46, %v79_v43  ;;  %v4637_v53 = vpack.c.bf16 %v116_v48, %v78_v47  ;;  %v5384_v47 = vrot.slane %v4557_v41, %v5268_v17 }
  0x85   :  { %v129_v60 = vsel %vm126_vm2, %v119_v50, %v121_v49  ;;  %v5387_v48 = vrot.slane %v4557_v41, %v5270_v18 }
  0x86   :  { %4622 = vmatpush1.bf16.msra.mxu0 %v4621_v51  ;;  %4636 = vmatprep.subr.bf16.mxu1 %v4635_v52  ;;  %v153_v13 = vmul.f32 %v5332_v58, %v129_v60  ;;  %v5395_v51 = vrot.slane %v4557_v41, %v5272_v19 }
  0x87   :  { %4638 = vmatpush1.bf16.msra.mxu1 %v4637_v53 }
  0x88   :  { %v125_v56 = vpop.permute.xlu1 %124  ;;  %v123_v57 = vpop.permute.xlu0 %122 }
  0x89   :  { %v130_v7 = vsel %vm126_vm2, %v125_v56, %v119_v50  ;;  %v128_v14 = vsel %vm126_vm2, %v121_v49, %v123_v57  ;;  %v127_v22 = vsel %vm126_vm2, %v123_v57, %v125_v56  ;;  %v5392_v50 = vrot.slane %v4557_v41, %v5259_v12 }
  0x8a   :  { %v152_v23 = vmul.f32 %v5340_v61, %v130_v7  ;;  %v154_v32 = vmul.f32 %v5343_v62, %v128_v14  ;;  %v155_v37 = vmul.f32 %v5346_v63, %v127_v22 }
  0x8c   :  { %v159_v5 = vpop.permute.xlu1 %158  ;;  %v157_v6 = vpop.permute.xlu0 %156 }
  0x8d   :  { %v167_v8 = vsel %vm164_vm3, %v157_v6, %v159_v5 }
  0x8e   :  { %v191_v15 = vmul.f32 %v5335_v59, %v167_v8 }
  0x90   :  { %v163_v24 = vpop.permute.xlu1 %162  ;;  %v161_v28 = vpop.permute.xlu0 %160  ;;  %v4623_v29 = vpack.c.bf16 %v191_v15, %v153_v13 }
  0x91   :  { %v168_v33 = vsel %vm164_vm3, %v163_v24, %v157_v6  ;;  %v165_v34 = vsel %vm164_vm3, %v161_v28, %v163_v24  ;;  %v166_v36 = vsel %vm164_vm3, %v159_v5, %v161_v28  ;;  %v4559_v28 = vld [vmem:[%s8154_s3 + $0x7] ss:$8 sm:$0xf] }
  0x92   :  { %v190_v38 = vmul.f32 %v5353_v9, %v168_v33  ;;  %v192_v39 = vmul.f32 %v5356_v10, %v166_v36  ;;  %v193_v40 = vmul.f32 %v5363_v16, %v165_v34  ;;  %4624 = vmatprep.subr.bf16.mxu0 %v4623_v29  ;;  %v4558_v29 = vld [vmem:[%s8154_s3 + $0x6] ss:$8 sm:$0xf] }
  0x93   :  { %v5423_v33 = vrot.slane %v4558_v29, %v5259_v12 }
  0x94   :  { %v197_v42 = vpop.permute.xlu1 %196  ;;  %v195_v43 = vpop.permute.xlu0 %194  ;;  %v4625_v44 = vpack.c.bf16 %v190_v38, %v152_v23  ;;  %v4639_v45 = vpack.c.bf16 %v193_v40, %v155_v37  ;;  %v4641_v46 = vpack.c.bf16 %v192_v39, %v154_v32  ;;  %v5420_v32 = vrot.slane %v4558_v29, %v5270_v18 }
  0x95   :  { %v205_v49 = vsel %vm202_vm4, %v195_v43, %v197_v42  ;;  %v5428_v38 = vrot.slane %v4558_v29, %v5272_v19  ;;  %v5433_v40 = vrot.slane %v4559_v28, %v5268_v17 }
  0x96   :  { %4626 = vmatpush1.bf16.msra.mxu0 %v4625_v44  ;;  %4640 = vmatprep.subr.bf16.mxu1 %v4639_v45  ;;  %v228_v54 = vmul.f32 %v5384_v47, %v205_v49  ;;  %v5444_v44 = vrot.slane %v4559_v28, %v5272_v19  ;;  %v5447_v45 = vrot.slane %v4558_v29, %v5268_v17  ;;  %v4560_v29 = vld [vmem:[%s8154_s3 + $0x20] ss:$8 sm:$0xf] }
  0x97   :  { %4642 = vmatpush1.bf16.msra.mxu1 %v4641_v46 }
  0x98   :  { %v201_v52 = vpop.permute.xlu1 %200  ;;  %v199_v53 = vpop.permute.xlu0 %198  ;;  %v4629_v22 = vpack.c.bf16 %v228_v54, %v5176_v1 }
  0x99   :  { %v206_v55 = vsel %vm202_vm4, %v201_v52, %v195_v43  ;;  %v203_v56 = vsel %vm202_vm4, %v199_v53, %v201_v52  ;;  %v204_v57 = vsel %vm202_vm4, %v197_v42, %v199_v53  ;;  %v5438_v42 = vrot.slane %v4559_v28, %v5270_v18 }
  0x9a   :  { %v231_v60 = vmul.f32 %v5387_v48, %v206_v55  ;;  %v229_v5 = vmul.f32 %v5392_v50, %v204_v57  ;;  %v230_v6 = vmul.f32 %v5395_v51, %v203_v56  ;;  %v5441_v43 = vrot.slane %v4559_v28, %v5259_v12 }
  0x9c   :  { %v235_v7 = vpop.permute.xlu1 %234  ;;  %v233_v8 = vpop.permute.xlu0 %232  ;;  %v4627_v13 = vpack.c.bf16 %v229_v5, %v5190_v3  ;;  %v4643_v14 = vpack.c.bf16 %v231_v60, %v5185_v2  ;;  %v4645_v15 = vpack.c.bf16 %v230_v6, %v5171_v0 }
  0x9d   :  { %v243_v49 = vsel %vm240_vm6, %v233_v8, %v235_v7 }
  0x9e   :  { %4628 = vmatprep.subr.bf16.mxu0 %v4627_v13  ;;  %4644 = vmatprep.subr.bf16.mxu1 %v4643_v14  ;;  %v266_v14 = vmul.f32 %v5447_v45, %v243_v49 }
  0x9f   :  { %4630 = vmatpush1.bf16.msra.mxu0 %v4629_v22  ;;  %4646 = vmatpush1.bf16.msra.mxu1 %v4645_v15 }
  0xa0   :  { %v239_v23 = vpop.permute.xlu1 %238  ;;  %v237_v24 = vpop.permute.xlu0 %236 }
  0xa1   :  { %v244_v37 = vsel %vm240_vm6, %v239_v23, %v233_v8  ;;  %v242_v39 = vsel %vm240_vm6, %v235_v7, %v237_v24  ;;  %v241_v46 = vsel %vm240_vm6, %v237_v24, %v239_v23 }
  0xa2   :  { %v269_v52 = vmul.f32 %v5420_v32, %v244_v37  ;;  %v267_v53 = vmul.f32 %v5423_v33, %v242_v39  ;;  %v268_v6 = vmul.f32 %v5428_v38, %v241_v46  ;;  %v5475_v37 = vrot.slane %v4560_v29, %v5270_v18 }
  0xa3   :  { %v5478_v39 = vrot.slane %v4560_v29, %v5272_v19 }
  0xa4   :  { %v273_v34 = vpop.permute.xlu1 %272  ;;  %v271_v36 = vpop.permute.xlu0 %270 }
  0xa5   :  { %v281_v41 = vsel %vm278_vm5, %v271_v36, %v273_v34 }
  0xa6   :  { %v304_v56 = vmul.f32 %v5433_v40, %v281_v41  ;;  %v5481_v41 = vrot.slane %v4560_v29, %v5268_v17 }
  0xa8   :  { %v277_v54 = vpop.permute.xlu1 %276  ;;  %v275_v55 = vpop.permute.xlu0 %274 }
  0xa9   :  { %v282_v57 = vsel %vm278_vm5, %v277_v54, %v271_v36  ;;  %v279_v60 = vsel %vm278_vm5, %v275_v55, %v277_v54  ;;  %v280_v5 = vsel %vm278_vm5, %v273_v34, %v275_v55  ;;  %v4633_v34 = vpack.c.bf16 %v304_v56, %v266_v14  ;;  %v39_v56 = vld [vmem:[%s8155_s1] sm:$0xff] }
  0xaa   :  { %v307_v7 = vmul.f32 %v5438_v42, %v282_v57  ;;  %v305_v8 = vmul.f32 %v5441_v43, %v280_v5  ;;  %v306_v13 = vmul.f32 %v5444_v44, %v279_v60  ;;  %v5472_v36 = vrot.slane %v4560_v29, %v5259_v12  ;;  %v4564_v29 = vld [vmem:[%s8153_s2 + $0x8] sm:$0xff] }
  0xac   :  { %v311_v15 = vpop.permute.xlu1 %310  ;;  %v309_v22 = vpop.permute.xlu0 %308  ;;  %v4631_v23 = vpack.c.bf16 %v305_v8, %v267_v53  ;;  %v4647_v24 = vpack.c.bf16 %v307_v7, %v269_v52  ;;  %v4649_v28 = vpack.c.bf16 %v306_v13, %v268_v6 }
  0xad   :  { %v319_v46 = vsel %vm316_vm7, %v309_v22, %v311_v15 }
  0xae   :  { %4632 = vmatprep.subr.bf16.mxu0 %v4631_v23  ;;  %4648 = vmatprep.subr.bf16.mxu1 %v4647_v24  ;;  %v342_v55 = vmul.f32 %v5481_v41, %v319_v46 }
  0xaf   :  { %4634 = vmatpush1.bf16.msra.mxu0 %v4633_v34  ;;  %4650 = vmatpush1.bf16.msra.mxu1 %v4649_v28 }
  0xb0   :  { %v315_v49 = vpop.permute.xlu1 %314  ;;  %v313_v52 = vpop.permute.xlu0 %312 }
  0xb1   :  { %v320_v12 = vsel %vm316_vm7, %v315_v49, %v309_v22  ;;  %v317_v18 = vsel %vm316_vm7, %v313_v52, %v315_v49  ;;  %v318_v19 = vsel %vm316_vm7, %v311_v15, %v313_v52 }
  0xb2   :  { %v343_v53 = vmul.f32 %v5472_v36, %v318_v19  ;;  %v345_v54 = vmul.f32 %v5475_v37, %v320_v12  ;;  %v344_v17 = vmul.f32 %v5478_v39, %v317_v18 }
  0xb4   :  { %372 = vmatprep.subr.mxu0 %v343_v53  ;;  %443 = vmatprep.subr.mxu1 %v345_v54 }
  0xb5   :  { %373 = vmatpush1.msra.mxu0 %v342_v55  ;;  %444 = vmatpush1.msra.mxu1 %v344_v17 }
  0xb6   :  { %4561 = vmatmul.mubr.msk.f32.vlgmr.msra.gmra.mrb[0].mxu0 %vm352_vm8, %v39_v56  ;;  %4562 = vmatmul.mubr.msk.f32.vlgmr.msra.gmra.mrb[0].mxu1 %vm352_vm8, %v39_v56 }
  0xb7   :  { %706 = vmatprep.mubr.f32.mxu0 %v5130_v4  ;;  %777 = vmatprep.mubr.f32.mxu1 %v5130_v4 }
  0xc1   :  { %v350_v57 = vpop.permute.xlu0 %349 }
 0x189   :  { %v422_v60 = vpop.f32.mrb[0].mxu0  ;;  %v493_v5 = vpop.f32.mrb[0].mxu1 }
 0x18a   :  { %v423_v6 = vadd.f32 %v422_v60, %v350_v57  ;;  %v494_v7 = vadd.f32 %v493_v5, %v350_v57  ;;  %v424_v8 = vpop.f32.mrb[1].mxu0  ;;  %v495_v13 = vpop.f32.mrb[1].mxu1 }
 0x18b   :  { %v425_v22 = vadd.f32 %v424_v8, %v350_v57  ;;  %v496_v24 = vadd.f32 %v495_v13, %v350_v57 }
 0x18c   :  { %v5502_v14 = vmax.f32 %v423_v6, 0.0  ;;  %v5504_v15 = vmax.f32 %v494_v7, 0.0 }
 0x18d   :  { %v5510_v23 = vmax.f32 %v425_v22, 0.0  ;;  %v5516_v28 = vmax.f32 %v496_v24, 0.0 }
 0x18e   :  { %508 = vrot.lane.b32.xlu0 %v5504_v15, %s5123_s25  ;;  %504 = vrot.lane.b32.xlu1 %v5502_v14, %s5123_s25 }
 0x192   :  { %520 = vrot.lane.b32.xlu0 %v5502_v14, %s5124_s30  ;;  %506 = vrot.lane.b32.xlu1 %v5510_v23, %s5123_s25 }
 0x196   :  { %524 = vrot.lane.b32.xlu0 %v5504_v15, %s5124_s30  ;;  %510 = vrot.lane.b32.xlu1 %v5516_v28, %s5123_s25 }
 0x19a   :  { %536 = vrot.lane.b32.xlu0 %v5502_v14, %s5125_s7  ;;  %522 = vrot.lane.b32.xlu1 %v5510_v23, %s5124_s30 }
 0x19e   :  { %540 = vrot.lane.b32.xlu0 %v5504_v15, %s5125_s7  ;;  %526 = vrot.lane.b32.xlu1 %v5516_v28, %s5124_s30 }
 0x1a2   :  { %552 = vrot.lane.b32.xlu0 %v5502_v14, %s5126_s8  ;;  %538 = vrot.lane.b32.xlu1 %v5510_v23, %s5125_s7 }
 0x1a6   :  { %556 = vrot.lane.b32.xlu0 %v5504_v15, %s5126_s8  ;;  %542 = vrot.lane.b32.xlu1 %v5516_v28, %s5125_s7 }
 0x1aa   :  { %568 = vrot.lane.b32.xlu0 %v5502_v14, %s5127_s9  ;;  %554 = vrot.lane.b32.xlu1 %v5510_v23, %s5126_s8 }
 0x1ae   :  { %572 = vrot.lane.b32.xlu0 %v5504_v15, %s5127_s9  ;;  %558 = vrot.lane.b32.xlu1 %v5516_v28, %s5126_s8 }
 0x1b2   :  { %584 = vrot.lane.b32.xlu0 %v5502_v14, %s5128_s10  ;;  %570 = vrot.lane.b32.xlu1 %v5510_v23, %s5127_s9 }
 0x1b6   :  { %588 = vrot.lane.b32.xlu0 %v5504_v15, %s5128_s10  ;;  %574 = vrot.lane.b32.xlu1 %v5516_v28, %s5127_s9 }
 0x1ba   :  { %600 = vrot.lane.b32.xlu0 %v5502_v14, %s5129_s11  ;;  %586 = vrot.lane.b32.xlu1 %v5510_v23, %s5128_s10 }
 0x1be   :  { %604 = vrot.lane.b32.xlu0 %v5504_v15, %s5129_s11  ;;  %590 = vrot.lane.b32.xlu1 %v5516_v28, %s5128_s10 }
 0x1c2   :  { %616 = vrot.lane.b32.xlu0 %v5502_v14, %s5132_s12  ;;  %602 = vrot.lane.b32.xlu1 %v5510_v23, %s5129_s11 }
 0x1c6   :  { %620 = vrot.lane.b32.xlu0 %v5504_v15, %s5132_s12  ;;  %606 = vrot.lane.b32.xlu1 %v5516_v28, %s5129_s11 }
 0x1ca   :  { %636 = vperm.xlu0 %5109, %v4564_v29   ;;  %618 = vrot.lane.b32.xlu1 %v5510_v23, %s5132_s12 }
 0x1ce   :  { %622 = vrot.lane.b32.xlu1 %v5516_v28, %s5132_s12 }
 0x200   :  { %v509_v34 = vpop.permute.xlu0 %508  ;;  %v505_v46 = vpop.permute.xlu1 %504 }
 0x204   :  { %v521_v49 = vpop.permute.xlu0 %520  ;;  %v507_v52 = vpop.permute.xlu1 %506 }
 0x205   :  { %v514_v19 = vsel %vm50_vm0, %v505_v46, %v507_v52  ;;  %v513_v6 = vsel %vm50_vm0, %v507_v52, %v509_v34 }
 0x206   :  { %v517_v55 = vmul.f32 %v514_v19, %v5276_v20 }
 0x208   :  { %v525_v12 = vpop.permute.xlu0 %524  ;;  %v511_v18 = vpop.permute.xlu1 %510 }
 0x209   :  { %v512_v60 = vsel %vm50_vm0, %v509_v34, %v511_v18  ;;  %v515_v5 = vsel %vm50_vm0, %v511_v18, %v505_v46  ;;  %v518_v34 = vmul.f32 %v513_v6, %v5300_v31 }
 0x20a   :  { %v516_v19 = vmul.f32 %v515_v5, %v5284_v25 }
 0x20c   :  { %v537_v53 = vpop.permute.xlu0 %536  ;;  %v523_v54 = vpop.permute.xlu1 %522 }
 0x20d   :  { %v530_v17 = vsel %vm88_vm1, %v521_v49, %v523_v54  ;;  %v529_v56 = vsel %vm88_vm1, %v523_v54, %v525_v12  ;;  %v519_v54 = vmul.f32 %v512_v60, %v5290_v27 }
 0x20e   :  { %v533_v57 = vmul.f32 %v530_v17, %v5279_v21  ;;  %v534_v22 = vmul.f32 %v529_v56, %v5307_v35 }
 0x210   :  { %v541_v7 = vpop.permute.xlu0 %540  ;;  %v527_v8 = vpop.permute.xlu1 %526  ;;  %v4651_v13 = vpack.c.bf16 %v533_v57, %v517_v55  ;;  %v4669_v57 = vpack.c.bf16 %v534_v22, %v518_v34 }
 0x211   :  { %v528_v24 = vsel %vm88_vm1, %v525_v12, %v527_v8  ;;  %v531_v29 = vsel %vm88_vm1, %v527_v8, %v521_v49 }
 0x212   :  { %v532_v46 = vmul.f32 %v531_v29, %v5287_v26  ;;  %v535_v18 = vmul.f32 %v528_v24, %v5297_v30  ;;  %4652 = vmatprep.subr.bf16.mxu0 %v4651_v13 }
 0x214   :  { %v4653_v52 = vpack.c.bf16 %v532_v46, %v516_v19  ;;  %v553_v17 = vpop.permute.xlu0 %552  ;;  %v539_v55 = vpop.permute.xlu1 %538  ;;  %v4667_v56 = vpack.c.bf16 %v535_v18, %v519_v54 }
 0x215   :  { %v546_v60 = vsel %vm126_vm2, %v537_v53, %v539_v55  ;;  %v545_v54 = vsel %vm126_vm2, %v539_v55, %v541_v7 }
 0x216   :  { %4654 = vmatpush1.bf16.msra.mxu0 %v4653_v52  ;;  %4668 = vmatprep.subr.bf16.mxu1 %v4667_v56  ;;  %v549_v6 = vmul.f32 %v546_v60, %v5332_v58 }
 0x217   :  { %4670 = vmatpush1.bf16.msra.mxu1 %v4669_v57 }
 0x218   :  { %v557_v49 = vpop.permute.xlu0 %556  ;;  %v543_v12 = vpop.permute.xlu1 %542 }
 0x219   :  { %v544_v29 = vsel %vm126_vm2, %v541_v7, %v543_v12  ;;  %v547_v19 = vsel %vm126_vm2, %v543_v12, %v537_v53  ;;  %v550_v7 = vmul.f32 %v545_v54, %v5343_v62 }
 0x21a   :  { %v548_v60 = vmul.f32 %v547_v19, %v5340_v61 }
 0x21c   :  { %v569_v5 = vpop.permute.xlu0 %568  ;;  %v555_v8 = vpop.permute.xlu1 %554 }
 0x21d   :  { %v562_v13 = vsel %vm164_vm3, %v553_v17, %v555_v8  ;;  %v561_v24 = vsel %vm164_vm3, %v555_v8, %v557_v49  ;;  %v551_v8 = vmul.f32 %v544_v29, %v5346_v63 }
 0x21e   :  { %v565_v22 = vmul.f32 %v562_v13, %v5335_v59  ;;  %v566_v52 = vmul.f32 %v561_v24, %v5356_v10 }
 0x220   :  { %v573_v46 = vpop.permute.xlu0 %572  ;;  %v559_v18 = vpop.permute.xlu1 %558  ;;  %v4655_v34 = vpack.c.bf16 %v565_v22, %v549_v6  ;;  %v4673_v22 = vpack.c.bf16 %v566_v52, %v550_v7 }
 0x221   :  { %v560_v56 = vsel %vm164_vm3, %v557_v49, %v559_v18  ;;  %v563_v57 = vsel %vm164_vm3, %v559_v18, %v553_v17 }
 0x222   :  { %v564_v53 = vmul.f32 %v563_v57, %v5353_v9  ;;  %v567_v12 = vmul.f32 %v560_v56, %v5363_v16  ;;  %4656 = vmatprep.subr.bf16.mxu0 %v4655_v34 }
 0x224   :  { %v4657_v55 = vpack.c.bf16 %v564_v53, %v548_v60  ;;  %v585_v13 = vpop.permute.xlu0 %584  ;;  %v571_v6 = vpop.permute.xlu1 %570  ;;  %v4671_v24 = vpack.c.bf16 %v567_v12, %v551_v8 }
 0x225   :  { %v577_v49 = vsel %vm202_vm4, %v571_v6, %v573_v46  ;;  %v578_v17 = vsel %vm202_vm4, %v569_v5, %v571_v6 }
 0x226   :  { %v580_v29 = vmul.f32 %v578_v17, %v5384_v47  ;;  %v581_v19 = vmul.f32 %v577_v49, %v5392_v50  ;;  %4658 = vmatpush1.bf16.msra.mxu0 %v4657_v55  ;;  %4672 = vmatprep.subr.bf16.mxu1 %v4671_v24 }
 0x227   :  { %4674 = vmatpush1.bf16.msra.mxu1 %v4673_v22 }
 0x228   :  { %v4661_v54 = vpack.c.bf16 %v580_v29, %v5502_v14  ;;  %v589_v18 = vpop.permute.xlu0 %588  ;;  %v575_v34 = vpop.permute.xlu1 %574  ;;  %v4659_v56 = vpack.c.bf16 %v581_v19, %v5510_v23 }
 0x229   :  { %v576_v52 = vsel %vm202_vm4, %v573_v46, %v575_v34  ;;  %v579_v57 = vsel %vm202_vm4, %v575_v34, %v569_v5 }
 0x22a   :  { %v582_v60 = vmul.f32 %v576_v52, %v5395_v51  ;;  %v583_v8 = vmul.f32 %v579_v57, %v5387_v48  ;;  %4660 = vmatprep.subr.bf16.mxu0 %v4659_v56 }
 0x22b   :  { %4662 = vmatpush1.bf16.msra.mxu0 %v4661_v54 }
 0x22c   :  { %v4677_v53 = vpack.c.bf16 %v582_v60, %v5504_v15  ;;  %v601_v12 = vpop.permute.xlu0 %600  ;;  %v587_v14 = vpop.permute.xlu1 %586  ;;  %v4675_v7 = vpack.c.bf16 %v583_v8, %v5516_v28 }
 0x22d   :  { %v593_v46 = vsel %vm240_vm6, %v587_v14, %v589_v18  ;;  %v594_v5 = vsel %vm240_vm6, %v585_v13, %v587_v14 }
 0x22e   :  { %4676 = vmatprep.subr.bf16.mxu1 %v4675_v7  ;;  %v596_v22 = vmul.f32 %v594_v5, %v5447_v45  ;;  %v597_v28 = vmul.f32 %v593_v46, %v5423_v33 }
 0x22f   :  { %4678 = vmatpush1.bf16.msra.mxu1 %v4677_v53 }
 0x230   :  { %v605_v23 = vpop.permute.xlu0 %604  ;;  %v591_v55 = vpop.permute.xlu1 %590 }
 0x231   :  { %v592_v19 = vsel %vm240_vm6, %v589_v18, %v591_v55  ;;  %v595_v54 = vsel %vm240_vm6, %v591_v55, %v585_v13 }
 0x232   :  { %v598_v8 = vmul.f32 %v592_v19, %v5428_v38  ;;  %v599_v53 = vmul.f32 %v595_v54, %v5420_v32 }
 0x234   :  { %v603_v6 = vpop.permute.xlu1 %602  ;;  %v617_v49 = vpop.permute.xlu0 %616 }
 0x235   :  { %v609_v24 = vsel %vm278_vm5, %v603_v6, %v605_v23  ;;  %v610_v15 = vsel %vm278_vm5, %v601_v12, %v603_v6 }
 0x236   :  { %v612_v17 = vmul.f32 %v610_v15, %v5433_v40  ;;  %v613_v29 = vmul.f32 %v609_v24, %v5441_v43  ;;  %v4563_v24 = vld [vmem:[%s8155_s1 + $0x8] sm:$0xff] }
 0x238   :  { %v4665_v34 = vpack.c.bf16 %v612_v17, %v596_v22  ;;  %v607_v56 = vpop.permute.xlu1 %606  ;;  %v4663_v52 = vpack.c.bf16 %v613_v29, %v597_v28  ;;  %v621_v13 = vpop.permute.xlu0 %620 }
 0x239   :  { %v608_v57 = vsel %vm278_vm5, %v605_v23, %v607_v56  ;;  %v611_v60 = vsel %vm278_vm5, %v607_v56, %v601_v12 }
 0x23a   :  { %v614_v14 = vmul.f32 %v608_v57, %v5444_v44  ;;  %v615_v18 = vmul.f32 %v611_v60, %v5438_v42  ;;  %4664 = vmatprep.subr.bf16.mxu0 %v4663_v52 }
 0x23b   :  { %4666 = vmatpush1.bf16.msra.mxu0 %v4665_v34 }
 0x23c   :  { %v4681_v7 = vpack.c.bf16 %v614_v14, %v598_v8  ;;  %v619_v55 = vpop.permute.xlu1 %618  ;;  %v4679_v46 = vpack.c.bf16 %v615_v18, %v599_v53 }
 0x23d   :  { %v625_v23 = vsel %vm316_vm7, %v619_v55, %v621_v13  ;;  %v626_v12 = vsel %vm316_vm7, %v617_v49, %v619_v55 }
 0x23e   :  { %v628_v5 = vmul.f32 %v626_v12, %v5481_v41  ;;  %4680 = vmatprep.subr.bf16.mxu1 %v4679_v46  ;;  %v629_v6 = vmul.f32 %v625_v23, %v5472_v36 }
 0x23f   :  { %4682 = vmatpush1.bf16.msra.mxu1 %v4681_v7 }
 0x240   :  { %658 = vmatprep.subr.mxu0 %v629_v6  ;;  %v623_v15 = vpop.permute.xlu1 %622 }
 0x241   :  { %v624_v22 = vsel %vm316_vm7, %v621_v13, %v623_v15  ;;  %v627_v28 = vsel %vm316_vm7, %v623_v15, %v617_v49  ;;  %659 = vmatpush1.msra.mxu0 %v628_v5 }
 0x242   :  { %v630_v17 = vmul.f32 %v624_v22, %v5478_v39  ;;  %4565 = vmatmul.mubr.msk.f32.vlgmr.msra.gmra.mrb[2].mxu0 %vm352_vm8, %v4563_v24  ;;  %v631_v29 = vmul.f32 %v627_v28, %v5475_v37 }
 0x243   :  { %996 = vmatprep.mubr.f32.mxu0 %v5130_v4 }
 0x244   :  { %729 = vmatprep.subr.mxu1 %v631_v29 }
 0x245   :  { %730 = vmatpush1.msra.mxu1 %v630_v17 }
 0x246   :  { %4566 = vmatmul.mubr.msk.f32.vlgmr.msra.gmra.mrb[2].mxu1 %vm352_vm8, %v4563_v24 }
 0x247   :  { %1067 = vmatprep.mubr.f32.mxu1 %v5130_v4 }
 0x249   :  { %v637_v19 = vpop.permute.xlu0 %636 }
 0x315   :  { %v708_v54 = vpop.f32.mrb[2].mxu0 }
 0x316   :  { %v709_v34 = vadd.f32 %v708_v54, %v637_v19  ;;  %v710_v56 = vpop.f32.mrb[3].mxu0 }
 0x317   :  { %v711_v49 = vadd.f32 %v710_v56, %v637_v19 }
 0x318   :  { %v784_v52 = vadd.f32 %v709_v34, %v5176_v1 }
 0x319   :  { %v785_v57 = vadd.f32 %v711_v49, %v5190_v3  ;;  %v779_v60 = vpop.f32.mrb[2].mxu1 }
 0x31a   :  { %v5686_v8 = vmax.f32 %v784_v52, 0.0  ;;  %v780_v53 = vadd.f32 %v779_v60, %v637_v19  ;;  %v781_v14 = vpop.f32.mrb[3].mxu1 }
 0x31b   :  { %v5688_v18 = vmax.f32 %v785_v57, 0.0  ;;  %v782_v13 = vadd.f32 %v781_v14, %v637_v19 }
 0x31c   :  { %v786_v7 = vadd.f32 %v780_v53, %v5171_v0  ;;  %794 = vrot.lane.b32.xlu1 %v5686_v8, %s5123_s25  ;;  %v4568_v0 = vld [vmem:[%s8153_s2 + $0x10] sm:$0xff] }
 0x31d   :  { %v787_v55 = vadd.f32 %v782_v13, %v5185_v2  ;;  %796 = vrot.lane.b32.xlu0 %v5688_v18, %s5123_s25 }
 0x31e   :  { %v5696_v1 = vmax.f32 %v786_v7, 0.0 }
 0x31f   :  { %v5698_v3 = vmax.f32 %v787_v55, 0.0 }
 0x320   :  { %798 = vrot.lane.b32.xlu1 %v5696_v1, %s5123_s25 }
 0x321   :  { %800 = vrot.lane.b32.xlu0 %v5698_v3, %s5123_s25 }
 0x324   :  { %810 = vrot.lane.b32.xlu1 %v5686_v8, %s5124_s30 }
 0x325   :  { %812 = vrot.lane.b32.xlu0 %v5688_v18, %s5124_s30 }
 0x328   :  { %814 = vrot.lane.b32.xlu1 %v5696_v1, %s5124_s30 }
 0x329   :  { %816 = vrot.lane.b32.xlu0 %v5698_v3, %s5124_s30 }
 0x32c   :  { %826 = vrot.lane.b32.xlu1 %v5686_v8, %s5125_s7 }
 0x32d   :  { %828 = vrot.lane.b32.xlu0 %v5688_v18, %s5125_s7 }
 0x330   :  { %830 = vrot.lane.b32.xlu1 %v5696_v1, %s5125_s7 }
 0x331   :  { %832 = vrot.lane.b32.xlu0 %v5698_v3, %s5125_s7 }
 0x334   :  { %842 = vrot.lane.b32.xlu1 %v5686_v8, %s5126_s8 }
 0x335   :  { %844 = vrot.lane.b32.xlu0 %v5688_v18, %s5126_s8 }
 0x338   :  { %846 = vrot.lane.b32.xlu1 %v5696_v1, %s5126_s8 }
 0x339   :  { %848 = vrot.lane.b32.xlu0 %v5698_v3, %s5126_s8 }
 0x33c   :  { %858 = vrot.lane.b32.xlu1 %v5686_v8, %s5127_s9 }
 0x33d   :  { %860 = vrot.lane.b32.xlu0 %v5688_v18, %s5127_s9 }
 0x340   :  { %862 = vrot.lane.b32.xlu1 %v5696_v1, %s5127_s9 }
 0x341   :  { %864 = vrot.lane.b32.xlu0 %v5698_v3, %s5127_s9 }
 0x344   :  { %874 = vrot.lane.b32.xlu1 %v5686_v8, %s5128_s10 }
 0x345   :  { %876 = vrot.lane.b32.xlu0 %v5688_v18, %s5128_s10 }
 0x348   :  { %878 = vrot.lane.b32.xlu1 %v5696_v1, %s5128_s10 }
 0x349   :  { %880 = vrot.lane.b32.xlu0 %v5698_v3, %s5128_s10 }
 0x34c   :  { %890 = vrot.lane.b32.xlu1 %v5686_v8, %s5129_s11 }
 0x34d   :  { %892 = vrot.lane.b32.xlu0 %v5688_v18, %s5129_s11 }
 0x350   :  { %894 = vrot.lane.b32.xlu1 %v5696_v1, %s5129_s11 }
 0x351   :  { %896 = vrot.lane.b32.xlu0 %v5698_v3, %s5129_s11 }
 0x354   :  { %906 = vrot.lane.b32.xlu1 %v5686_v8, %s5132_s12 }
 0x355   :  { %908 = vrot.lane.b32.xlu0 %v5688_v18, %s5132_s12 }
 0x358   :  { %910 = vrot.lane.b32.xlu1 %v5696_v1, %s5132_s12 }
 0x359   :  { %912 = vrot.lane.b32.xlu0 %v5698_v3, %s5132_s12 }
 0x35c   :  { %926 = vperm.xlu1 %5110, %v4568_v0  }
 0x38e   :  { %v795_v2 = vpop.permute.xlu1 %794 }
 0x38f   :  { %v797_v46 = vpop.permute.xlu0 %796 }
 0x390   :  { %v804_v5 = vsel %vm50_vm0, %v795_v2, %v797_v46 }
 0x391   :  { %v807_v22 = vmul.f32 %v804_v5, %v5276_v20 }
 0x392   :  { %v799_v23 = vpop.permute.xlu1 %798 }
 0x393   :  { %v801_v12 = vpop.permute.xlu0 %800  ;;  %v803_v54 = vsel %vm50_vm0, %v797_v46, %v799_v23 }
 0x394   :  { %v802_v17 = vsel %vm50_vm0, %v799_v23, %v801_v12  ;;  %v805_v29 = vsel %vm50_vm0, %v801_v12, %v795_v2  ;;  %v808_v55 = vmul.f32 %v803_v54, %v5300_v31 }
 0x395   :  { %v806_v53 = vmul.f32 %v805_v29, %v5284_v25  ;;  %v809_v14 = vmul.f32 %v802_v17, %v5290_v27 }
 0x396   :  { %v811_v6 = vpop.permute.xlu1 %810 }
 0x397   :  { %v813_v24 = vpop.permute.xlu0 %812 }
 0x398   :  { %v820_v15 = vsel %vm88_vm1, %v811_v6, %v813_v24 }
 0x399   :  { %v823_v28 = vmul.f32 %v820_v15, %v5279_v21 }
 0x39a   :  { %v815_v19 = vpop.permute.xlu1 %814 }
 0x39b   :  { %v819_v34 = vsel %vm88_vm1, %v813_v24, %v815_v19  ;;  %v817_v56 = vpop.permute.xlu0 %816  ;;  %v4683_v49 = vpack.c.bf16 %v823_v28, %v807_v22 }
 0x39c   :  { %v824_v52 = vmul.f32 %v819_v34, %v5307_v35  ;;  %v818_v57 = vsel %vm88_vm1, %v815_v19, %v817_v56  ;;  %v821_v60 = vsel %vm88_vm1, %v817_v56, %v811_v6 }
 0x39d   :  { %v822_v13 = vmul.f32 %v821_v60, %v5287_v26  ;;  %v825_v7 = vmul.f32 %v818_v57, %v5297_v30  ;;  %4684 = vmatprep.subr.bf16.mxu0 %v4683_v49 }
 0x39e   :  { %v827_v0 = vpop.permute.xlu1 %826  ;;  %v4701_v12 = vpack.c.bf16 %v824_v52, %v808_v55 }
 0x39f   :  { %v4685_v2 = vpack.c.bf16 %v822_v13, %v806_v53  ;;  %v829_v46 = vpop.permute.xlu0 %828  ;;  %v4699_v23 = vpack.c.bf16 %v825_v7, %v809_v14 }
 0x3a0   :  { %v836_v24 = vsel %vm126_vm2, %v827_v0, %v829_v46 }
 0x3a1   :  { %4686 = vmatpush1.bf16.msra.mxu0 %v4685_v2  ;;  %4700 = vmatprep.subr.bf16.mxu1 %v4699_v23  ;;  %v839_v17 = vmul.f32 %v836_v24, %v5332_v58 }
 0x3a2   :  { %4702 = vmatpush1.bf16.msra.mxu1 %v4701_v12  ;;  %v831_v5 = vpop.permute.xlu1 %830 }
 0x3a3   :  { %v833_v6 = vpop.permute.xlu0 %832  ;;  %v835_v56 = vsel %vm126_vm2, %v829_v46, %v831_v5 }
 0x3a4   :  { %v834_v19 = vsel %vm126_vm2, %v831_v5, %v833_v6  ;;  %v837_v54 = vsel %vm126_vm2, %v833_v6, %v827_v0  ;;  %v840_v2 = vmul.f32 %v835_v56, %v5343_v62 }
 0x3a5   :  { %v838_v13 = vmul.f32 %v837_v54, %v5340_v61  ;;  %v841_v7 = vmul.f32 %v834_v19, %v5346_v63 }
 0x3a6   :  { %v843_v15 = vpop.permute.xlu1 %842 }
 0x3a7   :  { %v845_v22 = vpop.permute.xlu0 %844 }
 0x3a8   :  { %v852_v28 = vsel %vm164_vm3, %v843_v15, %v845_v22 }
 0x3a9   :  { %v855_v29 = vmul.f32 %v852_v28, %v5335_v59 }
 0x3aa   :  { %v847_v34 = vpop.permute.xlu1 %846 }
 0x3ab   :  { %v851_v49 = vsel %vm164_vm3, %v845_v22, %v847_v34  ;;  %v849_v52 = vpop.permute.xlu0 %848  ;;  %v4687_v57 = vpack.c.bf16 %v855_v29, %v839_v17 }
 0x3ac   :  { %v856_v60 = vmul.f32 %v851_v49, %v5356_v10  ;;  %v850_v53 = vsel %vm164_vm3, %v847_v34, %v849_v52  ;;  %v853_v14 = vsel %vm164_vm3, %v849_v52, %v843_v15 }
 0x3ad   :  { %v854_v55 = vmul.f32 %v853_v14, %v5353_v9  ;;  %v857_v0 = vmul.f32 %v850_v53, %v5363_v16  ;;  %4688 = vmatprep.subr.bf16.mxu0 %v4687_v57 }
 0x3ae   :  { %v859_v46 = vpop.permute.xlu1 %858  ;;  %v4705_v6 = vpack.c.bf16 %v856_v60, %v840_v2 }
 0x3af   :  { %v4689_v23 = vpack.c.bf16 %v854_v55, %v838_v13  ;;  %v861_v12 = vpop.permute.xlu0 %860  ;;  %v4703_v5 = vpack.c.bf16 %v857_v0, %v841_v7 }
 0x3b0   :  { %v868_v24 = vsel %vm202_vm4, %v859_v46, %v861_v12 }
 0x3b1   :  { %4690 = vmatpush1.bf16.msra.mxu0 %v4689_v23  ;;  %4704 = vmatprep.subr.bf16.mxu1 %v4703_v5  ;;  %v870_v22 = vmul.f32 %v868_v24, %v5384_v47 }
 0x3b2   :  { %4706 = vmatpush1.bf16.msra.mxu1 %v4705_v6  ;;  %v863_v15 = vpop.permute.xlu1 %862 }
 0x3b3   :  { %v867_v28 = vsel %vm202_vm4, %v861_v12, %v863_v15  ;;  %v865_v17 = vpop.permute.xlu0 %864  ;;  %v4693_v57 = vpack.c.bf16 %v870_v22, %v5686_v8 }
 0x3b4   :  { %v871_v29 = vmul.f32 %v867_v28, %v5392_v50  ;;  %v866_v19 = vsel %vm202_vm4, %v863_v15, %v865_v17  ;;  %v869_v54 = vsel %vm202_vm4, %v865_v17, %v859_v46 }
 0x3b5   :  { %v872_v34 = vmul.f32 %v866_v19, %v5395_v51  ;;  %v873_v56 = vmul.f32 %v869_v54, %v5387_v48 }
 0x3b6   :  { %v875_v49 = vpop.permute.xlu1 %874  ;;  %v4691_v52 = vpack.c.bf16 %v871_v29, %v5688_v18 }
 0x3b7   :  { %v4709_v60 = vpack.c.bf16 %v872_v34, %v5696_v1  ;;  %v877_v53 = vpop.permute.xlu0 %876  ;;  %v4707_v14 = vpack.c.bf16 %v873_v56, %v5698_v3 }
 0x3b8   :  { %4692 = vmatprep.subr.bf16.mxu0 %v4691_v52  ;;  %v884_v2 = vsel %vm240_vm6, %v875_v49, %v877_v53 }
 0x3b9   :  { %4694 = vmatpush1.bf16.msra.mxu0 %v4693_v57  ;;  %4708 = vmatprep.subr.bf16.mxu1 %v4707_v14  ;;  %v886_v24 = vmul.f32 %v884_v2, %v5447_v45 }
 0x3ba   :  { %4710 = vmatpush1.bf16.msra.mxu1 %v4709_v60  ;;  %v879_v13 = vpop.permute.xlu1 %878 }
 0x3bb   :  { %v881_v7 = vpop.permute.xlu0 %880  ;;  %v883_v23 = vsel %vm240_vm6, %v877_v53, %v879_v13 }
 0x3bc   :  { %v882_v12 = vsel %vm240_vm6, %v879_v13, %v881_v7  ;;  %v885_v5 = vsel %vm240_vm6, %v881_v7, %v875_v49  ;;  %v887_v17 = vmul.f32 %v883_v23, %v5423_v33 }
 0x3bd   :  { %v888_v34 = vmul.f32 %v882_v12, %v5428_v38  ;;  %v889_v56 = vmul.f32 %v885_v5, %v5420_v32 }
 0x3be   :  { %v891_v55 = vpop.permute.xlu1 %890 }
 0x3bf   :  { %v893_v0 = vpop.permute.xlu0 %892 }
 0x3c0   :  { %v900_v46 = vsel %vm278_vm5, %v891_v55, %v893_v0 }
 0x3c1   :  { %v902_v15 = vmul.f32 %v900_v46, %v5433_v40 }
 0x3c2   :  { %v895_v6 = vpop.permute.xlu1 %894 }
 0x3c3   :  { %v899_v22 = vsel %vm278_vm5, %v893_v0, %v895_v6  ;;  %v897_v28 = vpop.permute.xlu0 %896  ;;  %v4697_v53 = vpack.c.bf16 %v902_v15, %v886_v24 }
 0x3c4   :  { %v903_v29 = vmul.f32 %v899_v22, %v5441_v43  ;;  %v898_v19 = vsel %vm278_vm5, %v895_v6, %v897_v28  ;;  %v901_v54 = vsel %vm278_vm5, %v897_v28, %v891_v55  ;;  %v4567_v22 = vld [vmem:[%s8155_s1 + $0x10] sm:$0xff] }
 0x3c5   :  { %v904_v49 = vmul.f32 %v898_v19, %v5444_v44  ;;  %v905_v52 = vmul.f32 %v901_v54, %v5438_v42 }
 0x3c6   :  { %v907_v57 = vpop.permute.xlu1 %906  ;;  %v4695_v60 = vpack.c.bf16 %v903_v29, %v887_v17 }
 0x3c7   :  { %v4713_v14 = vpack.c.bf16 %v904_v49, %v888_v34  ;;  %v909_v13 = vpop.permute.xlu0 %908  ;;  %v4711_v7 = vpack.c.bf16 %v905_v52, %v889_v56 }
 0x3c8   :  { %4696 = vmatprep.subr.bf16.mxu0 %v4695_v60  ;;  %v916_v55 = vsel %vm316_vm7, %v907_v57, %v909_v13 }
 0x3c9   :  { %4698 = vmatpush1.bf16.msra.mxu0 %v4697_v53  ;;  %4712 = vmatprep.subr.bf16.mxu1 %v4711_v7  ;;  %v918_v6 = vmul.f32 %v916_v55, %v5481_v41 }
 0x3ca   :  { %4714 = vmatpush1.bf16.msra.mxu1 %v4713_v14  ;;  %v911_v0 = vpop.permute.xlu1 %910 }
 0x3cb   :  { %v915_v2 = vsel %vm316_vm7, %v909_v13, %v911_v0  ;;  %v913_v46 = vpop.permute.xlu0 %912  ;;  %v4572_v13 = vld [vmem:[%s8153_s2 + $0x18] sm:$0xff] }
 0x3cc   :  { %v914_v23 = vsel %vm316_vm7, %v911_v0, %v913_v46  ;;  %v917_v12 = vsel %vm316_vm7, %v913_v46, %v907_v57  ;;  %v919_v5 = vmul.f32 %v915_v2, %v5472_v36 }
 0x3cd   :  { %v920_v24 = vmul.f32 %v914_v23, %v5478_v39  ;;  %v921_v15 = vmul.f32 %v917_v12, %v5475_v37 }
 0x3ce   :  { %948 = vmatprep.subr.mxu0 %v919_v5 }
 0x3cf   :  { %949 = vmatpush1.msra.mxu0 %v918_v6  ;;  %1019 = vmatprep.subr.mxu1 %v921_v15 }
 0x3d0   :  { %4569 = vmatmul.mubr.msk.f32.vlgmr.msra.gmra.mrb[4].mxu0 %vm352_vm8, %v4567_v22  ;;  %1020 = vmatpush1.msra.mxu1 %v920_v24 }
 0x3d1   :  { %4570 = vmatmul.mubr.msk.f32.vlgmr.msra.gmra.mrb[4].mxu1 %vm352_vm8, %v4567_v22  ;;  %1282 = vmatprep.mubr.f32.mxu0 %v5130_v4 }
 0x3d2   :  { %1353 = vmatprep.mubr.f32.mxu1 %v5130_v4 }
 0x3db   :  { %v927_v28 = vpop.permute.xlu1 %926 }
 0x4a3   :  { %v998_v17 = vpop.f32.mrb[4].mxu0 }
 0x4a4   :  { %v999_v29 = vadd.f32 %v998_v17, %v927_v28  ;;  %v1000_v19 = vpop.f32.mrb[5].mxu0  ;;  %v1069_v54 = vpop.f32.mrb[4].mxu1 }
 0x4a5   :  { %v1001_v34 = vadd.f32 %v1000_v19, %v927_v28  ;;  %v1071_v56 = vpop.f32.mrb[5].mxu1  ;;  %v1070_v52 = vadd.f32 %v1069_v54, %v927_v28 }
 0x4a6   :  { %v5870_v49 = vmax.f32 %v999_v29, 0.0  ;;  %v1072_v60 = vadd.f32 %v1071_v56, %v927_v28 }
 0x4a7   :  { %v5872_v57 = vmax.f32 %v1001_v34, 0.0  ;;  %v5878_v53 = vmax.f32 %v1070_v52, 0.0 }
 0x4a8   :  { %1080 = vrot.lane.b32.xlu0 %v5870_v49, %s5123_s25  ;;  %v5880_v14 = vmax.f32 %v1072_v60, 0.0 }
 0x4a9   :  { %1082 = vrot.lane.b32.xlu1 %v5872_v57, %s5123_s25 }
 0x4ac   :  { %1084 = vrot.lane.b32.xlu0 %v5878_v53, %s5123_s25 }
 0x4ad   :  { %1086 = vrot.lane.b32.xlu1 %v5880_v14, %s5123_s25 }
 0x4b0   :  { %1096 = vrot.lane.b32.xlu0 %v5870_v49, %s5124_s30 }
 0x4b1   :  { %1098 = vrot.lane.b32.xlu1 %v5872_v57, %s5124_s30 }
 0x4b4   :  { %1100 = vrot.lane.b32.xlu0 %v5878_v53, %s5124_s30 }
 0x4b5   :  { %1102 = vrot.lane.b32.xlu1 %v5880_v14, %s5124_s30 }
 0x4b8   :  { %1112 = vrot.lane.b32.xlu0 %v5870_v49, %s5125_s7 }
 0x4b9   :  { %1114 = vrot.lane.b32.xlu1 %v5872_v57, %s5125_s7 }
 0x4bc   :  { %1116 = vrot.lane.b32.xlu0 %v5878_v53, %s5125_s7 }
 0x4bd   :  { %1118 = vrot.lane.b32.xlu1 %v5880_v14, %s5125_s7 }
 0x4c0   :  { %1128 = vrot.lane.b32.xlu0 %v5870_v49, %s5126_s8 }
 0x4c1   :  { %1130 = vrot.lane.b32.xlu1 %v5872_v57, %s5126_s8 }
 0x4c4   :  { %1132 = vrot.lane.b32.xlu0 %v5878_v53, %s5126_s8 }
 0x4c5   :  { %1134 = vrot.lane.b32.xlu1 %v5880_v14, %s5126_s8 }
 0x4c8   :  { %1144 = vrot.lane.b32.xlu0 %v5870_v49, %s5127_s9 }
 0x4c9   :  { %1146 = vrot.lane.b32.xlu1 %v5872_v57, %s5127_s9 }
 0x4cc   :  { %1148 = vrot.lane.b32.xlu0 %v5878_v53, %s5127_s9 }
 0x4cd   :  { %1150 = vrot.lane.b32.xlu1 %v5880_v14, %s5127_s9 }
 0x4d0   :  { %1160 = vrot.lane.b32.xlu0 %v5870_v49, %s5128_s10 }
 0x4d1   :  { %1162 = vrot.lane.b32.xlu1 %v5872_v57, %s5128_s10 }
 0x4d4   :  { %1164 = vrot.lane.b32.xlu0 %v5878_v53, %s5128_s10 }
 0x4d5   :  { %1166 = vrot.lane.b32.xlu1 %v5880_v14, %s5128_s10 }
 0x4d8   :  { %1176 = vrot.lane.b32.xlu0 %v5870_v49, %s5129_s11 }
 0x4d9   :  { %1178 = vrot.lane.b32.xlu1 %v5872_v57, %s5129_s11 }
 0x4dc   :  { %1180 = vrot.lane.b32.xlu0 %v5878_v53, %s5129_s11 }
 0x4dd   :  { %1182 = vrot.lane.b32.xlu1 %v5880_v14, %s5129_s11 }
 0x4e0   :  { %1192 = vrot.lane.b32.xlu0 %v5870_v49, %s5132_s12 }
 0x4e1   :  { %1194 = vrot.lane.b32.xlu1 %v5872_v57, %s5132_s12 }
 0x4e4   :  { %1196 = vrot.lane.b32.xlu0 %v5878_v53, %s5132_s12 }
 0x4e5   :  { %1198 = vrot.lane.b32.xlu1 %v5880_v14, %s5132_s12 }
 0x4e8   :  { %1212 = vperm.xlu0 %5109, %v4572_v13  }
 0x51a   :  { %v1081_v7 = vpop.permute.xlu0 %1080 }
 0x51b   :  { %v1083_v55 = vpop.permute.xlu1 %1082 }
 0x51c   :  { %v1090_v46 = vsel %vm50_vm0, %v1081_v7, %v1083_v55 }
 0x51d   :  { %v1093_v6 = vmul.f32 %v1090_v46, %v5276_v20 }
 0x51e   :  { %v1085_v0 = vpop.permute.xlu0 %1084 }
 0x51f   :  { %v1087_v2 = vpop.permute.xlu1 %1086  ;;  %v1089_v17 = vsel %vm50_vm0, %v1083_v55, %v1085_v0 }
 0x520   :  { %v1088_v15 = vsel %vm50_vm0, %v1085_v0, %v1087_v2  ;;  %v1091_v22 = vsel %vm50_vm0, %v1087_v2, %v1081_v7  ;;  %v1094_v0 = vmul.f32 %v1089_v17, %v5300_v31 }
 0x521   :  { %v1092_v60 = vmul.f32 %v1091_v22, %v5284_v25  ;;  %v1095_v13 = vmul.f32 %v1088_v15, %v5290_v27 }
 0x522   :  { %v1097_v23 = vpop.permute.xlu0 %1096 }
 0x523   :  { %v1099_v12 = vpop.permute.xlu1 %1098 }
 0x524   :  { %v1106_v5 = vsel %vm88_vm1, %v1097_v23, %v1099_v12 }
 0x525   :  { %v1109_v24 = vmul.f32 %v1106_v5, %v5279_v21 }
 0x526   :  { %v1101_v28 = vpop.permute.xlu0 %1100 }
 0x527   :  { %v1105_v29 = vsel %vm88_vm1, %v1099_v12, %v1101_v28  ;;  %v1103_v19 = vpop.permute.xlu1 %1102  ;;  %v4715_v54 = vpack.c.bf16 %v1109_v24, %v1093_v6 }
 0x528   :  { %v1110_v34 = vmul.f32 %v1105_v29, %v5307_v35  ;;  %v1104_v56 = vsel %vm88_vm1, %v1101_v28, %v1103_v19  ;;  %v1107_v52 = vsel %vm88_vm1, %v1103_v19, %v1097_v23 }
 0x529   :  { %v1108_v7 = vmul.f32 %v1107_v52, %v5287_v26  ;;  %v1111_v55 = vmul.f32 %v1104_v56, %v5297_v30  ;;  %4716 = vmatprep.subr.bf16.mxu0 %v4715_v54 }
 0x52a   :  { %v1113_v2 = vpop.permute.xlu0 %1112  ;;  %v4733_v6 = vpack.c.bf16 %v1110_v34, %v1094_v0 }
 0x52b   :  { %v4717_v46 = vpack.c.bf16 %v1108_v7, %v1092_v60  ;;  %v1115_v12 = vpop.permute.xlu1 %1114  ;;  %v4731_v5 = vpack.c.bf16 %v1111_v55, %v1095_v13 }
 0x52c   :  { %v1122_v15 = vsel %vm126_vm2, %v1113_v2, %v1115_v12 }
 0x52d   :  { %4718 = vmatpush1.bf16.msra.mxu0 %v4717_v46  ;;  %4732 = vmatprep.subr.bf16.mxu1 %v4731_v5  ;;  %v1125_v17 = vmul.f32 %v1122_v15, %v5332_v58 }
 0x52e   :  { %4734 = vmatpush1.bf16.msra.mxu1 %v4733_v6  ;;  %v1117_v23 = vpop.permute.xlu0 %1116 }
 0x52f   :  { %v1119_v24 = vpop.permute.xlu1 %1118  ;;  %v1121_v52 = vsel %vm126_vm2, %v1115_v12, %v1117_v23 }
 0x530   :  { %v1120_v54 = vsel %vm126_vm2, %v1117_v23, %v1119_v24  ;;  %v1123_v34 = vsel %vm126_vm2, %v1119_v24, %v1113_v2  ;;  %v1126_v23 = vmul.f32 %v1121_v52, %v5343_v62 }
 0x531   :  { %v1124_v5 = vmul.f32 %v1123_v34, %v5340_v61  ;;  %v1127_v2 = vmul.f32 %v1120_v54, %v5346_v63 }
 0x532   :  { %v1129_v22 = vpop.permute.xlu0 %1128 }
 0x533   :  { %v1131_v28 = vpop.permute.xlu1 %1130 }
 0x534   :  { %v1138_v29 = vsel %vm164_vm3, %v1129_v22, %v1131_v28 }
 0x535   :  { %v1141_v19 = vmul.f32 %v1138_v29, %v5335_v59 }
 0x536   :  { %v1133_v56 = vpop.permute.xlu0 %1132 }
 0x537   :  { %v1137_v60 = vsel %vm164_vm3, %v1131_v28, %v1133_v56  ;;  %v1135_v13 = vpop.permute.xlu1 %1134  ;;  %v4719_v7 = vpack.c.bf16 %v1141_v19, %v1125_v17 }
 0x538   :  { %v1142_v55 = vmul.f32 %v1137_v60, %v5356_v10  ;;  %v1136_v0 = vsel %vm164_vm3, %v1133_v56, %v1135_v13  ;;  %v1139_v46 = vsel %vm164_vm3, %v1135_v13, %v1129_v22 }
 0x539   :  { %v1140_v6 = vmul.f32 %v1139_v46, %v5353_v9  ;;  %v1143_v12 = vmul.f32 %v1136_v0, %v5363_v16  ;;  %4720 = vmatprep.subr.bf16.mxu0 %v4719_v7 }
 0x53a   :  { %v1145_v24 = vpop.permute.xlu0 %1144  ;;  %v4737_v17 = vpack.c.bf16 %v1142_v55, %v1126_v23 }
 0x53b   :  { %v4721_v15 = vpack.c.bf16 %v1140_v6, %v1124_v5  ;;  %v1147_v28 = vpop.permute.xlu1 %1146  ;;  %v4735_v29 = vpack.c.bf16 %v1143_v12, %v1127_v2 }
 0x53c   :  { %v1154_v19 = vsel %vm202_vm4, %v1145_v24, %v1147_v28 }
 0x53d   :  { %4722 = vmatpush1.bf16.msra.mxu0 %v4721_v15  ;;  %4736 = vmatprep.subr.bf16.mxu1 %v4735_v29  ;;  %v1156_v54 = vmul.f32 %v1154_v19, %v5384_v47 }
 0x53e   :  { %4738 = vmatpush1.bf16.msra.mxu1 %v4737_v17  ;;  %v1149_v22 = vpop.permute.xlu0 %1148 }
 0x53f   :  { %v1153_v34 = vsel %vm202_vm4, %v1147_v28, %v1149_v22  ;;  %v1151_v56 = vpop.permute.xlu1 %1150  ;;  %v4725_v5 = vpack.c.bf16 %v1156_v54, %v5870_v49 }
 0x540   :  { %v1157_v52 = vmul.f32 %v1153_v34, %v5392_v50  ;;  %v1152_v60 = vsel %vm202_vm4, %v1149_v22, %v1151_v56  ;;  %v1155_v13 = vsel %vm202_vm4, %v1151_v56, %v1145_v24 }
 0x541   :  { %v1158_v7 = vmul.f32 %v1152_v60, %v5395_v51  ;;  %v1159_v55 = vmul.f32 %v1155_v13, %v5387_v48 }
 0x542   :  { %v1161_v0 = vpop.permute.xlu0 %1160  ;;  %v4723_v46 = vpack.c.bf16 %v1157_v52, %v5872_v57 }
 0x543   :  { %v4741_v2 = vpack.c.bf16 %v1158_v7, %v5878_v53  ;;  %v1163_v6 = vpop.permute.xlu1 %1162  ;;  %v4739_v12 = vpack.c.bf16 %v1159_v55, %v5880_v14 }
 0x544   :  { %4724 = vmatprep.subr.bf16.mxu0 %v4723_v46  ;;  %v1170_v29 = vsel %vm240_vm6, %v1161_v0, %v1163_v6 }
 0x545   :  { %4726 = vmatpush1.bf16.msra.mxu0 %v4725_v5  ;;  %4740 = vmatprep.subr.bf16.mxu1 %v4739_v12  ;;  %v1172_v19 = vmul.f32 %v1170_v29, %v5447_v45 }
 0x546   :  { %4742 = vmatpush1.bf16.msra.mxu1 %v4741_v2  ;;  %v1165_v23 = vpop.permute.xlu0 %1164 }
 0x547   :  { %v1167_v24 = vpop.permute.xlu1 %1166  ;;  %v1169_v49 = vsel %vm240_vm6, %v1163_v6, %v1165_v23 }
 0x548   :  { %v1168_v53 = vsel %vm240_vm6, %v1165_v23, %v1167_v24  ;;  %v1171_v14 = vsel %vm240_vm6, %v1167_v24, %v1161_v0  ;;  %v1173_v56 = vmul.f32 %v1169_v49, %v5423_v33 }
 0x549   :  { %v1174_v7 = vmul.f32 %v1168_v53, %v5428_v38  ;;  %v1175_v55 = vmul.f32 %v1171_v14, %v5420_v32 }
 0x54a   :  { %v1177_v15 = vpop.permute.xlu0 %1176 }
 0x54b   :  { %v1179_v28 = vpop.permute.xlu1 %1178 }
 0x54c   :  { %v1186_v57 = vsel %vm278_vm5, %v1177_v15, %v1179_v28 }
 0x54d   :  { %v1188_v22 = vmul.f32 %v1186_v57, %v5433_v40 }
 0x54e   :  { %v1181_v17 = vpop.permute.xlu0 %1180 }
 0x54f   :  { %v1185_v54 = vsel %vm278_vm5, %v1179_v28, %v1181_v17  ;;  %v1183_v34 = vpop.permute.xlu1 %1182  ;;  %v4729_v6 = vpack.c.bf16 %v1188_v22, %v1172_v19 }
 0x550   :  { %v1189_v52 = vmul.f32 %v1185_v54, %v5441_v43  ;;  %v1184_v60 = vsel %vm278_vm5, %v1181_v17, %v1183_v34  ;;  %v1187_v13 = vsel %vm278_vm5, %v1183_v34, %v1177_v15  ;;  %v4571_v54 = vld [vmem:[%s8155_s1 + $0x18] sm:$0xff] }
 0x551   :  { %v1190_v0 = vmul.f32 %v1184_v60, %v5444_v44  ;;  %v1191_v46 = vmul.f32 %v1187_v13, %v5438_v42 }
 0x552   :  { %v1193_v5 = vpop.permute.xlu0 %1192  ;;  %v4727_v2 = vpack.c.bf16 %v1189_v52, %v1173_v56 }
 0x553   :  { %v4745_v12 = vpack.c.bf16 %v1190_v0, %v1174_v7  ;;  %v1195_v23 = vpop.permute.xlu1 %1194  ;;  %v4743_v24 = vpack.c.bf16 %v1191_v46, %v1175_v55 }
 0x554   :  { %4728 = vmatprep.subr.bf16.mxu0 %v4727_v2  ;;  %v1202_v15 = vsel %vm316_vm7, %v1193_v5, %v1195_v23 }
 0x555   :  { %4730 = vmatpush1.bf16.msra.mxu0 %v4729_v6  ;;  %4744 = vmatprep.subr.bf16.mxu1 %v4743_v24  ;;  %v1204_v17 = vmul.f32 %v1202_v15, %v5481_v41 }
 0x556   :  { %4746 = vmatpush1.bf16.msra.mxu1 %v4745_v12  ;;  %v1197_v28 = vpop.permute.xlu0 %1196 }
 0x557   :  { %v1201_v29 = vsel %vm316_vm7, %v1195_v23, %v1197_v28  ;;  %v1199_v57 = vpop.permute.xlu1 %1198 }
 0x558   :  { %v1200_v49 = vsel %vm316_vm7, %v1197_v28, %v1199_v57  ;;  %v1203_v53 = vsel %vm316_vm7, %v1199_v57, %v1193_v5  ;;  %v1205_v14 = vmul.f32 %v1201_v29, %v5472_v36 }
 0x559   :  { %v1206_v19 = vmul.f32 %v1200_v49, %v5478_v39  ;;  %v1207_v22 = vmul.f32 %v1203_v53, %v5475_v37 }
 0x55a   :  { %1234 = vmatprep.subr.mxu0 %v1205_v14 }
 0x55b   :  { %1235 = vmatpush1.msra.mxu0 %v1204_v17  ;;  %1305 = vmatprep.subr.mxu1 %v1207_v22 }
 0x55c   :  { %4573 = vmatmul.mubr.msk.f32.vlgmr.msra.gmra.mrb[6].mxu0 %vm352_vm8, %v4571_v54  ;;  %1306 = vmatpush1.msra.mxu1 %v1206_v19 }
 0x55d   :  { %4574 = vmatmul.mubr.msk.f32.vlgmr.msra.gmra.mrb[6].mxu1 %vm352_vm8, %v4571_v54  ;;  %1572 = vmatprep.mubr.f32.mxu0 %v5130_v4 }
 0x55e   :  { %1643 = vmatprep.mubr.f32.mxu1 %v5130_v4 }
 0x567   :  { %v1213_v34 = vpop.permute.xlu0 %1212 }
 0x62f   :  { %v1284_v56 = vpop.f32.mrb[6].mxu0 }
 0x630   :  { %v1285_v52 = vadd.f32 %v1284_v56, %v1213_v34  ;;  %v1286_v60 = vpop.f32.mrb[7].mxu0  ;;  %v1355_v13 = vpop.f32.mrb[6].mxu1 }
 0x631   :  { %v1287_v7 = vadd.f32 %v1286_v60, %v1213_v34  ;;  %v1356_v55 = vadd.f32 %v1355_v13, %v1213_v34  ;;  %v1357_v0 = vpop.f32.mrb[7].mxu1 }
 0x632   :  { %v1360_v46 = vadd.f32 %v1285_v52, %v5686_v8  ;;  %v1358_v5 = vadd.f32 %v1357_v0, %v1213_v34 }
 0x633   :  { %v1361_v2 = vadd.f32 %v1287_v7, %v5688_v18  ;;  %v1362_v12 = vadd.f32 %v1356_v55, %v5696_v1  ;;  %v4576_v18 = vld [vmem:[%s8153_s2 + $0x20] sm:$0xff] }
 0x634   :  { %v6054_v6 = vmax.f32 %v1360_v46, 0.0  ;;  %v1363_v24 = vadd.f32 %v1358_v5, %v5698_v3 }
 0x635   :  { %v6057_v23 = vmax.f32 %v1361_v2, 0.0  ;;  %v6064_v15 = vmax.f32 %v1362_v12, 0.0 }
 0x636   :  { %1370 = vrot.lane.b32.xlu1 %v6054_v6, %s5123_s25  ;;  %v6066_v8 = vmax.f32 %v1363_v24, 0.0 }
 0x637   :  { %1372 = vrot.lane.b32.xlu0 %v6057_v23, %s5123_s25 }
 0x63a   :  { %1374 = vrot.lane.b32.xlu1 %v6064_v15, %s5123_s25 }
 0x63b   :  { %1376 = vrot.lane.b32.xlu0 %v6066_v8, %s5123_s25 }
 0x63e   :  { %1386 = vrot.lane.b32.xlu1 %v6054_v6, %s5124_s30 }
 0x63f   :  { %1388 = vrot.lane.b32.xlu0 %v6057_v23, %s5124_s30 }
 0x642   :  { %1390 = vrot.lane.b32.xlu1 %v6064_v15, %s5124_s30 }
 0x643   :  { %1392 = vrot.lane.b32.xlu0 %v6066_v8, %s5124_s30 }
 0x646   :  { %1402 = vrot.lane.b32.xlu1 %v6054_v6, %s5125_s7 }
 0x647   :  { %1404 = vrot.lane.b32.xlu0 %v6057_v23, %s5125_s7 }
 0x64a   :  { %1406 = vrot.lane.b32.xlu1 %v6064_v15, %s5125_s7 }
 0x64b   :  { %1408 = vrot.lane.b32.xlu0 %v6066_v8, %s5125_s7 }
 0x64e   :  { %1418 = vrot.lane.b32.xlu1 %v6054_v6, %s5126_s8 }
 0x64f   :  { %1420 = vrot.lane.b32.xlu0 %v6057_v23, %s5126_s8 }
 0x652   :  { %1422 = vrot.lane.b32.xlu1 %v6064_v15, %s5126_s8 }
 0x653   :  { %1424 = vrot.lane.b32.xlu0 %v6066_v8, %s5126_s8 }
 0x656   :  { %1434 = vrot.lane.b32.xlu1 %v6054_v6, %s5127_s9 }
 0x657   :  { %1436 = vrot.lane.b32.xlu0 %v6057_v23, %s5127_s9 }
 0x65a   :  { %1438 = vrot.lane.b32.xlu1 %v6064_v15, %s5127_s9 }
 0x65b   :  { %1440 = vrot.lane.b32.xlu0 %v6066_v8, %s5127_s9 }
 0x65e   :  { %1450 = vrot.lane.b32.xlu1 %v6054_v6, %s5128_s10 }
 0x65f   :  { %1452 = vrot.lane.b32.xlu0 %v6057_v23, %s5128_s10 }
 0x662   :  { %1454 = vrot.lane.b32.xlu1 %v6064_v15, %s5128_s10 }
 0x663   :  { %1456 = vrot.lane.b32.xlu0 %v6066_v8, %s5128_s10 }
 0x666   :  { %1466 = vrot.lane.b32.xlu1 %v6054_v6, %s5129_s11 }
 0x667   :  { %1468 = vrot.lane.b32.xlu0 %v6057_v23, %s5129_s11 }
 0x66a   :  { %1470 = vrot.lane.b32.xlu1 %v6064_v15, %s5129_s11 }
 0x66b   :  { %1472 = vrot.lane.b32.xlu0 %v6066_v8, %s5129_s11 }
 0x66e   :  { %1482 = vrot.lane.b32.xlu1 %v6054_v6, %s5132_s12 }
 0x66f   :  { %1484 = vrot.lane.b32.xlu0 %v6057_v23, %s5132_s12 }
 0x672   :  { %1486 = vrot.lane.b32.xlu1 %v6064_v15, %s5132_s12 }
 0x673   :  { %1488 = vrot.lane.b32.xlu0 %v6066_v8, %s5132_s12 }
 0x676   :  { %1502 = vperm.xlu1 %5110, %v4576_v18  }
 0x6a8   :  { %v1371_v1 = vpop.permute.xlu1 %1370 }
 0x6a9   :  { %v1373_v3 = vpop.permute.xlu0 %1372 }
 0x6aa   :  { %v1380_v57 = vsel %vm50_vm0, %v1371_v1, %v1373_v3 }
 0x6ab   :  { %v1383_v17 = vmul.f32 %v1380_v57, %v5276_v20 }
 0x6ac   :  { %v1375_v28 = vpop.permute.xlu1 %1374 }
 0x6ad   :  { %v1377_v29 = vpop.permute.xlu0 %1376  ;;  %v1379_v56 = vsel %vm50_vm0, %v1373_v3, %v1375_v28 }
 0x6ae   :  { %v1378_v22 = vsel %vm50_vm0, %v1375_v28, %v1377_v29  ;;  %v1381_v54 = vsel %vm50_vm0, %v1377_v29, %v1371_v1  ;;  %v1384_v24 = vmul.f32 %v1379_v56, %v5300_v31 }
 0x6af   :  { %v1382_v46 = vmul.f32 %v1381_v54, %v5284_v25  ;;  %v1385_v5 = vmul.f32 %v1378_v22, %v5290_v27 }
 0x6b0   :  { %v1387_v49 = vpop.permute.xlu1 %1386 }
 0x6b1   :  { %v1389_v53 = vpop.permute.xlu0 %1388 }
 0x6b2   :  { %v1396_v14 = vsel %vm88_vm1, %v1387_v49, %v1389_v53 }
 0x6b3   :  { %v1399_v19 = vmul.f32 %v1396_v14, %v5279_v21 }
 0x6b4   :  { %v1391_v34 = vpop.permute.xlu1 %1390 }
 0x6b5   :  { %v1395_v52 = vsel %vm88_vm1, %v1389_v53, %v1391_v34  ;;  %v1393_v60 = vpop.permute.xlu0 %1392  ;;  %v4747_v13 = vpack.c.bf16 %v1399_v19, %v1383_v17 }
 0x6b6   :  { %v1400_v7 = vmul.f32 %v1395_v52, %v5307_v35  ;;  %v1394_v55 = vsel %vm88_vm1, %v1391_v34, %v1393_v60  ;;  %v1397_v0 = vsel %vm88_vm1, %v1393_v60, %v1387_v49 }
 0x6b7   :  { %v1398_v2 = vmul.f32 %v1397_v0, %v5287_v26  ;;  %v1401_v12 = vmul.f32 %v1394_v55, %v5297_v30  ;;  %4748 = vmatprep.subr.bf16.mxu0 %v4747_v13 }
 0x6b8   :  { %v1403_v18 = vpop.permute.xlu1 %1402  ;;  %v4765_v29 = vpack.c.bf16 %v1400_v7, %v1384_v24 }
 0x6b9   :  { %v4749_v1 = vpack.c.bf16 %v1398_v2, %v1382_v46  ;;  %v1405_v3 = vpop.permute.xlu0 %1404  ;;  %v4763_v28 = vpack.c.bf16 %v1401_v12, %v1385_v5 }
 0x6ba   :  { %v1412_v53 = vsel %vm126_vm2, %v1403_v18, %v1405_v3 }
 0x6bb   :  { %4750 = vmatpush1.bf16.msra.mxu0 %v4749_v1  ;;  %4764 = vmatprep.subr.bf16.mxu1 %v4763_v28  ;;  %v1415_v22 = vmul.f32 %v1412_v53, %v5332_v58 }
 0x6bc   :  { %4766 = vmatpush1.bf16.msra.mxu1 %v4765_v29  ;;  %v1407_v57 = vpop.permute.xlu1 %1406 }
 0x6bd   :  { %v1409_v49 = vpop.permute.xlu0 %1408  ;;  %v1411_v60 = vsel %vm126_vm2, %v1405_v3, %v1407_v57 }
 0x6be   :  { %v1410_v34 = vsel %vm126_vm2, %v1407_v57, %v1409_v49  ;;  %v1413_v56 = vsel %vm126_vm2, %v1409_v49, %v1403_v18  ;;  %v1416_v1 = vmul.f32 %v1411_v60, %v5343_v62 }
 0x6bf   :  { %v1414_v2 = vmul.f32 %v1413_v56, %v5340_v61  ;;  %v1417_v12 = vmul.f32 %v1410_v34, %v5346_v63 }
 0x6c0   :  { %v1419_v14 = vpop.permute.xlu1 %1418 }
 0x6c1   :  { %v1421_v17 = vpop.permute.xlu0 %1420 }
 0x6c2   :  { %v1428_v19 = vsel %vm164_vm3, %v1419_v14, %v1421_v17 }
 0x6c3   :  { %v1431_v54 = vmul.f32 %v1428_v19, %v5335_v59 }
 0x6c4   :  { %v1423_v52 = vpop.permute.xlu1 %1422 }
 0x6c5   :  { %v1427_v13 = vsel %vm164_vm3, %v1421_v17, %v1423_v52  ;;  %v1425_v7 = vpop.permute.xlu0 %1424  ;;  %v4751_v55 = vpack.c.bf16 %v1431_v54, %v1415_v22 }
 0x6c6   :  { %v1432_v0 = vmul.f32 %v1427_v13, %v5356_v10  ;;  %v1426_v46 = vsel %vm164_vm3, %v1423_v52, %v1425_v7  ;;  %v1429_v5 = vsel %vm164_vm3, %v1425_v7, %v1419_v14 }
 0x6c7   :  { %v1430_v24 = vmul.f32 %v1429_v5, %v5353_v9  ;;  %v1433_v18 = vmul.f32 %v1426_v46, %v5363_v16  ;;  %4752 = vmatprep.subr.bf16.mxu0 %v4751_v55 }
 0x6c8   :  { %v1435_v3 = vpop.permute.xlu1 %1434  ;;  %v4769_v49 = vpack.c.bf16 %v1432_v0, %v1416_v1 }
 0x6c9   :  { %v4753_v28 = vpack.c.bf16 %v1430_v24, %v1414_v2  ;;  %v1437_v29 = vpop.permute.xlu0 %1436  ;;  %v4767_v57 = vpack.c.bf16 %v1433_v18, %v1417_v12 }
 0x6ca   :  { %v1444_v53 = vsel %vm202_vm4, %v1435_v3, %v1437_v29 }
 0x6cb   :  { %4754 = vmatpush1.bf16.msra.mxu0 %v4753_v28  ;;  %4768 = vmatprep.subr.bf16.mxu1 %v4767_v57  ;;  %v1446_v17 = vmul.f32 %v1444_v53, %v5384_v47 }
 0x6cc   :  { %4770 = vmatpush1.bf16.msra.mxu1 %v4769_v49  ;;  %v1439_v14 = vpop.permute.xlu1 %1438 }
 0x6cd   :  { %v1443_v19 = vsel %vm202_vm4, %v1437_v29, %v1439_v14  ;;  %v1441_v22 = vpop.permute.xlu0 %1440  ;;  %v4757_v55 = vpack.c.bf16 %v1446_v17, %v6054_v6 }
 0x6ce   :  { %v1447_v54 = vmul.f32 %v1443_v19, %v5392_v50  ;;  %v1442_v34 = vsel %vm202_vm4, %v1439_v14, %v1441_v22  ;;  %v1445_v56 = vsel %vm202_vm4, %v1441_v22, %v1435_v3 }
 0x6cf   :  { %v1448_v52 = vmul.f32 %v1442_v34, %v5395_v51  ;;  %v1449_v60 = vmul.f32 %v1445_v56, %v5387_v48 }
 0x6d0   :  { %v1451_v13 = vpop.permute.xlu1 %1450  ;;  %v4755_v7 = vpack.c.bf16 %v1447_v54, %v6057_v23 }
 0x6d1   :  { %v4773_v0 = vpack.c.bf16 %v1448_v52, %v6064_v15  ;;  %v1453_v46 = vpop.permute.xlu0 %1452  ;;  %v4771_v5 = vpack.c.bf16 %v1449_v60, %v6066_v8 }
 0x6d2   :  { %4756 = vmatprep.subr.bf16.mxu0 %v4755_v7  ;;  %v1460_v1 = vsel %vm240_vm6, %v1451_v13, %v1453_v46 }
 0x6d3   :  { %4758 = vmatpush1.bf16.msra.mxu0 %v4757_v55  ;;  %4772 = vmatprep.subr.bf16.mxu1 %v4771_v5  ;;  %v1462_v28 = vmul.f32 %v1460_v1, %v5447_v45 }
 0x6d4   :  { %4774 = vmatpush1.bf16.msra.mxu1 %v4773_v0  ;;  %v1455_v2 = vpop.permute.xlu1 %1454 }
 0x6d5   :  { %v1457_v12 = vpop.permute.xlu0 %1456  ;;  %v1459_v6 = vsel %vm240_vm6, %v1453_v46, %v1455_v2 }
 0x6d6   :  { %v1458_v15 = vsel %vm240_vm6, %v1455_v2, %v1457_v12  ;;  %v1461_v8 = vsel %vm240_vm6, %v1457_v12, %v1451_v13  ;;  %v1463_v53 = vmul.f32 %v1459_v6, %v5423_v33 }
 0x6d7   :  { %v1464_v22 = vmul.f32 %v1458_v15, %v5428_v38  ;;  %v1465_v54 = vmul.f32 %v1461_v8, %v5420_v32  ;;  %v4575_v8 = vld [vmem:[%s8155_s1 + $0x20] sm:$0xff] }
 0x6d8   :  { %v1467_v24 = vpop.permute.xlu1 %1466 }
 0x6d9   :  { %v1469_v18 = vpop.permute.xlu0 %1468 }
 0x6da   :  { %v1476_v23 = vsel %vm278_vm5, %v1467_v24, %v1469_v18 }
 0x6db   :  { %v1478_v29 = vmul.f32 %v1476_v23, %v5433_v40 }
 0x6dc   :  { %v1471_v3 = vpop.permute.xlu1 %1470 }
 0x6dd   :  { %v1475_v57 = vsel %vm278_vm5, %v1469_v18, %v1471_v3  ;;  %v1473_v49 = vpop.permute.xlu0 %1472  ;;  %v4761_v13 = vpack.c.bf16 %v1478_v29, %v1462_v28 }
 0x6de   :  { %v1479_v14 = vmul.f32 %v1475_v57, %v5441_v43  ;;  %v1474_v17 = vsel %vm278_vm5, %v1471_v3, %v1473_v49  ;;  %v1477_v19 = vsel %vm278_vm5, %v1473_v49, %v1467_v24 }
 0x6df   :  { %v1480_v34 = vmul.f32 %v1474_v17, %v5444_v44  ;;  %v1481_v56 = vmul.f32 %v1477_v19, %v5438_v42  ;;  %v5111_v19 = vld [vmem:[%s8152_s0] sm:$0xff] }
 0x6e0   :  { %v1483_v52 = vpop.permute.xlu1 %1482  ;;  %v4759_v60 = vpack.c.bf16 %v1479_v14, %v1463_v53 }
 0x6e1   :  { %v4777_v7 = vpack.c.bf16 %v1480_v34, %v1464_v22  ;;  %v1485_v55 = vpop.permute.xlu0 %1484  ;;  %v4775_v0 = vpack.c.bf16 %v1481_v56, %v1465_v54  ;;  %v5112_v34 = vld [vmem:[%s8152_s0 + $0x8] sm:$0xff] }
 0x6e2   :  { %4760 = vmatprep.subr.bf16.mxu0 %v4759_v60  ;;  %v1492_v46 = vsel %vm316_vm7, %v1483_v52, %v1485_v55 }
 0x6e3   :  { %4762 = vmatpush1.bf16.msra.mxu0 %v4761_v13  ;;  %4776 = vmatprep.subr.bf16.mxu1 %v4775_v0  ;;  %v1494_v23 = vmul.f32 %v1492_v46, %v5481_v41  ;;  %v5114_v13 = vld [vmem:[%s8152_s0 + $0x18] sm:$0xff] }
 0x6e4   :  { %4778 = vmatpush1.bf16.msra.mxu1 %v4777_v7  ;;  %v1487_v5 = vpop.permute.xlu1 %1486 }
 0x6e5   :  { %v1491_v2 = vsel %vm316_vm7, %v1485_v55, %v1487_v5  ;;  %v1489_v12 = vpop.permute.xlu0 %1488  ;;  %v4580_v55 = vld [vmem:[%s8153_s2 + $0x28] sm:$0xff] }
 0x6e6   :  { %v1490_v24 = vsel %vm316_vm7, %v1487_v5, %v1489_v12  ;;  %v1493_v18 = vsel %vm316_vm7, %v1489_v12, %v1483_v52  ;;  %v1495_v1 = vmul.f32 %v1491_v2, %v5472_v36  ;;  %v5113_v52 = vld [vmem:[%s8152_s0 + $0x10] sm:$0xff] }
 0x6e7   :  { %v1496_v6 = vmul.f32 %v1490_v24, %v5478_v39  ;;  %v1497_v15 = vmul.f32 %v1493_v18, %v5475_v37 }
 0x6e8   :  { %1524 = vmatprep.subr.mxu0 %v1495_v1 }
 0x6e9   :  { %1525 = vmatpush1.msra.mxu0 %v1494_v23  ;;  %1595 = vmatprep.subr.mxu1 %v1497_v15 }
 0x6ea   :  { %4577 = vmatmul.mubr.msk.f32.vlgmr.msra.gmra.mrb[8].mxu0 %vm352_vm8, %v4575_v8  ;;  %1596 = vmatpush1.msra.mxu1 %v1496_v6 }
 0x6eb   :  { %4578 = vmatmul.mubr.msk.f32.vlgmr.msra.gmra.mrb[8].mxu1 %vm352_vm8, %v4575_v8  ;;  %1862 = vmatprep.mubr.f32.mxu0 %v5130_v4 }
 0x6ec   :  { %1933 = vmatprep.mubr.f32.mxu1 %v5130_v4 }
 0x6f5   :  { %v1503_v3 = vpop.permute.xlu1 %1502 }
 0x7bd   :  { %v1574_v28 = vpop.f32.mrb[8].mxu0 }
 0x7be   :  { %v1575_v29 = vadd.f32 %v1574_v28, %v1503_v3  ;;  %v1576_v57 = vpop.f32.mrb[9].mxu0  ;;  %v1645_v49 = vpop.f32.mrb[8].mxu1 }
 0x7bf   :  { %v1577_v53 = vadd.f32 %v1576_v57, %v1503_v3  ;;  %v1646_v14 = vadd.f32 %v1645_v49, %v1503_v3  ;;  %v1647_v17 = vpop.f32.mrb[9].mxu1 }
 0x7c0   :  { %v6241_v22 = vadd.f32 %v5111_v19, %v1575_v29  ;;  %v1648_v54 = vadd.f32 %v1647_v17, %v1503_v3 }
 0x7c1   :  { %v6246_v56 = vadd.f32 %v5112_v34, %v1577_v53  ;;  %v6251_v60 = vadd.f32 %v5113_v52, %v1646_v14 }
 0x7c2   :  { %1654 = vst [vmem:[%s8156_s4] sm:$0xff] %v6241_v22  ;;  %v6260_v7 = vadd.f32 %v5114_v13, %v1648_v54  ;;  %1660 = vrot.lane.b32.xlu0 %v6241_v22, %s5123_s25 }
 0x7c3   :  { %1655 = vst [vmem:[%s8156_s4 + $0x8] sm:$0xff] %v6246_v56  ;;  %1656 = vst [vmem:[%s8156_s4 + $0x10] sm:$0xff] %v6251_v60  ;;  %1662 = vrot.lane.b32.xlu1 %v6246_v56, %s5123_s25 }
 0x7c4   :  { %1657 = vst [vmem:[%s8156_s4 + $0x18] sm:$0xff] %v6260_v7 }
 0x7c6   :  { %1664 = vrot.lane.b32.xlu0 %v6251_v60, %s5123_s25 }
 0x7c7   :  { %1666 = vrot.lane.b32.xlu1 %v6260_v7, %s5123_s25 }
 0x7ca   :  { %1676 = vrot.lane.b32.xlu0 %v6241_v22, %s5124_s30 }
 0x7cb   :  { %1678 = vrot.lane.b32.xlu1 %v6246_v56, %s5124_s30 }
 0x7ce   :  { %1680 = vrot.lane.b32.xlu0 %v6251_v60, %s5124_s30 }
 0x7cf   :  { %1682 = vrot.lane.b32.xlu1 %v6260_v7, %s5124_s30 }
 0x7d2   :  { %1692 = vrot.lane.b32.xlu0 %v6241_v22, %s5125_s7 }
 0x7d3   :  { %1694 = vrot.lane.b32.xlu1 %v6246_v56, %s5125_s7 }
 0x7d6   :  { %1696 = vrot.lane.b32.xlu0 %v6251_v60, %s5125_s7 }
 0x7d7   :  { %1698 = vrot.lane.b32.xlu1 %v6260_v7, %s5125_s7 }
 0x7da   :  { %1708 = vrot.lane.b32.xlu0 %v6241_v22, %s5126_s8 }
 0x7db   :  { %1710 = vrot.lane.b32.xlu1 %v6246_v56, %s5126_s8 }
 0x7de   :  { %1712 = vrot.lane.b32.xlu0 %v6251_v60, %s5126_s8 }
 0x7df   :  { %1714 = vrot.lane.b32.xlu1 %v6260_v7, %s5126_s8 }
 0x7e2   :  { %1724 = vrot.lane.b32.xlu0 %v6241_v22, %s5127_s9 }
 0x7e3   :  { %1726 = vrot.lane.b32.xlu1 %v6246_v56, %s5127_s9 }
 0x7e6   :  { %1728 = vrot.lane.b32.xlu0 %v6251_v60, %s5127_s9 }
 0x7e7   :  { %1730 = vrot.lane.b32.xlu1 %v6260_v7, %s5127_s9 }
 0x7ea   :  { %1740 = vrot.lane.b32.xlu0 %v6241_v22, %s5128_s10 }
 0x7eb   :  { %1742 = vrot.lane.b32.xlu1 %v6246_v56, %s5128_s10 }
 0x7ee   :  { %1744 = vrot.lane.b32.xlu0 %v6251_v60, %s5128_s10 }
 0x7ef   :  { %1746 = vrot.lane.b32.xlu1 %v6260_v7, %s5128_s10 }
 0x7f2   :  { %1756 = vrot.lane.b32.xlu0 %v6241_v22, %s5129_s11 }
 0x7f3   :  { %1758 = vrot.lane.b32.xlu1 %v6246_v56, %s5129_s11 }
 0x7f6   :  { %1760 = vrot.lane.b32.xlu0 %v6251_v60, %s5129_s11 }
 0x7f7   :  { %1762 = vrot.lane.b32.xlu1 %v6260_v7, %s5129_s11 }
 0x7fa   :  { %1772 = vrot.lane.b32.xlu0 %v6241_v22, %s5132_s12 }
 0x7fb   :  { %1774 = vrot.lane.b32.xlu1 %v6246_v56, %s5132_s12 }
 0x7fe   :  { %1776 = vrot.lane.b32.xlu0 %v6251_v60, %s5132_s12 }
 0x7ff   :  { %1778 = vrot.lane.b32.xlu1 %v6260_v7, %s5132_s12 }
 0x802   :  { %1792 = vperm.xlu0 %5109, %v4580_v55  }
 0x834   :  { %v1661_v0 = vpop.permute.xlu0 %1660 }
 0x835   :  { %v1663_v46 = vpop.permute.xlu1 %1662 }
 0x836   :  { %v1670_v12 = vsel %vm50_vm0, %v1661_v0, %v1663_v46 }
 0x837   :  { %v1673_v23 = vmul.f32 %v1670_v12, %v5276_v20 }
 0x838   :  { %v1665_v5 = vpop.permute.xlu0 %1664 }
 0x839   :  { %v1667_v2 = vpop.permute.xlu1 %1666  ;;  %v1669_v28 = vsel %vm50_vm0, %v1663_v46, %v1665_v5 }
 0x83a   :  { %v1668_v15 = vsel %vm50_vm0, %v1665_v5, %v1667_v2  ;;  %v1671_v8 = vsel %vm50_vm0, %v1667_v2, %v1661_v0  ;;  %v1674_v13 = vmul.f32 %v1669_v28, %v5300_v31 }
 0x83b   :  { %v1672_v19 = vmul.f32 %v1671_v8, %v5284_v25  ;;  %v1675_v54 = vmul.f32 %v1668_v15, %v5290_v27 }
 0x83c   :  { %v1677_v24 = vpop.permute.xlu0 %1676 }
 0x83d   :  { %v1679_v18 = vpop.permute.xlu1 %1678 }
 0x83e   :  { %v1686_v1 = vsel %vm88_vm1, %v1677_v24, %v1679_v18 }
 0x83f   :  { %v1689_v6 = vmul.f32 %v1686_v1, %v5279_v21 }
 0x840   :  { %v1681_v3 = vpop.permute.xlu0 %1680 }
 0x841   :  { %v1685_v29 = vsel %vm88_vm1, %v1679_v18, %v1681_v3  ;;  %v1683_v57 = vpop.permute.xlu1 %1682  ;;  %v4779_v49 = vpack.c.bf16 %v1689_v6, %v1673_v23 }
 0x842   :  { %v1690_v53 = vmul.f32 %v1685_v29, %v5307_v35  ;;  %v1684_v14 = vsel %vm88_vm1, %v1681_v3, %v1683_v57  ;;  %v1687_v17 = vsel %vm88_vm1, %v1683_v57, %v1677_v24 }
 0x843   :  { %v1688_v34 = vmul.f32 %v1687_v17, %v5287_v26  ;;  %v1691_v52 = vmul.f32 %v1684_v14, %v5297_v30  ;;  %4780 = vmatprep.subr.bf16.mxu0 %v4779_v49 }
 0x844   :  { %v1693_v55 = vpop.permute.xlu0 %1692  ;;  %v4797_v2 = vpack.c.bf16 %v1690_v53, %v1674_v13 }
 0x845   :  { %v4781_v0 = vpack.c.bf16 %v1688_v34, %v1672_v19  ;;  %v1695_v46 = vpop.permute.xlu1 %1694  ;;  %v4795_v5 = vpack.c.bf16 %v1691_v52, %v1675_v54 }
 0x846   :  { %v1702_v18 = vsel %vm126_vm2, %v1693_v55, %v1695_v46 }
 0x847   :  { %4782 = vmatpush1.bf16.msra.mxu0 %v4781_v0  ;;  %4796 = vmatprep.subr.bf16.mxu1 %v4795_v5  ;;  %v1705_v15 = vmul.f32 %v1702_v18, %v5332_v58 }
 0x848   :  { %4798 = vmatpush1.bf16.msra.mxu1 %v4797_v2  ;;  %v1697_v12 = vpop.permute.xlu0 %1696 }
 0x849   :  { %v1699_v24 = vpop.permute.xlu1 %1698  ;;  %v1701_v57 = vsel %vm126_vm2, %v1695_v46, %v1697_v12 }
 0x84a   :  { %v1700_v3 = vsel %vm126_vm2, %v1697_v12, %v1699_v24  ;;  %v1703_v28 = vsel %vm126_vm2, %v1699_v24, %v1693_v55  ;;  %v1706_v0 = vmul.f32 %v1701_v57, %v5343_v62 }
 0x84b   :  { %v1704_v34 = vmul.f32 %v1703_v28, %v5340_v61  ;;  %v1707_v52 = vmul.f32 %v1700_v3, %v5346_v63 }
 0x84c   :  { %v1709_v1 = vpop.permute.xlu0 %1708 }
 0x84d   :  { %v1711_v23 = vpop.permute.xlu1 %1710 }
 0x84e   :  { %v1718_v6 = vsel %vm164_vm3, %v1709_v1, %v1711_v23 }
 0x84f   :  { %v1721_v8 = vmul.f32 %v1718_v6, %v5335_v59 }
 0x850   :  { %v1713_v29 = vpop.permute.xlu0 %1712 }
 0x851   :  { %v1717_v49 = vsel %vm164_vm3, %v1711_v23, %v1713_v29  ;;  %v1715_v53 = vpop.permute.xlu1 %1714  ;;  %v4783_v14 = vpack.c.bf16 %v1721_v8, %v1705_v15 }
 0x852   :  { %v1722_v17 = vmul.f32 %v1717_v49, %v5356_v10  ;;  %v1716_v19 = vsel %vm164_vm3, %v1713_v29, %v1715_v53  ;;  %v1719_v54 = vsel %vm164_vm3, %v1715_v53, %v1709_v1 }
 0x853   :  { %v1720_v13 = vmul.f32 %v1719_v54, %v5353_v9  ;;  %v1723_v55 = vmul.f32 %v1716_v19, %v5363_v16  ;;  %4784 = vmatprep.subr.bf16.mxu0 %v4783_v14 }
 0x854   :  { %v1725_v46 = vpop.permute.xlu0 %1724  ;;  %v4801_v24 = vpack.c.bf16 %v1722_v17, %v1706_v0 }
 0x855   :  { %v4785_v5 = vpack.c.bf16 %v1720_v13, %v1704_v34  ;;  %v1727_v2 = vpop.permute.xlu1 %1726  ;;  %v4799_v12 = vpack.c.bf16 %v1723_v55, %v1707_v52 }
 0x856   :  { %v1734_v18 = vsel %vm202_vm4, %v1725_v46, %v1727_v2 }
 0x857   :  { %4786 = vmatpush1.bf16.msra.mxu0 %v4785_v5  ;;  %4800 = vmatprep.subr.bf16.mxu1 %v4799_v12  ;;  %v1736_v23 = vmul.f32 %v1734_v18, %v5384_v47 }
 0x858   :  { %4802 = vmatpush1.bf16.msra.mxu1 %v4801_v24  ;;  %v1729_v1 = vpop.permute.xlu0 %1728 }
 0x859   :  { %v1733_v6 = vsel %vm202_vm4, %v1727_v2, %v1729_v1  ;;  %v1731_v15 = vpop.permute.xlu1 %1730  ;;  %v4789_v14 = vpack.c.bf16 %v1736_v23, %v6241_v22 }
 0x85a   :  { %v1737_v8 = vmul.f32 %v1733_v6, %v5392_v50  ;;  %v1732_v3 = vsel %vm202_vm4, %v1729_v1, %v1731_v15  ;;  %v1735_v28 = vsel %vm202_vm4, %v1731_v15, %v1725_v46 }
 0x85b   :  { %v1738_v29 = vmul.f32 %v1732_v3, %v5395_v51  ;;  %v1739_v57 = vmul.f32 %v1735_v28, %v5387_v48 }
 0x85c   :  { %v1741_v49 = vpop.permute.xlu0 %1740  ;;  %v4787_v53 = vpack.c.bf16 %v1737_v8, %v6246_v56 }
 0x85d   :  { %v4805_v17 = vpack.c.bf16 %v1738_v29, %v6251_v60  ;;  %v1743_v19 = vpop.permute.xlu1 %1742  ;;  %v4803_v54 = vpack.c.bf16 %v1739_v57, %v6260_v7 }
 0x85e   :  { %4788 = vmatprep.subr.bf16.mxu0 %v4787_v53  ;;  %v1750_v0 = vsel %vm240_vm6, %v1741_v49, %v1743_v19 }
 0x85f   :  { %4790 = vmatpush1.bf16.msra.mxu0 %v4789_v14  ;;  %4804 = vmatprep.subr.bf16.mxu1 %v4803_v54  ;;  %v1752_v18 = vmul.f32 %v1750_v0, %v5447_v45 }
 0x860   :  { %4806 = vmatpush1.bf16.msra.mxu1 %v4805_v17  ;;  %v1745_v34 = vpop.permute.xlu0 %1744 }
 0x861   :  { %v1747_v52 = vpop.permute.xlu1 %1746  ;;  %v1749_v5 = vsel %vm240_vm6, %v1743_v19, %v1745_v34 }
 0x862   :  { %v1748_v2 = vsel %vm240_vm6, %v1745_v34, %v1747_v52  ;;  %v1751_v12 = vsel %vm240_vm6, %v1747_v52, %v1741_v49  ;;  %v1753_v15 = vmul.f32 %v1749_v5, %v5423_v33 }
 0x863   :  { %v1754_v29 = vmul.f32 %v1748_v2, %v5428_v38  ;;  %v1755_v57 = vmul.f32 %v1751_v12, %v5420_v32 }
 0x864   :  { %v1757_v13 = vpop.permute.xlu0 %1756 }
 0x865   :  { %v1759_v55 = vpop.permute.xlu1 %1758 }
 0x866   :  { %v1766_v46 = vsel %vm278_vm5, %v1757_v13, %v1759_v55 }
 0x867   :  { %v1768_v1 = vmul.f32 %v1766_v46, %v5433_v40 }
 0x868   :  { %v1761_v24 = vpop.permute.xlu0 %1760 }
 0x869   :  { %v1765_v23 = vsel %vm278_vm5, %v1759_v55, %v1761_v24  ;;  %v1763_v6 = vpop.permute.xlu1 %1762  ;;  %v4793_v19 = vpack.c.bf16 %v1768_v1, %v1752_v18 }
 0x86a   :  { %v1769_v8 = vmul.f32 %v1765_v23, %v5441_v43  ;;  %v1764_v3 = vsel %vm278_vm5, %v1761_v24, %v1763_v6  ;;  %v1767_v28 = vsel %vm278_vm5, %v1763_v6, %v1757_v13  ;;  %v4579_v23 = vld [vmem:[%s8155_s1 + $0x28] sm:$0xff] }
 0x86b   :  { %v1770_v49 = vmul.f32 %v1764_v3, %v5444_v44  ;;  %v1771_v53 = vmul.f32 %v1767_v28, %v5438_v42 }
 0x86c   :  { %v1773_v14 = vpop.permute.xlu0 %1772  ;;  %v4791_v17 = vpack.c.bf16 %v1769_v8, %v1753_v15 }
 0x86d   :  { %v4809_v54 = vpack.c.bf16 %v1770_v49, %v1754_v29  ;;  %v1775_v34 = vpop.permute.xlu1 %1774  ;;  %v4807_v52 = vpack.c.bf16 %v1771_v53, %v1755_v57 }
 0x86e   :  { %4792 = vmatprep.subr.bf16.mxu0 %v4791_v17  ;;  %v1782_v13 = vsel %vm316_vm7, %v1773_v14, %v1775_v34 }
 0x86f   :  { %4794 = vmatpush1.bf16.msra.mxu0 %v4793_v19  ;;  %4808 = vmatprep.subr.bf16.mxu1 %v4807_v52  ;;  %v1784_v24 = vmul.f32 %v1782_v13, %v5481_v41 }
 0x870   :  { %4810 = vmatpush1.bf16.msra.mxu1 %v4809_v54  ;;  %v1777_v55 = vpop.permute.xlu0 %1776 }
 0x871   :  { %v1781_v0 = vsel %vm316_vm7, %v1775_v34, %v1777_v55  ;;  %v1779_v46 = vpop.permute.xlu1 %1778  ;;  %v4584_v34 = vld [vmem:[%s8153_s2 + $0x30] sm:$0xff] }
 0x872   :  { %v1780_v5 = vsel %vm316_vm7, %v1777_v55, %v1779_v46  ;;  %v1783_v2 = vsel %vm316_vm7, %v1779_v46, %v1773_v14  ;;  %v1785_v12 = vmul.f32 %v1781_v0, %v5472_v36 }
 0x873   :  { %v1786_v18 = vmul.f32 %v1780_v5, %v5478_v39  ;;  %v1787_v1 = vmul.f32 %v1783_v2, %v5475_v37 }
 0x874   :  { %1814 = vmatprep.subr.mxu0 %v1785_v12 }
 0x875   :  { %1815 = vmatpush1.msra.mxu0 %v1784_v24  ;;  %1885 = vmatprep.subr.mxu1 %v1787_v1 }
 0x876   :  { %4581 = vmatmul.mubr.msk.f32.vlgmr.msra.gmra.mrb[10].mxu0 %vm352_vm8, %v4579_v23  ;;  %1886 = vmatpush1.msra.mxu1 %v1786_v18 }
 0x877   :  { %4582 = vmatmul.mubr.msk.f32.vlgmr.msra.gmra.mrb[10].mxu1 %vm352_vm8, %v4579_v23  ;;  %2148 = vmatprep.mubr.f32.mxu0 %v5130_v4 }
 0x878   :  { %2219 = vmatprep.mubr.f32.mxu1 %v5130_v4 }
 0x881   :  { %v1793_v6 = vpop.permute.xlu0 %1792 }
 0x949   :  { %v1864_v15 = vpop.f32.mrb[10].mxu0 }
 0x94a   :  { %v1865_v8 = vadd.f32 %v1864_v15, %v1793_v6  ;;  %v1866_v3 = vpop.f32.mrb[11].mxu0  ;;  %v1935_v28 = vpop.f32.mrb[10].mxu1 }
 0x94b   :  { %v1867_v29 = vadd.f32 %v1866_v3, %v1793_v6  ;;  %v1937_v57 = vpop.f32.mrb[11].mxu1  ;;  %v1936_v53 = vadd.f32 %v1935_v28, %v1793_v6 }
 0x94c   :  { %v6448_v49 = vmax.f32 %v1865_v8, 0.0  ;;  %v1938_v17 = vadd.f32 %v1937_v57, %v1793_v6 }
 0x94d   :  { %v6450_v14 = vmax.f32 %v1867_v29, 0.0  ;;  %v6456_v19 = vmax.f32 %v1936_v53, 0.0 }
 0x94e   :  { %1946 = vrot.lane.b32.xlu1 %v6448_v49, %s5123_s25  ;;  %v6458_v54 = vmax.f32 %v1938_v17, 0.0 }
 0x94f   :  { %1948 = vrot.lane.b32.xlu0 %v6450_v14, %s5123_s25 }
 0x952   :  { %1950 = vrot.lane.b32.xlu1 %v6456_v19, %s5123_s25 }
 0x953   :  { %1952 = vrot.lane.b32.xlu0 %v6458_v54, %s5123_s25 }
 0x956   :  { %1962 = vrot.lane.b32.xlu1 %v6448_v49, %s5124_s30 }
 0x957   :  { %1964 = vrot.lane.b32.xlu0 %v6450_v14, %s5124_s30 }
 0x95a   :  { %1966 = vrot.lane.b32.xlu1 %v6456_v19, %s5124_s30 }
 0x95b   :  { %1968 = vrot.lane.b32.xlu0 %v6458_v54, %s5124_s30 }
 0x95e   :  { %1978 = vrot.lane.b32.xlu1 %v6448_v49, %s5125_s7 }
 0x95f   :  { %1980 = vrot.lane.b32.xlu0 %v6450_v14, %s5125_s7 }
 0x962   :  { %1982 = vrot.lane.b32.xlu1 %v6456_v19, %s5125_s7 }
 0x963   :  { %1984 = vrot.lane.b32.xlu0 %v6458_v54, %s5125_s7 }
 0x966   :  { %1994 = vrot.lane.b32.xlu1 %v6448_v49, %s5126_s8 }
 0x967   :  { %1996 = vrot.lane.b32.xlu0 %v6450_v14, %s5126_s8 }
 0x96a   :  { %1998 = vrot.lane.b32.xlu1 %v6456_v19, %s5126_s8 }
 0x96b   :  { %2000 = vrot.lane.b32.xlu0 %v6458_v54, %s5126_s8 }
 0x96e   :  { %2010 = vrot.lane.b32.xlu1 %v6448_v49, %s5127_s9 }
 0x96f   :  { %2012 = vrot.lane.b32.xlu0 %v6450_v14, %s5127_s9 }
 0x972   :  { %2014 = vrot.lane.b32.xlu1 %v6456_v19, %s5127_s9 }
 0x973   :  { %2016 = vrot.lane.b32.xlu0 %v6458_v54, %s5127_s9 }
 0x976   :  { %2026 = vrot.lane.b32.xlu1 %v6448_v49, %s5128_s10 }
 0x977   :  { %2028 = vrot.lane.b32.xlu0 %v6450_v14, %s5128_s10 }
 0x97a   :  { %2030 = vrot.lane.b32.xlu1 %v6456_v19, %s5128_s10 }
 0x97b   :  { %2032 = vrot.lane.b32.xlu0 %v6458_v54, %s5128_s10 }
 0x97e   :  { %2042 = vrot.lane.b32.xlu1 %v6448_v49, %s5129_s11 }
 0x97f   :  { %2044 = vrot.lane.b32.xlu0 %v6450_v14, %s5129_s11 }
 0x982   :  { %2046 = vrot.lane.b32.xlu1 %v6456_v19, %s5129_s11 }
 0x983   :  { %2048 = vrot.lane.b32.xlu0 %v6458_v54, %s5129_s11 }
 0x986   :  { %2058 = vrot.lane.b32.xlu1 %v6448_v49, %s5132_s12 }
 0x987   :  { %2060 = vrot.lane.b32.xlu0 %v6450_v14, %s5132_s12 }
 0x98a   :  { %2062 = vrot.lane.b32.xlu1 %v6456_v19, %s5132_s12 }
 0x98b   :  { %2064 = vrot.lane.b32.xlu0 %v6458_v54, %s5132_s12 }
 0x98e   :  { %2078 = vperm.xlu1 %5110, %v4584_v34  }
 0x9c0   :  { %v1947_v52 = vpop.permute.xlu1 %1946 }
 0x9c1   :  { %v1949_v13 = vpop.permute.xlu0 %1948 }
 0x9c2   :  { %v1956_v46 = vsel %vm50_vm0, %v1947_v52, %v1949_v13 }
 0x9c3   :  { %v1959_v24 = vmul.f32 %v1956_v46, %v5276_v20 }
 0x9c4   :  { %v1951_v55 = vpop.permute.xlu1 %1950 }
 0x9c5   :  { %v1953_v0 = vpop.permute.xlu0 %1952  ;;  %v1955_v15 = vsel %vm50_vm0, %v1949_v13, %v1951_v55 }
 0x9c6   :  { %v1954_v1 = vsel %vm50_vm0, %v1951_v55, %v1953_v0  ;;  %v1957_v23 = vsel %vm50_vm0, %v1953_v0, %v1947_v52  ;;  %v1960_v55 = vmul.f32 %v1955_v15, %v5300_v31 }
 0x9c7   :  { %v1958_v17 = vmul.f32 %v1957_v23, %v5284_v25  ;;  %v1961_v34 = vmul.f32 %v1954_v1, %v5290_v27 }
 0x9c8   :  { %v1963_v5 = vpop.permute.xlu1 %1962 }
 0x9c9   :  { %v1965_v2 = vpop.permute.xlu0 %1964 }
 0x9ca   :  { %v1972_v12 = vsel %vm88_vm1, %v1963_v5, %v1965_v2 }
 0x9cb   :  { %v1975_v18 = vmul.f32 %v1972_v12, %v5279_v21 }
 0x9cc   :  { %v1967_v6 = vpop.permute.xlu1 %1966 }
 0x9cd   :  { %v1971_v8 = vsel %vm88_vm1, %v1965_v2, %v1967_v6  ;;  %v1969_v3 = vpop.permute.xlu0 %1968  ;;  %v4811_v28 = vpack.c.bf16 %v1975_v18, %v1959_v24 }
 0x9ce   :  { %v1976_v29 = vmul.f32 %v1971_v8, %v5307_v35  ;;  %v1970_v57 = vsel %vm88_vm1, %v1967_v6, %v1969_v3  ;;  %v1973_v53 = vsel %vm88_vm1, %v1969_v3, %v1963_v5 }
 0x9cf   :  { %v1974_v52 = vmul.f32 %v1973_v53, %v5287_v26  ;;  %v1977_v13 = vmul.f32 %v1970_v57, %v5297_v30  ;;  %4812 = vmatprep.subr.bf16.mxu0 %v4811_v28 }
 0x9d0   :  { %v1979_v0 = vpop.permute.xlu1 %1978  ;;  %v4829_v24 = vpack.c.bf16 %v1976_v29, %v1960_v55 }
 0x9d1   :  { %v4813_v46 = vpack.c.bf16 %v1974_v52, %v1958_v17  ;;  %v1981_v2 = vpop.permute.xlu0 %1980  ;;  %v4827_v12 = vpack.c.bf16 %v1977_v13, %v1961_v34 }
 0x9d2   :  { %v1988_v1 = vsel %vm126_vm2, %v1979_v0, %v1981_v2 }
 0x9d3   :  { %4814 = vmatpush1.bf16.msra.mxu0 %v4813_v46  ;;  %4828 = vmatprep.subr.bf16.mxu1 %v4827_v12  ;;  %v1991_v15 = vmul.f32 %v1988_v1, %v5332_v58 }
 0x9d4   :  { %4830 = vmatpush1.bf16.msra.mxu1 %v4829_v24  ;;  %v1983_v5 = vpop.permute.xlu1 %1982 }
 0x9d5   :  { %v1985_v18 = vpop.permute.xlu0 %1984  ;;  %v1987_v53 = vsel %vm126_vm2, %v1981_v2, %v1983_v5 }
 0x9d6   :  { %v1986_v28 = vsel %vm126_vm2, %v1983_v5, %v1985_v18  ;;  %v1989_v29 = vsel %vm126_vm2, %v1985_v18, %v1979_v0  ;;  %v1992_v5 = vmul.f32 %v1987_v53, %v5343_v62 }
 0x9d7   :  { %v1990_v12 = vmul.f32 %v1989_v29, %v5340_v61  ;;  %v1993_v0 = vmul.f32 %v1986_v28, %v5346_v63 }
 0x9d8   :  { %v1995_v23 = vpop.permute.xlu1 %1994 }
 0x9d9   :  { %v1997_v6 = vpop.permute.xlu0 %1996 }
 0x9da   :  { %v2004_v8 = vsel %vm164_vm3, %v1995_v23, %v1997_v6 }
 0x9db   :  { %v2007_v3 = vmul.f32 %v2004_v8, %v5335_v59 }
 0x9dc   :  { %v1999_v57 = vpop.permute.xlu1 %1998 }
 0x9dd   :  { %v2003_v17 = vsel %vm164_vm3, %v1997_v6, %v1999_v57  ;;  %v2001_v34 = vpop.permute.xlu0 %2000  ;;  %v4815_v52 = vpack.c.bf16 %v2007_v3, %v1991_v15 }
 0x9de   :  { %v2008_v13 = vmul.f32 %v2003_v17, %v5356_v10  ;;  %v2002_v55 = vsel %vm164_vm3, %v1999_v57, %v2001_v34  ;;  %v2005_v46 = vsel %vm164_vm3, %v2001_v34, %v1995_v23 }
 0x9df   :  { %v2006_v24 = vmul.f32 %v2005_v46, %v5353_v9  ;;  %v2009_v2 = vmul.f32 %v2002_v55, %v5363_v16  ;;  %4816 = vmatprep.subr.bf16.mxu0 %v4815_v52 }
 0x9e0   :  { %v2011_v18 = vpop.permute.xlu1 %2010  ;;  %v4833_v15 = vpack.c.bf16 %v2008_v13, %v1992_v5 }
 0x9e1   :  { %v4817_v1 = vpack.c.bf16 %v2006_v24, %v1990_v12  ;;  %v2013_v6 = vpop.permute.xlu0 %2012  ;;  %v4831_v8 = vpack.c.bf16 %v2009_v2, %v1993_v0 }
 0x9e2   :  { %v2020_v3 = vsel %vm202_vm4, %v2011_v18, %v2013_v6 }
 0x9e3   :  { %4818 = vmatpush1.bf16.msra.mxu0 %v4817_v1  ;;  %4832 = vmatprep.subr.bf16.mxu1 %v4831_v8  ;;  %v2022_v28 = vmul.f32 %v2020_v3, %v5384_v47 }
 0x9e4   :  { %4834 = vmatpush1.bf16.msra.mxu1 %v4833_v15  ;;  %v2015_v23 = vpop.permute.xlu1 %2014 }
 0x9e5   :  { %v2019_v29 = vsel %vm202_vm4, %v2013_v6, %v2015_v23  ;;  %v2017_v57 = vpop.permute.xlu0 %2016  ;;  %v4821_v12 = vpack.c.bf16 %v2022_v28, %v6448_v49 }
 0x9e6   :  { %v2023_v53 = vmul.f32 %v2019_v29, %v5392_v50  ;;  %v2018_v17 = vsel %vm202_vm4, %v2015_v23, %v2017_v57  ;;  %v2021_v34 = vsel %vm202_vm4, %v2017_v57, %v2011_v18 }
 0x9e7   :  { %v2024_v52 = vmul.f32 %v2018_v17, %v5395_v51  ;;  %v2025_v13 = vmul.f32 %v2021_v34, %v5387_v48 }
 0x9e8   :  { %v2027_v55 = vpop.permute.xlu1 %2026  ;;  %v4819_v46 = vpack.c.bf16 %v2023_v53, %v6450_v14 }
 0x9e9   :  { %v4837_v0 = vpack.c.bf16 %v2024_v52, %v6456_v19  ;;  %v2029_v24 = vpop.permute.xlu0 %2028  ;;  %v4835_v2 = vpack.c.bf16 %v2025_v13, %v6458_v54 }
 0x9ea   :  { %4820 = vmatprep.subr.bf16.mxu0 %v4819_v46  ;;  %v2036_v8 = vsel %vm240_vm6, %v2027_v55, %v2029_v24 }
 0x9eb   :  { %4822 = vmatpush1.bf16.msra.mxu0 %v4821_v12  ;;  %4836 = vmatprep.subr.bf16.mxu1 %v4835_v2  ;;  %v2038_v3 = vmul.f32 %v2036_v8, %v5447_v45 }
 0x9ec   :  { %4838 = vmatpush1.bf16.msra.mxu1 %v4837_v0  ;;  %v2031_v5 = vpop.permute.xlu1 %2030 }
 0x9ed   :  { %v2033_v18 = vpop.permute.xlu0 %2032  ;;  %v2035_v49 = vsel %vm240_vm6, %v2029_v24, %v2031_v5 }
 0x9ee   :  { %v2034_v19 = vsel %vm240_vm6, %v2031_v5, %v2033_v18  ;;  %v2037_v54 = vsel %vm240_vm6, %v2033_v18, %v2027_v55  ;;  %v2039_v57 = vmul.f32 %v2035_v49, %v5423_v33 }
 0x9ef   :  { %v2040_v52 = vmul.f32 %v2034_v19, %v5428_v38  ;;  %v2041_v13 = vmul.f32 %v2037_v54, %v5420_v32 }
 0x9f0   :  { %v2043_v1 = vpop.permute.xlu1 %2042 }
 0x9f1   :  { %v2045_v6 = vpop.permute.xlu0 %2044 }
 0x9f2   :  { %v2052_v14 = vsel %vm278_vm5, %v2043_v1, %v2045_v6 }
 0x9f3   :  { %v2054_v23 = vmul.f32 %v2052_v14, %v5433_v40 }
 0x9f4   :  { %v2047_v15 = vpop.permute.xlu1 %2046 }
 0x9f5   :  { %v2051_v28 = vsel %vm278_vm5, %v2045_v6, %v2047_v15  ;;  %v2049_v29 = vpop.permute.xlu0 %2048  ;;  %v4825_v24 = vpack.c.bf16 %v2054_v23, %v2038_v3 }
 0x9f6   :  { %v2055_v53 = vmul.f32 %v2051_v28, %v5441_v43  ;;  %v2050_v17 = vsel %vm278_vm5, %v2047_v15, %v2049_v29  ;;  %v2053_v34 = vsel %vm278_vm5, %v2049_v29, %v2043_v1  ;;  %v4583_v28 = vld [vmem:[%s8155_s1 + $0x30] sm:$0xff] }
 0x9f7   :  { %v2056_v55 = vmul.f32 %v2050_v17, %v5444_v44  ;;  %v2057_v46 = vmul.f32 %v2053_v34, %v5438_v42 }
 0x9f8   :  { %v2059_v12 = vpop.permute.xlu1 %2058  ;;  %v4823_v0 = vpack.c.bf16 %v2055_v53, %v2039_v57 }
 0x9f9   :  { %v4841_v2 = vpack.c.bf16 %v2056_v55, %v2040_v52  ;;  %v2061_v5 = vpop.permute.xlu0 %2060  ;;  %v4839_v18 = vpack.c.bf16 %v2057_v46, %v2041_v13 }
 0x9fa   :  { %4824 = vmatprep.subr.bf16.mxu0 %v4823_v0  ;;  %v2068_v1 = vsel %vm316_vm7, %v2059_v12, %v2061_v5 }
 0x9fb   :  { %4826 = vmatpush1.bf16.msra.mxu0 %v4825_v24  ;;  %4840 = vmatprep.subr.bf16.mxu1 %v4839_v18  ;;  %v2070_v15 = vmul.f32 %v2068_v1, %v5481_v41 }
 0x9fc   :  { %4842 = vmatpush1.bf16.msra.mxu1 %v4841_v2  ;;  %v2063_v6 = vpop.permute.xlu1 %2062 }
 0x9fd   :  { %v2067_v8 = vsel %vm316_vm7, %v2061_v5, %v2063_v6  ;;  %v2065_v14 = vpop.permute.xlu0 %2064 }
 0x9fe   :  { %v2066_v49 = vsel %vm316_vm7, %v2063_v6, %v2065_v14  ;;  %v2069_v19 = vsel %vm316_vm7, %v2065_v14, %v2059_v12  ;;  %v2071_v54 = vmul.f32 %v2067_v8, %v5472_v36 }
 0x9ff   :  { %v2072_v3 = vmul.f32 %v2066_v49, %v5478_v39  ;;  %v2073_v23 = vmul.f32 %v2069_v19, %v5475_v37 }
 0xa00   :  { %2100 = vmatprep.subr.mxu0 %v2071_v54 }
 0xa01   :  { %2101 = vmatpush1.msra.mxu0 %v2070_v15  ;;  %2171 = vmatprep.subr.mxu1 %v2073_v23 }
 0xa02   :  { %4585 = vmatmul.mubr.msk.f32.vlgmr.msra.gmra.mrb[12].mxu0 %vm352_vm8, %v4583_v28  ;;  %2172 = vmatpush1.msra.mxu1 %v2072_v3 }
 0xa03   :  { %4586 = vmatmul.mubr.msk.f32.vlgmr.msra.gmra.mrb[12].mxu1 %vm352_vm8, %v4583_v28  ;;  %2438 = vmatprep.mubr.f32.mxu0 %v5130_v4 }
 0xa04   :  { %2509 = vmatprep.mubr.f32.mxu1 %v5130_v4 }
 0xa0d   :  { %v2079_v29 = vpop.permute.xlu1 %2078 }
 0xad5   :  { %v2150_v57 = vpop.f32.mrb[12].mxu0 }
 0xad6   :  { %v2151_v53 = vadd.f32 %v2150_v57, %v2079_v29  ;;  %v2152_v17 = vpop.f32.mrb[13].mxu0  ;;  %v2221_v34 = vpop.f32.mrb[12].mxu1 }
 0xad7   :  { %v2153_v52 = vadd.f32 %v2152_v17, %v2079_v29  ;;  %v2222_v13 = vadd.f32 %v2221_v34, %v2079_v29  ;;  %v2223_v55 = vpop.f32.mrb[13].mxu1 }
 0xad8   :  { %v2226_v46 = vadd.f32 %v2151_v53, %v6241_v22  ;;  %v2224_v12 = vadd.f32 %v2223_v55, %v2079_v29 }
 0xad9   :  { %v2227_v0 = vadd.f32 %v2153_v52, %v6246_v56  ;;  %v2228_v2 = vadd.f32 %v2222_v13, %v6251_v60  ;;  %v4588_v56 = vld [vmem:[%s8153_s2 + $0x38] sm:$0xff] }
 0xada   :  { %v6632_v24 = vmax.f32 %v2226_v46, 0.0  ;;  %v2229_v18 = vadd.f32 %v2224_v12, %v6260_v7 }
 0xadb   :  { %v6635_v5 = vmax.f32 %v2227_v0, 0.0  ;;  %v6642_v1 = vmax.f32 %v2228_v2, 0.0 }
 0xadc   :  { %2236 = vrot.lane.b32.xlu0 %v6632_v24, %s5123_s25  ;;  %v6644_v22 = vmax.f32 %v2229_v18, 0.0 }
 0xadd   :  { %2238 = vrot.lane.b32.xlu1 %v6635_v5, %s5123_s25 }
 0xae0   :  { %2240 = vrot.lane.b32.xlu0 %v6642_v1, %s5123_s25 }
 0xae1   :  { %2242 = vrot.lane.b32.xlu1 %v6644_v22, %s5123_s25 }
 0xae4   :  { %2252 = vrot.lane.b32.xlu0 %v6632_v24, %s5124_s30 }
 0xae5   :  { %2254 = vrot.lane.b32.xlu1 %v6635_v5, %s5124_s30 }
 0xae8   :  { %2256 = vrot.lane.b32.xlu0 %v6642_v1, %s5124_s30 }
 0xae9   :  { %2258 = vrot.lane.b32.xlu1 %v6644_v22, %s5124_s30 }
 0xaec   :  { %2268 = vrot.lane.b32.xlu0 %v6632_v24, %s5125_s7 }
 0xaed   :  { %2270 = vrot.lane.b32.xlu1 %v6635_v5, %s5125_s7 }
 0xaf0   :  { %2272 = vrot.lane.b32.xlu0 %v6642_v1, %s5125_s7 }
 0xaf1   :  { %2274 = vrot.lane.b32.xlu1 %v6644_v22, %s5125_s7 }
 0xaf4   :  { %2284 = vrot.lane.b32.xlu0 %v6632_v24, %s5126_s8 }
 0xaf5   :  { %2286 = vrot.lane.b32.xlu1 %v6635_v5, %s5126_s8 }
 0xaf8   :  { %2288 = vrot.lane.b32.xlu0 %v6642_v1, %s5126_s8 }
 0xaf9   :  { %2290 = vrot.lane.b32.xlu1 %v6644_v22, %s5126_s8 }
 0xafc   :  { %2300 = vrot.lane.b32.xlu0 %v6632_v24, %s5127_s9 }
 0xafd   :  { %2302 = vrot.lane.b32.xlu1 %v6635_v5, %s5127_s9 }
 0xb00   :  { %2304 = vrot.lane.b32.xlu0 %v6642_v1, %s5127_s9 }
 0xb01   :  { %2306 = vrot.lane.b32.xlu1 %v6644_v22, %s5127_s9 }
 0xb04   :  { %2316 = vrot.lane.b32.xlu0 %v6632_v24, %s5128_s10 }
 0xb05   :  { %2318 = vrot.lane.b32.xlu1 %v6635_v5, %s5128_s10 }
 0xb08   :  { %2320 = vrot.lane.b32.xlu0 %v6642_v1, %s5128_s10 }
 0xb09   :  { %2322 = vrot.lane.b32.xlu1 %v6644_v22, %s5128_s10 }
 0xb0c   :  { %2332 = vrot.lane.b32.xlu0 %v6632_v24, %s5129_s11 }
 0xb0d   :  { %2334 = vrot.lane.b32.xlu1 %v6635_v5, %s5129_s11 }
 0xb10   :  { %2336 = vrot.lane.b32.xlu0 %v6642_v1, %s5129_s11 }
 0xb11   :  { %2338 = vrot.lane.b32.xlu1 %v6644_v22, %s5129_s11 }
 0xb14   :  { %2348 = vrot.lane.b32.xlu0 %v6632_v24, %s5132_s12 }
 0xb15   :  { %2350 = vrot.lane.b32.xlu1 %v6635_v5, %s5132_s12 }
 0xb18   :  { %2352 = vrot.lane.b32.xlu0 %v6642_v1, %s5132_s12 }
 0xb19   :  { %2354 = vrot.lane.b32.xlu1 %v6644_v22, %s5132_s12 }
 0xb1c   :  { %2368 = vperm.xlu0 %5109, %v4588_v56  }
 0xb4e   :  { %v2237_v60 = vpop.permute.xlu0 %2236 }
 0xb4f   :  { %v2239_v7 = vpop.permute.xlu1 %2238 }
 0xb50   :  { %v2246_v14 = vsel %vm50_vm0, %v2237_v60, %v2239_v7 }
 0xb51   :  { %v2249_v15 = vmul.f32 %v2246_v14, %v5276_v20 }
 0xb52   :  { %v2241_v6 = vpop.permute.xlu0 %2240 }
 0xb53   :  { %v2243_v8 = vpop.permute.xlu1 %2242  ;;  %v2245_v57 = vsel %vm50_vm0, %v2239_v7, %v2241_v6 }
 0xb54   :  { %v2244_v23 = vsel %vm50_vm0, %v2241_v6, %v2243_v8  ;;  %v2247_v28 = vsel %vm50_vm0, %v2243_v8, %v2237_v60  ;;  %v2250_v18 = vmul.f32 %v2245_v57, %v5300_v31 }
 0xb55   :  { %v2248_v46 = vmul.f32 %v2247_v28, %v5284_v25  ;;  %v2251_v12 = vmul.f32 %v2244_v23, %v5290_v27 }
 0xb56   :  { %v2253_v49 = vpop.permute.xlu0 %2252 }
 0xb57   :  { %v2255_v19 = vpop.permute.xlu1 %2254 }
 0xb58   :  { %v2262_v54 = vsel %vm88_vm1, %v2253_v49, %v2255_v19 }
 0xb59   :  { %v2265_v3 = vmul.f32 %v2262_v54, %v5279_v21 }
 0xb5a   :  { %v2257_v29 = vpop.permute.xlu0 %2256 }
 0xb5b   :  { %v2261_v53 = vsel %vm88_vm1, %v2255_v19, %v2257_v29  ;;  %v2259_v17 = vpop.permute.xlu1 %2258  ;;  %v4843_v34 = vpack.c.bf16 %v2265_v3, %v2249_v15 }
 0xb5c   :  { %v2266_v52 = vmul.f32 %v2261_v53, %v5307_v35  ;;  %v2260_v13 = vsel %vm88_vm1, %v2257_v29, %v2259_v17  ;;  %v2263_v55 = vsel %vm88_vm1, %v2259_v17, %v2253_v49 }
 0xb5d   :  { %v2264_v0 = vmul.f32 %v2263_v55, %v5287_v26  ;;  %v2267_v2 = vmul.f32 %v2260_v13, %v5297_v30  ;;  %4844 = vmatprep.subr.bf16.mxu0 %v4843_v34 }
 0xb5e   :  { %v2269_v56 = vpop.permute.xlu0 %2268  ;;  %v4861_v8 = vpack.c.bf16 %v2266_v52, %v2250_v18 }
 0xb5f   :  { %v4845_v60 = vpack.c.bf16 %v2264_v0, %v2248_v46  ;;  %v2271_v7 = vpop.permute.xlu1 %2270  ;;  %v4859_v6 = vpack.c.bf16 %v2267_v2, %v2251_v12 }
 0xb60   :  { %v2278_v19 = vsel %vm126_vm2, %v2269_v56, %v2271_v7 }
 0xb61   :  { %4846 = vmatpush1.bf16.msra.mxu0 %v4845_v60  ;;  %4860 = vmatprep.subr.bf16.mxu1 %v4859_v6  ;;  %v2281_v23 = vmul.f32 %v2278_v19, %v5332_v58 }
 0xb62   :  { %4862 = vmatpush1.bf16.msra.mxu1 %v4861_v8  ;;  %v2273_v14 = vpop.permute.xlu0 %2272 }
 0xb63   :  { %v2275_v49 = vpop.permute.xlu1 %2274  ;;  %v2277_v17 = vsel %vm126_vm2, %v2271_v7, %v2273_v14 }
 0xb64   :  { %v2276_v29 = vsel %vm126_vm2, %v2273_v14, %v2275_v49  ;;  %v2279_v57 = vsel %vm126_vm2, %v2275_v49, %v2269_v56  ;;  %v2282_v60 = vmul.f32 %v2277_v17, %v5343_v62 }
 0xb65   :  { %v2280_v0 = vmul.f32 %v2279_v57, %v5340_v61  ;;  %v2283_v2 = vmul.f32 %v2276_v29, %v5346_v63 }
 0xb66   :  { %v2285_v54 = vpop.permute.xlu0 %2284 }
 0xb67   :  { %v2287_v15 = vpop.permute.xlu1 %2286 }
 0xb68   :  { %v2294_v3 = vsel %vm164_vm3, %v2285_v54, %v2287_v15 }
 0xb69   :  { %v2297_v28 = vmul.f32 %v2294_v3, %v5335_v59 }
 0xb6a   :  { %v2289_v53 = vpop.permute.xlu0 %2288 }
 0xb6b   :  { %v2293_v34 = vsel %vm164_vm3, %v2287_v15, %v2289_v53  ;;  %v2291_v52 = vpop.permute.xlu1 %2290  ;;  %v4847_v13 = vpack.c.bf16 %v2297_v28, %v2281_v23 }
 0xb6c   :  { %v2298_v55 = vmul.f32 %v2293_v34, %v5356_v10  ;;  %v2292_v46 = vsel %vm164_vm3, %v2289_v53, %v2291_v52  ;;  %v2295_v12 = vsel %vm164_vm3, %v2291_v52, %v2285_v54 }
 0xb6d   :  { %v2296_v18 = vmul.f32 %v2295_v12, %v5353_v9  ;;  %v2299_v56 = vmul.f32 %v2292_v46, %v5363_v16  ;;  %4848 = vmatprep.subr.bf16.mxu0 %v4847_v13 }
 0xb6e   :  { %v2301_v7 = vpop.permute.xlu0 %2300  ;;  %v4865_v49 = vpack.c.bf16 %v2298_v55, %v2282_v60 }
 0xb6f   :  { %v4849_v6 = vpack.c.bf16 %v2296_v18, %v2280_v0  ;;  %v2303_v8 = vpop.permute.xlu1 %2302  ;;  %v4863_v14 = vpack.c.bf16 %v2299_v56, %v2283_v2 }
 0xb70   :  { %v2310_v19 = vsel %vm202_vm4, %v2301_v7, %v2303_v8 }
 0xb71   :  { %4850 = vmatpush1.bf16.msra.mxu0 %v4849_v6  ;;  %4864 = vmatprep.subr.bf16.mxu1 %v4863_v14  ;;  %v2312_v15 = vmul.f32 %v2310_v19, %v5384_v47 }
 0xb72   :  { %4866 = vmatpush1.bf16.msra.mxu1 %v4865_v49  ;;  %v2305_v54 = vpop.permute.xlu0 %2304 }
 0xb73   :  { %v2309_v3 = vsel %vm202_vm4, %v2303_v8, %v2305_v54  ;;  %v2307_v23 = vpop.permute.xlu1 %2306  ;;  %v4853_v13 = vpack.c.bf16 %v2312_v15, %v6632_v24 }
 0xb74   :  { %v2313_v28 = vmul.f32 %v2309_v3, %v5392_v50  ;;  %v2308_v29 = vsel %vm202_vm4, %v2305_v54, %v2307_v23  ;;  %v2311_v57 = vsel %vm202_vm4, %v2307_v23, %v2301_v7 }
 0xb75   :  { %v2314_v53 = vmul.f32 %v2308_v29, %v5395_v51  ;;  %v2315_v17 = vmul.f32 %v2311_v57, %v5387_v48 }
 0xb76   :  { %v2317_v34 = vpop.permute.xlu0 %2316  ;;  %v4851_v52 = vpack.c.bf16 %v2313_v28, %v6635_v5 }
 0xb77   :  { %v4869_v55 = vpack.c.bf16 %v2314_v53, %v6642_v1  ;;  %v2319_v46 = vpop.permute.xlu1 %2318  ;;  %v4867_v12 = vpack.c.bf16 %v2315_v17, %v6644_v22 }
 0xb78   :  { %4852 = vmatprep.subr.bf16.mxu0 %v4851_v52  ;;  %v2326_v60 = vsel %vm240_vm6, %v2317_v34, %v2319_v46 }
 0xb79   :  { %4854 = vmatpush1.bf16.msra.mxu0 %v4853_v13  ;;  %4868 = vmatprep.subr.bf16.mxu1 %v4867_v12  ;;  %v2328_v19 = vmul.f32 %v2326_v60, %v5447_v45 }
 0xb7a   :  { %4870 = vmatpush1.bf16.msra.mxu1 %v4869_v55  ;;  %v2321_v0 = vpop.permute.xlu0 %2320 }
 0xb7b   :  { %v2323_v2 = vpop.permute.xlu1 %2322  ;;  %v2325_v6 = vsel %vm240_vm6, %v2319_v46, %v2321_v0 }
 0xb7c   :  { %v2324_v8 = vsel %vm240_vm6, %v2321_v0, %v2323_v2  ;;  %v2327_v14 = vsel %vm240_vm6, %v2323_v2, %v2317_v34  ;;  %v2329_v23 = vmul.f32 %v2325_v6, %v5423_v33 }
 0xb7d   :  { %v2330_v53 = vmul.f32 %v2324_v8, %v5428_v38  ;;  %v2331_v17 = vmul.f32 %v2327_v14, %v5420_v32 }
 0xb7e   :  { %v2333_v18 = vpop.permute.xlu0 %2332 }
 0xb7f   :  { %v2335_v56 = vpop.permute.xlu1 %2334 }
 0xb80   :  { %v2342_v7 = vsel %vm278_vm5, %v2333_v18, %v2335_v56 }
 0xb81   :  { %v2344_v54 = vmul.f32 %v2342_v7, %v5433_v40 }
 0xb82   :  { %v2337_v49 = vpop.permute.xlu0 %2336 }
 0xb83   :  { %v2341_v15 = vsel %vm278_vm5, %v2335_v56, %v2337_v49  ;;  %v2339_v3 = vpop.permute.xlu1 %2338  ;;  %v4857_v46 = vpack.c.bf16 %v2344_v54, %v2328_v19 }
 0xb84   :  { %v2345_v28 = vmul.f32 %v2341_v15, %v5441_v43  ;;  %v2340_v29 = vsel %vm278_vm5, %v2337_v49, %v2339_v3  ;;  %v2343_v57 = vsel %vm278_vm5, %v2339_v3, %v2333_v18  ;;  %v4587_v15 = vld [vmem:[%s8155_s1 + $0x38] sm:$0xff] }
 0xb85   :  { %v2346_v34 = vmul.f32 %v2340_v29, %v5444_v44  ;;  %v2347_v52 = vmul.f32 %v2343_v57, %v5438_v42 }
 0xb86   :  { %v2349_v13 = vpop.permute.xlu0 %2348  ;;  %v4855_v55 = vpack.c.bf16 %v2345_v28, %v2329_v23 }
 0xb87   :  { %v4873_v12 = vpack.c.bf16 %v2346_v34, %v2330_v53  ;;  %v2351_v0 = vpop.permute.xlu1 %2350  ;;  %v4871_v2 = vpack.c.bf16 %v2347_v52, %v2331_v17 }
 0xb88   :  { %4856 = vmatprep.subr.bf16.mxu0 %v4855_v55  ;;  %v2358_v18 = vsel %vm316_vm7, %v2349_v13, %v2351_v0 }
 0xb89   :  { %4858 = vmatpush1.bf16.msra.mxu0 %v4857_v46  ;;  %4872 = vmatprep.subr.bf16.mxu1 %v4871_v2  ;;  %v2360_v49 = vmul.f32 %v2358_v18, %v5481_v41 }
 0xb8a   :  { %4874 = vmatpush1.bf16.msra.mxu1 %v4873_v12  ;;  %v2353_v56 = vpop.permute.xlu0 %2352 }
 0xb8b   :  { %v2357_v60 = vsel %vm316_vm7, %v2351_v0, %v2353_v56  ;;  %v2355_v7 = vpop.permute.xlu1 %2354  ;;  %v4592_v0 = vld [vmem:[%s8153_s2 + $0x40] sm:$0xff] }
 0xb8c   :  { %v2356_v6 = vsel %vm316_vm7, %v2353_v56, %v2355_v7  ;;  %v2359_v8 = vsel %vm316_vm7, %v2355_v7, %v2349_v13  ;;  %v2361_v14 = vmul.f32 %v2357_v60, %v5472_v36 }
 0xb8d   :  { %v2362_v19 = vmul.f32 %v2356_v6, %v5478_v39  ;;  %v2363_v54 = vmul.f32 %v2359_v8, %v5475_v37 }
 0xb8e   :  { %2390 = vmatprep.subr.mxu0 %v2361_v14 }
 0xb8f   :  { %2391 = vmatpush1.msra.mxu0 %v2360_v49  ;;  %2461 = vmatprep.subr.mxu1 %v2363_v54 }
 0xb90   :  { %4589 = vmatmul.mubr.msk.f32.vlgmr.msra.gmra.mrb[14].mxu0 %vm352_vm8, %v4587_v15  ;;  %2462 = vmatpush1.msra.mxu1 %v2362_v19 }
 0xb91   :  { %4590 = vmatmul.mubr.msk.f32.vlgmr.msra.gmra.mrb[14].mxu1 %vm352_vm8, %v4587_v15  ;;  %2724 = vmatprep.mubr.f32.mxu0 %v5130_v4 }
 0xb92   :  { %2795 = vmatprep.mubr.f32.mxu1 %v5130_v4 }
 0xb9b   :  { %v2369_v3 = vpop.permute.xlu0 %2368 }
 0xc63   :  { %v2440_v23 = vpop.f32.mrb[14].mxu0 }
 0xc64   :  { %v2441_v28 = vadd.f32 %v2440_v23, %v2369_v3  ;;  %v2442_v29 = vpop.f32.mrb[15].mxu0  ;;  %v2511_v57 = vpop.f32.mrb[14].mxu1 }
 0xc65   :  { %v2443_v53 = vadd.f32 %v2442_v29, %v2369_v3  ;;  %v2513_v17 = vpop.f32.mrb[15].mxu1  ;;  %v2512_v52 = vadd.f32 %v2511_v57, %v2369_v3 }
 0xc66   :  { %v6816_v34 = vmax.f32 %v2441_v28, 0.0  ;;  %v2514_v55 = vadd.f32 %v2513_v17, %v2369_v3 }
 0xc67   :  { %v6818_v13 = vmax.f32 %v2443_v53, 0.0  ;;  %v6824_v46 = vmax.f32 %v2512_v52, 0.0 }
 0xc68   :  { %2522 = vrot.lane.b32.xlu1 %v6816_v34, %s5123_s25  ;;  %v6826_v12 = vmax.f32 %v2514_v55, 0.0 }
 0xc69   :  { %2524 = vrot.lane.b32.xlu0 %v6818_v13, %s5123_s25 }
 0xc6c   :  { %2526 = vrot.lane.b32.xlu1 %v6824_v46, %s5123_s25 }
 0xc6d   :  { %2528 = vrot.lane.b32.xlu0 %v6826_v12, %s5123_s25 }
 0xc70   :  { %2538 = vrot.lane.b32.xlu1 %v6816_v34, %s5124_s30 }
 0xc71   :  { %2540 = vrot.lane.b32.xlu0 %v6818_v13, %s5124_s30 }
 0xc74   :  { %2542 = vrot.lane.b32.xlu1 %v6824_v46, %s5124_s30 }
 0xc75   :  { %2544 = vrot.lane.b32.xlu0 %v6826_v12, %s5124_s30 }
 0xc78   :  { %2554 = vrot.lane.b32.xlu1 %v6816_v34, %s5125_s7 }
 0xc79   :  { %2556 = vrot.lane.b32.xlu0 %v6818_v13, %s5125_s7 }
 0xc7c   :  { %2558 = vrot.lane.b32.xlu1 %v6824_v46, %s5125_s7 }
 0xc7d   :  { %2560 = vrot.lane.b32.xlu0 %v6826_v12, %s5125_s7 }
 0xc80   :  { %2570 = vrot.lane.b32.xlu1 %v6816_v34, %s5126_s8 }
 0xc81   :  { %2572 = vrot.lane.b32.xlu0 %v6818_v13, %s5126_s8 }
 0xc84   :  { %2574 = vrot.lane.b32.xlu1 %v6824_v46, %s5126_s8 }
 0xc85   :  { %2576 = vrot.lane.b32.xlu0 %v6826_v12, %s5126_s8 }
 0xc88   :  { %2586 = vrot.lane.b32.xlu1 %v6816_v34, %s5127_s9 }
 0xc89   :  { %2588 = vrot.lane.b32.xlu0 %v6818_v13, %s5127_s9 }
 0xc8c   :  { %2590 = vrot.lane.b32.xlu1 %v6824_v46, %s5127_s9 }
 0xc8d   :  { %2592 = vrot.lane.b32.xlu0 %v6826_v12, %s5127_s9 }
 0xc90   :  { %2602 = vrot.lane.b32.xlu1 %v6816_v34, %s5128_s10 }
 0xc91   :  { %2604 = vrot.lane.b32.xlu0 %v6818_v13, %s5128_s10 }
 0xc94   :  { %2606 = vrot.lane.b32.xlu1 %v6824_v46, %s5128_s10 }
 0xc95   :  { %2608 = vrot.lane.b32.xlu0 %v6826_v12, %s5128_s10 }
 0xc98   :  { %2618 = vrot.lane.b32.xlu1 %v6816_v34, %s5129_s11 }
 0xc99   :  { %2620 = vrot.lane.b32.xlu0 %v6818_v13, %s5129_s11 }
 0xc9c   :  { %2622 = vrot.lane.b32.xlu1 %v6824_v46, %s5129_s11 }
 0xc9d   :  { %2624 = vrot.lane.b32.xlu0 %v6826_v12, %s5129_s11 }
 0xca0   :  { %2634 = vrot.lane.b32.xlu1 %v6816_v34, %s5132_s12 }
 0xca1   :  { %2636 = vrot.lane.b32.xlu0 %v6818_v13, %s5132_s12 }
 0xca4   :  { %2638 = vrot.lane.b32.xlu1 %v6824_v46, %s5132_s12 }
 0xca5   :  { %2640 = vrot.lane.b32.xlu0 %v6826_v12, %s5132_s12 }
 0xca8   :  { %2654 = vperm.xlu1 %5110, %v4592_v0  }
 0xcda   :  { %v2523_v2 = vpop.permute.xlu1 %2522 }
 0xcdb   :  { %v2525_v18 = vpop.permute.xlu0 %2524 }
 0xcdc   :  { %v2532_v7 = vsel %vm50_vm0, %v2523_v2, %v2525_v18 }
 0xcdd   :  { %v2535_v49 = vmul.f32 %v2532_v7, %v5276_v20 }
 0xcde   :  { %v2527_v56 = vpop.permute.xlu1 %2526 }
 0xcdf   :  { %v2529_v60 = vpop.permute.xlu0 %2528  ;;  %v2531_v23 = vsel %vm50_vm0, %v2525_v18, %v2527_v56 }
 0xce0   :  { %v2530_v54 = vsel %vm50_vm0, %v2527_v56, %v2529_v60  ;;  %v2533_v15 = vsel %vm50_vm0, %v2529_v60, %v2523_v2  ;;  %v2536_v56 = vmul.f32 %v2531_v23, %v5300_v31 }
 0xce1   :  { %v2534_v55 = vmul.f32 %v2533_v15, %v5284_v25  ;;  %v2537_v0 = vmul.f32 %v2530_v54, %v5290_v27 }
 0xce2   :  { %v2539_v6 = vpop.permute.xlu1 %2538 }
 0xce3   :  { %v2541_v8 = vpop.permute.xlu0 %2540 }
 0xce4   :  { %v2548_v14 = vsel %vm88_vm1, %v2539_v6, %v2541_v8 }
 0xce5   :  { %v2551_v19 = vmul.f32 %v2548_v14, %v5279_v21 }
 0xce6   :  { %v2543_v3 = vpop.permute.xlu1 %2542 }
 0xce7   :  { %v2547_v28 = vsel %vm88_vm1, %v2541_v8, %v2543_v3  ;;  %v2545_v29 = vpop.permute.xlu0 %2544  ;;  %v4875_v57 = vpack.c.bf16 %v2551_v19, %v2535_v49 }
 0xce8   :  { %v2552_v53 = vmul.f32 %v2547_v28, %v5307_v35  ;;  %v2546_v17 = vsel %vm88_vm1, %v2543_v3, %v2545_v29  ;;  %v2549_v52 = vsel %vm88_vm1, %v2545_v29, %v2539_v6 }
 0xce9   :  { %v2550_v2 = vmul.f32 %v2549_v52, %v5287_v26  ;;  %v2553_v18 = vmul.f32 %v2546_v17, %v5297_v30  ;;  %4876 = vmatprep.subr.bf16.mxu0 %v4875_v57 }
 0xcea   :  { %v2555_v60 = vpop.permute.xlu1 %2554  ;;  %v4893_v49 = vpack.c.bf16 %v2552_v53, %v2536_v56 }
 0xceb   :  { %v4877_v7 = vpack.c.bf16 %v2550_v2, %v2534_v55  ;;  %v2557_v8 = vpop.permute.xlu0 %2556  ;;  %v4891_v14 = vpack.c.bf16 %v2553_v18, %v2537_v0 }
 0xcec   :  { %v2564_v54 = vsel %vm126_vm2, %v2555_v60, %v2557_v8 }
 0xced   :  { %4878 = vmatpush1.bf16.msra.mxu0 %v4877_v7  ;;  %4892 = vmatprep.subr.bf16.mxu1 %v4891_v14  ;;  %v2567_v23 = vmul.f32 %v2564_v54, %v5332_v58 }
 0xcee   :  { %4894 = vmatpush1.bf16.msra.mxu1 %v4893_v49  ;;  %v2559_v6 = vpop.permute.xlu1 %2558 }
 0xcef   :  { %v2561_v19 = vpop.permute.xlu0 %2560  ;;  %v2563_v52 = vsel %vm126_vm2, %v2557_v8, %v2559_v6 }
 0xcf0   :  { %v2562_v57 = vsel %vm126_vm2, %v2559_v6, %v2561_v19  ;;  %v2565_v53 = vsel %vm126_vm2, %v2561_v19, %v2555_v60  ;;  %v2568_v6 = vmul.f32 %v2563_v52, %v5343_v62 }
 0xcf1   :  { %v2566_v14 = vmul.f32 %v2565_v53, %v5340_v61  ;;  %v2569_v60 = vmul.f32 %v2562_v57, %v5346_v63 }
 0xcf2   :  { %v2571_v15 = vpop.permute.xlu1 %2570 }
 0xcf3   :  { %v2573_v3 = vpop.permute.xlu0 %2572 }
 0xcf4   :  { %v2580_v28 = vsel %vm164_vm3, %v2571_v15, %v2573_v3 }
 0xcf5   :  { %v2583_v29 = vmul.f32 %v2580_v28, %v5335_v59 }
 0xcf6   :  { %v2575_v17 = vpop.permute.xlu1 %2574 }
 0xcf7   :  { %v2579_v55 = vsel %vm164_vm3, %v2573_v3, %v2575_v17  ;;  %v2577_v0 = vpop.permute.xlu0 %2576  ;;  %v4879_v2 = vpack.c.bf16 %v2583_v29, %v2567_v23 }
 0xcf8   :  { %v2584_v18 = vmul.f32 %v2579_v55, %v5356_v10  ;;  %v2578_v56 = vsel %vm164_vm3, %v2575_v17, %v2577_v0  ;;  %v2581_v7 = vsel %vm164_vm3, %v2577_v0, %v2571_v15 }
 0xcf9   :  { %v2582_v49 = vmul.f32 %v2581_v7, %v5353_v9  ;;  %v2585_v8 = vmul.f32 %v2578_v56, %v5363_v16  ;;  %4880 = vmatprep.subr.bf16.mxu0 %v4879_v2 }
 0xcfa   :  { %v2587_v19 = vpop.permute.xlu1 %2586  ;;  %v4897_v23 = vpack.c.bf16 %v2584_v18, %v2568_v6 }
 0xcfb   :  { %v4881_v54 = vpack.c.bf16 %v2582_v49, %v2566_v14  ;;  %v2589_v3 = vpop.permute.xlu0 %2588  ;;  %v4895_v28 = vpack.c.bf16 %v2585_v8, %v2569_v60 }
 0xcfc   :  { %v2596_v29 = vsel %vm202_vm4, %v2587_v19, %v2589_v3 }
 0xcfd   :  { %4882 = vmatpush1.bf16.msra.mxu0 %v4881_v54  ;;  %4896 = vmatprep.subr.bf16.mxu1 %v4895_v28  ;;  %v2598_v57 = vmul.f32 %v2596_v29, %v5384_v47 }
 0xcfe   :  { %4898 = vmatpush1.bf16.msra.mxu1 %v4897_v23  ;;  %v2591_v15 = vpop.permute.xlu1 %2590 }
 0xcff   :  { %v2595_v53 = vsel %vm202_vm4, %v2589_v3, %v2591_v15  ;;  %v2593_v17 = vpop.permute.xlu0 %2592  ;;  %v4885_v14 = vpack.c.bf16 %v2598_v57, %v6816_v34 }
 0xd00   :  { %v2599_v52 = vmul.f32 %v2595_v53, %v5392_v50  ;;  %v2594_v55 = vsel %vm202_vm4, %v2591_v15, %v2593_v17  ;;  %v2597_v0 = vsel %vm202_vm4, %v2593_v17, %v2587_v19 }
 0xd01   :  { %v2600_v2 = vmul.f32 %v2594_v55, %v5395_v51  ;;  %v2601_v18 = vmul.f32 %v2597_v0, %v5387_v48 }
 0xd02   :  { %v2603_v56 = vpop.permute.xlu1 %2602  ;;  %v4883_v7 = vpack.c.bf16 %v2599_v52, %v6818_v13 }
 0xd03   :  { %v4901_v60 = vpack.c.bf16 %v2600_v2, %v6824_v46  ;;  %v2605_v49 = vpop.permute.xlu0 %2604  ;;  %v4899_v8 = vpack.c.bf16 %v2601_v18, %v6826_v12 }
 0xd04   :  { %4884 = vmatprep.subr.bf16.mxu0 %v4883_v7  ;;  %v2612_v28 = vsel %vm240_vm6, %v2603_v56, %v2605_v49 }
 0xd05   :  { %4886 = vmatpush1.bf16.msra.mxu0 %v4885_v14  ;;  %4900 = vmatprep.subr.bf16.mxu1 %v4899_v8  ;;  %v2614_v29 = vmul.f32 %v2612_v28, %v5447_v45 }
 0xd06   :  { %4902 = vmatpush1.bf16.msra.mxu1 %v4901_v60  ;;  %v2607_v6 = vpop.permute.xlu1 %2606 }
 0xd07   :  { %v2609_v19 = vpop.permute.xlu0 %2608  ;;  %v2611_v34 = vsel %vm240_vm6, %v2605_v49, %v2607_v6 }
 0xd08   :  { %v2610_v46 = vsel %vm240_vm6, %v2607_v6, %v2609_v19  ;;  %v2613_v12 = vsel %vm240_vm6, %v2609_v19, %v2603_v56  ;;  %v2615_v17 = vmul.f32 %v2611_v34, %v5423_v33 }
 0xd09   :  { %v2616_v2 = vmul.f32 %v2610_v46, %v5428_v38  ;;  %v2617_v18 = vmul.f32 %v2613_v12, %v5420_v32 }
 0xd0a   :  { %v2619_v54 = vpop.permute.xlu1 %2618 }
 0xd0b   :  { %v2621_v3 = vpop.permute.xlu0 %2620 }
 0xd0c   :  { %v2628_v13 = vsel %vm278_vm5, %v2619_v54, %v2621_v3 }
 0xd0d   :  { %v2630_v15 = vmul.f32 %v2628_v13, %v5433_v40 }
 0xd0e   :  { %v2623_v23 = vpop.permute.xlu1 %2622 }
 0xd0f   :  { %v2627_v57 = vsel %vm278_vm5, %v2621_v3, %v2623_v23  ;;  %v2625_v53 = vpop.permute.xlu0 %2624  ;;  %v4889_v49 = vpack.c.bf16 %v2630_v15, %v2614_v29 }
 0xd10   :  { %v2631_v52 = vmul.f32 %v2627_v57, %v5441_v43  ;;  %v2626_v55 = vsel %vm278_vm5, %v2623_v23, %v2625_v53  ;;  %v2629_v0 = vsel %vm278_vm5, %v2625_v53, %v2619_v54  ;;  %v4591_v57 = vld [vmem:[%s8155_s1 + $0x40] sm:$0xff] }
 0xd11   :  { %v2632_v56 = vmul.f32 %v2626_v55, %v5444_v44  ;;  %v2633_v7 = vmul.f32 %v2629_v0, %v5438_v42 }
 0xd12   :  { %v2635_v14 = vpop.permute.xlu1 %2634  ;;  %v4887_v60 = vpack.c.bf16 %v2631_v52, %v2615_v17 }
 0xd13   :  { %v4905_v8 = vpack.c.bf16 %v2632_v56, %v2616_v2  ;;  %v2637_v6 = vpop.permute.xlu0 %2636  ;;  %v4903_v19 = vpack.c.bf16 %v2633_v7, %v2617_v18 }
 0xd14   :  { %4888 = vmatprep.subr.bf16.mxu0 %v4887_v60  ;;  %v2644_v54 = vsel %vm316_vm7, %v2635_v14, %v2637_v6 }
 0xd15   :  { %4890 = vmatpush1.bf16.msra.mxu0 %v4889_v49  ;;  %4904 = vmatprep.subr.bf16.mxu1 %v4903_v19  ;;  %v2646_v23 = vmul.f32 %v2644_v54, %v5481_v41 }
 0xd16   :  { %4906 = vmatpush1.bf16.msra.mxu1 %v4905_v8  ;;  %v2639_v3 = vpop.permute.xlu1 %2638 }
 0xd17   :  { %v2643_v28 = vsel %vm316_vm7, %v2637_v6, %v2639_v3  ;;  %v2641_v13 = vpop.permute.xlu0 %2640 }
 0xd18   :  { %v2642_v34 = vsel %vm316_vm7, %v2639_v3, %v2641_v13  ;;  %v2645_v46 = vsel %vm316_vm7, %v2641_v13, %v2635_v14  ;;  %v2647_v12 = vmul.f32 %v2643_v28, %v5472_v36 }
 0xd19   :  { %v2648_v29 = vmul.f32 %v2642_v34, %v5478_v39  ;;  %v2649_v15 = vmul.f32 %v2645_v46, %v5475_v37 }
 0xd1a   :  { %2676 = vmatprep.subr.mxu0 %v2647_v12 }
 0xd1b   :  { %2677 = vmatpush1.msra.mxu0 %v2646_v23  ;;  %2747 = vmatprep.subr.mxu1 %v2649_v15 }
 0xd1c   :  { %4593 = vmatmul.mubr.msk.f32.vlgmr.msra.gmra.mrb[16].mxu0 %vm352_vm8, %v4591_v57  ;;  %2748 = vmatpush1.msra.mxu1 %v2648_v29 }
 0xd1d   :  { %4594 = vmatmul.mubr.msk.f32.vlgmr.msra.gmra.mrb[16].mxu1 %vm352_vm8, %v4591_v57  ;;  %3014 = vmatprep.mubr.f32.mxu0 %v5130_v4 }
 0xd1e   :  { %3085 = vmatprep.mubr.f32.mxu1 %v5130_v4 }
 0xd27   :  { %v2655_v53 = vpop.permute.xlu1 %2654 }
 0xdef   :  { %v2726_v17 = vpop.f32.mrb[16].mxu0 }
 0xdf0   :  { %v2727_v52 = vadd.f32 %v2726_v17, %v2655_v53  ;;  %v2728_v55 = vpop.f32.mrb[17].mxu0  ;;  %v2797_v0 = vpop.f32.mrb[16].mxu1 }
 0xdf1   :  { %v2729_v2 = vadd.f32 %v2728_v55, %v2655_v53  ;;  %v2798_v18 = vadd.f32 %v2797_v0, %v2655_v53  ;;  %v2799_v56 = vpop.f32.mrb[17].mxu1 }
 0xdf2   :  { %v2802_v7 = vadd.f32 %v2727_v52, %v6632_v24  ;;  %v2800_v14 = vadd.f32 %v2799_v56, %v2655_v53 }
 0xdf3   :  { %v2803_v60 = vadd.f32 %v2729_v2, %v6635_v5  ;;  %v2804_v8 = vadd.f32 %v2798_v18, %v6642_v1  ;;  %v4596_v5 = vld [vmem:[%s8153_s2 + $0x48] sm:$0xff] }
 0xdf4   :  { %v7000_v49 = vmax.f32 %v2802_v7, 0.0  ;;  %v2805_v19 = vadd.f32 %v2800_v14, %v6644_v22 }
 0xdf5   :  { %v7003_v6 = vmax.f32 %v2803_v60, 0.0  ;;  %v7010_v54 = vmax.f32 %v2804_v8, 0.0 }
 0xdf6   :  { %2812 = vrot.lane.b32.xlu0 %v7000_v49, %s5123_s25  ;;  %v7012_v24 = vmax.f32 %v2805_v19, 0.0 }
 0xdf7   :  { %2814 = vrot.lane.b32.xlu1 %v7003_v6, %s5123_s25 }
 0xdfa   :  { %2816 = vrot.lane.b32.xlu0 %v7010_v54, %s5123_s25 }
 0xdfb   :  { %2818 = vrot.lane.b32.xlu1 %v7012_v24, %s5123_s25 }
 0xdfe   :  { %2828 = vrot.lane.b32.xlu0 %v7000_v49, %s5124_s30 }
 0xdff   :  { %2830 = vrot.lane.b32.xlu1 %v7003_v6, %s5124_s30 }
 0xe02   :  { %2832 = vrot.lane.b32.xlu0 %v7010_v54, %s5124_s30 }
 0xe03   :  { %2834 = vrot.lane.b32.xlu1 %v7012_v24, %s5124_s30 }
 0xe06   :  { %2844 = vrot.lane.b32.xlu0 %v7000_v49, %s5125_s7 }
 0xe07   :  { %2846 = vrot.lane.b32.xlu1 %v7003_v6, %s5125_s7 }
 0xe0a   :  { %2848 = vrot.lane.b32.xlu0 %v7010_v54, %s5125_s7 }
 0xe0b   :  { %2850 = vrot.lane.b32.xlu1 %v7012_v24, %s5125_s7 }
 0xe0e   :  { %2860 = vrot.lane.b32.xlu0 %v7000_v49, %s5126_s8 }
 0xe0f   :  { %2862 = vrot.lane.b32.xlu1 %v7003_v6, %s5126_s8 }
 0xe12   :  { %2864 = vrot.lane.b32.xlu0 %v7010_v54, %s5126_s8 }
 0xe13   :  { %2866 = vrot.lane.b32.xlu1 %v7012_v24, %s5126_s8 }
 0xe16   :  { %2876 = vrot.lane.b32.xlu0 %v7000_v49, %s5127_s9 }
 0xe17   :  { %2878 = vrot.lane.b32.xlu1 %v7003_v6, %s5127_s9 }
 0xe1a   :  { %2880 = vrot.lane.b32.xlu0 %v7010_v54, %s5127_s9 }
 0xe1b   :  { %2882 = vrot.lane.b32.xlu1 %v7012_v24, %s5127_s9 }
 0xe1e   :  { %2892 = vrot.lane.b32.xlu0 %v7000_v49, %s5128_s10 }
 0xe1f   :  { %2894 = vrot.lane.b32.xlu1 %v7003_v6, %s5128_s10 }
 0xe22   :  { %2896 = vrot.lane.b32.xlu0 %v7010_v54, %s5128_s10 }
 0xe23   :  { %2898 = vrot.lane.b32.xlu1 %v7012_v24, %s5128_s10 }
 0xe26   :  { %2908 = vrot.lane.b32.xlu0 %v7000_v49, %s5129_s11 }
 0xe27   :  { %2910 = vrot.lane.b32.xlu1 %v7003_v6, %s5129_s11 }
 0xe2a   :  { %2912 = vrot.lane.b32.xlu0 %v7010_v54, %s5129_s11 }
 0xe2b   :  { %2914 = vrot.lane.b32.xlu1 %v7012_v24, %s5129_s11 }
 0xe2e   :  { %2924 = vrot.lane.b32.xlu0 %v7000_v49, %s5132_s12 }
 0xe2f   :  { %2926 = vrot.lane.b32.xlu1 %v7003_v6, %s5132_s12 }
 0xe32   :  { %2928 = vrot.lane.b32.xlu0 %v7010_v54, %s5132_s12 }
 0xe33   :  { %2930 = vrot.lane.b32.xlu1 %v7012_v24, %s5132_s12 }
 0xe36   :  { %2944 = vperm.xlu0 %5109, %v4596_v5  }
 0xe68   :  { %v2813_v1 = vpop.permute.xlu0 %2812 }
 0xe69   :  { %v2815_v22 = vpop.permute.xlu1 %2814 }
 0xe6a   :  { %v2822_v13 = vsel %vm50_vm0, %v2813_v1, %v2815_v22 }
 0xe6b   :  { %v2825_v23 = vmul.f32 %v2822_v13, %v5276_v20 }
 0xe6c   :  { %v2817_v3 = vpop.permute.xlu0 %2816 }
 0xe6d   :  { %v2819_v28 = vpop.permute.xlu1 %2818  ;;  %v2821_v17 = vsel %vm50_vm0, %v2815_v22, %v2817_v3 }
 0xe6e   :  { %v2820_v15 = vsel %vm50_vm0, %v2817_v3, %v2819_v28  ;;  %v2823_v57 = vsel %vm50_vm0, %v2819_v28, %v2813_v1  ;;  %v2826_v19 = vmul.f32 %v2821_v17, %v5300_v31 }
 0xe6f   :  { %v2824_v7 = vmul.f32 %v2823_v57, %v5284_v25  ;;  %v2827_v14 = vmul.f32 %v2820_v15, %v5290_v27 }
 0xe70   :  { %v2829_v34 = vpop.permute.xlu0 %2828 }
 0xe71   :  { %v2831_v46 = vpop.permute.xlu1 %2830 }
 0xe72   :  { %v2838_v12 = vsel %vm88_vm1, %v2829_v34, %v2831_v46 }
 0xe73   :  { %v2841_v29 = vmul.f32 %v2838_v12, %v5279_v21 }
 0xe74   :  { %v2833_v53 = vpop.permute.xlu0 %2832 }
 0xe75   :  { %v2837_v52 = vsel %vm88_vm1, %v2831_v46, %v2833_v53  ;;  %v2835_v55 = vpop.permute.xlu1 %2834  ;;  %v4907_v0 = vpack.c.bf16 %v2841_v29, %v2825_v23 }
 0xe76   :  { %v2842_v2 = vmul.f32 %v2837_v52, %v5307_v35  ;;  %v2836_v18 = vsel %vm88_vm1, %v2833_v53, %v2835_v55  ;;  %v2839_v56 = vsel %vm88_vm1, %v2835_v55, %v2829_v34 }
 0xe77   :  { %v2840_v60 = vmul.f32 %v2839_v56, %v5287_v26  ;;  %v2843_v8 = vmul.f32 %v2836_v18, %v5297_v30  ;;  %4908 = vmatprep.subr.bf16.mxu0 %v4907_v0 }
 0xe78   :  { %v2845_v5 = vpop.permute.xlu0 %2844  ;;  %v4925_v28 = vpack.c.bf16 %v2842_v2, %v2826_v19 }
 0xe79   :  { %v4909_v1 = vpack.c.bf16 %v2840_v60, %v2824_v7  ;;  %v2847_v22 = vpop.permute.xlu1 %2846  ;;  %v4923_v3 = vpack.c.bf16 %v2843_v8, %v2827_v14 }
 0xe7a   :  { %v2854_v46 = vsel %vm126_vm2, %v2845_v5, %v2847_v22 }
 0xe7b   :  { %4910 = vmatpush1.bf16.msra.mxu0 %v4909_v1  ;;  %4924 = vmatprep.subr.bf16.mxu1 %v4923_v3  ;;  %v2857_v15 = vmul.f32 %v2854_v46, %v5332_v58 }
 0xe7c   :  { %4926 = vmatpush1.bf16.msra.mxu1 %v4925_v28  ;;  %v2849_v13 = vpop.permute.xlu0 %2848 }
 0xe7d   :  { %v2851_v34 = vpop.permute.xlu1 %2850  ;;  %v2853_v55 = vsel %vm126_vm2, %v2847_v22, %v2849_v13 }
 0xe7e   :  { %v2852_v53 = vsel %vm126_vm2, %v2849_v13, %v2851_v34  ;;  %v2855_v17 = vsel %vm126_vm2, %v2851_v34, %v2845_v5  ;;  %v2858_v1 = vmul.f32 %v2853_v55, %v5343_v62 }
 0xe7f   :  { %v2856_v60 = vmul.f32 %v2855_v17, %v5340_v61  ;;  %v2859_v8 = vmul.f32 %v2852_v53, %v5346_v63 }
 0xe80   :  { %v2861_v12 = vpop.permute.xlu0 %2860 }
 0xe81   :  { %v2863_v23 = vpop.permute.xlu1 %2862 }
 0xe82   :  { %v2870_v29 = vsel %vm164_vm3, %v2861_v12, %v2863_v23 }
 0xe83   :  { %v2873_v57 = vmul.f32 %v2870_v29, %v5335_v59 }
 0xe84   :  { %v2865_v52 = vpop.permute.xlu0 %2864 }
 0xe85   :  { %v2869_v0 = vsel %vm164_vm3, %v2863_v23, %v2865_v52  ;;  %v2867_v2 = vpop.permute.xlu1 %2866  ;;  %v4911_v18 = vpack.c.bf16 %v2873_v57, %v2857_v15 }
 0xe86   :  { %v2874_v56 = vmul.f32 %v2869_v0, %v5356_v10  ;;  %v2868_v7 = vsel %vm164_vm3, %v2865_v52, %v2867_v2  ;;  %v2871_v14 = vsel %vm164_vm3, %v2867_v2, %v2861_v12 }
 0xe87   :  { %v2872_v19 = vmul.f32 %v2871_v14, %v5353_v9  ;;  %v2875_v5 = vmul.f32 %v2868_v7, %v5363_v16  ;;  %4912 = vmatprep.subr.bf16.mxu0 %v4911_v18 }
 0xe88   :  { %v2877_v22 = vpop.permute.xlu0 %2876  ;;  %v4929_v34 = vpack.c.bf16 %v2874_v56, %v2858_v1 }
 0xe89   :  { %v4913_v3 = vpack.c.bf16 %v2872_v19, %v2856_v60  ;;  %v2879_v28 = vpop.permute.xlu1 %2878  ;;  %v4927_v13 = vpack.c.bf16 %v2875_v5, %v2859_v8 }
 0xe8a   :  { %v2886_v46 = vsel %vm202_vm4, %v2877_v22, %v2879_v28 }
 0xe8b   :  { %4914 = vmatpush1.bf16.msra.mxu0 %v4913_v3  ;;  %4928 = vmatprep.subr.bf16.mxu1 %v4927_v13  ;;  %v2888_v23 = vmul.f32 %v2886_v46, %v5384_v47 }
 0xe8c   :  { %4930 = vmatpush1.bf16.msra.mxu1 %v4929_v34  ;;  %v2881_v12 = vpop.permute.xlu0 %2880 }
 0xe8d   :  { %v2885_v29 = vsel %vm202_vm4, %v2879_v28, %v2881_v12  ;;  %v2883_v15 = vpop.permute.xlu1 %2882  ;;  %v4917_v18 = vpack.c.bf16 %v2888_v23, %v7000_v49 }
 0xe8e   :  { %v2889_v57 = vmul.f32 %v2885_v29, %v5392_v50  ;;  %v2884_v53 = vsel %vm202_vm4, %v2881_v12, %v2883_v15  ;;  %v2887_v17 = vsel %vm202_vm4, %v2883_v15, %v2877_v22 }
 0xe8f   :  { %v2890_v52 = vmul.f32 %v2884_v53, %v5395_v51  ;;  %v2891_v55 = vmul.f32 %v2887_v17, %v5387_v48 }
 0xe90   :  { %v2893_v0 = vpop.permute.xlu0 %2892  ;;  %v4915_v2 = vpack.c.bf16 %v2889_v57, %v7003_v6 }
 0xe91   :  { %v4933_v56 = vpack.c.bf16 %v2890_v52, %v7010_v54  ;;  %v2895_v7 = vpop.permute.xlu1 %2894  ;;  %v4931_v14 = vpack.c.bf16 %v2891_v55, %v7012_v24 }
 0xe92   :  { %4916 = vmatprep.subr.bf16.mxu0 %v4915_v2  ;;  %v2902_v1 = vsel %vm240_vm6, %v2893_v0, %v2895_v7 }
 0xe93   :  { %4918 = vmatpush1.bf16.msra.mxu0 %v4917_v18  ;;  %4932 = vmatprep.subr.bf16.mxu1 %v4931_v14  ;;  %v2904_v3 = vmul.f32 %v2902_v1, %v5447_v45 }
 0xe94   :  { %4934 = vmatpush1.bf16.msra.mxu1 %v4933_v56  ;;  %v2897_v60 = vpop.permute.xlu0 %2896 }
 0xe95   :  { %v2899_v8 = vpop.permute.xlu1 %2898  ;;  %v2901_v49 = vsel %vm240_vm6, %v2895_v7, %v2897_v60 }
 0xe96   :  { %v2900_v54 = vsel %vm240_vm6, %v2897_v60, %v2899_v8  ;;  %v2903_v24 = vsel %vm240_vm6, %v2899_v8, %v2893_v0  ;;  %v2905_v46 = vmul.f32 %v2901_v49, %v5423_v33 }
 0xe97   :  { %v2906_v15 = vmul.f32 %v2900_v54, %v5428_v38  ;;  %v2907_v57 = vmul.f32 %v2903_v24, %v5420_v32  ;;  %v4595_v24 = vld [vmem:[%s8155_s1 + $0x48] sm:$0xff] }
 0xe98   :  { %v2909_v19 = vpop.permute.xlu0 %2908 }
 0xe99   :  { %v2911_v5 = vpop.permute.xlu1 %2910 }
 0xe9a   :  { %v2918_v6 = vsel %vm278_vm5, %v2909_v19, %v2911_v5 }
 0xe9b   :  { %v2920_v28 = vmul.f32 %v2918_v6, %v5433_v40 }
 0xe9c   :  { %v2913_v22 = vpop.permute.xlu0 %2912 }
 0xe9d   :  { %v2917_v13 = vsel %vm278_vm5, %v2911_v5, %v2913_v22  ;;  %v2915_v34 = vpop.permute.xlu1 %2914  ;;  %v4921_v0 = vpack.c.bf16 %v2920_v28, %v2904_v3 }
 0xe9e   :  { %v2921_v12 = vmul.f32 %v2917_v13, %v5441_v43  ;;  %v2916_v23 = vsel %vm278_vm5, %v2913_v22, %v2915_v34  ;;  %v2919_v29 = vsel %vm278_vm5, %v2915_v34, %v2909_v19 }
 0xe9f   :  { %v2922_v53 = vmul.f32 %v2916_v23, %v5444_v44  ;;  %v2923_v17 = vmul.f32 %v2919_v29, %v5438_v42  ;;  %v5115_v29 = vld [vmem:[%s8156_s4] sm:$0xff] }
 0xea0   :  { %v2925_v52 = vpop.permute.xlu0 %2924  ;;  %v4919_v55 = vpack.c.bf16 %v2921_v12, %v2905_v46 }
 0xea1   :  { %v4937_v2 = vpack.c.bf16 %v2922_v53, %v2906_v15  ;;  %v2927_v18 = vpop.permute.xlu1 %2926  ;;  %v4935_v56 = vpack.c.bf16 %v2923_v17, %v2907_v57  ;;  %v5116_v53 = vld [vmem:[%s8156_s4 + $0x8] sm:$0xff] }
 0xea2   :  { %4920 = vmatprep.subr.bf16.mxu0 %v4919_v55  ;;  %v2934_v7 = vsel %vm316_vm7, %v2925_v52, %v2927_v18 }
 0xea3   :  { %4922 = vmatpush1.bf16.msra.mxu0 %v4921_v0  ;;  %4936 = vmatprep.subr.bf16.mxu1 %v4935_v56  ;;  %v2936_v6 = vmul.f32 %v2934_v7, %v5481_v41  ;;  %v5118_v0 = vld [vmem:[%s8156_s4 + $0x18] sm:$0xff] }
 0xea4   :  { %4938 = vmatpush1.bf16.msra.mxu1 %v4937_v2  ;;  %v2929_v14 = vpop.permute.xlu0 %2928 }
 0xea5   :  { %v2933_v60 = vsel %vm316_vm7, %v2927_v18, %v2929_v14  ;;  %v2931_v8 = vpop.permute.xlu1 %2930  ;;  %v4600_v18 = vld [vmem:[%s8153_s2 + $0x50] sm:$0xff] }
 0xea6   :  { %v2932_v19 = vsel %vm316_vm7, %v2929_v14, %v2931_v8  ;;  %v2935_v5 = vsel %vm316_vm7, %v2931_v8, %v2925_v52  ;;  %v2937_v1 = vmul.f32 %v2933_v60, %v5472_v36  ;;  %v5117_v52 = vld [vmem:[%s8156_s4 + $0x10] sm:$0xff] }
 0xea7   :  { %v2938_v49 = vmul.f32 %v2932_v19, %v5478_v39  ;;  %v2939_v54 = vmul.f32 %v2935_v5, %v5475_v37 }
 0xea8   :  { %2966 = vmatprep.subr.mxu0 %v2937_v1 }
 0xea9   :  { %2967 = vmatpush1.msra.mxu0 %v2936_v6  ;;  %3037 = vmatprep.subr.mxu1 %v2939_v54 }
 0xeaa   :  { %4597 = vmatmul.mubr.msk.f32.vlgmr.msra.gmra.mrb[18].mxu0 %vm352_vm8, %v4595_v24  ;;  %3038 = vmatpush1.msra.mxu1 %v2938_v49 }
 0xeab   :  { %4598 = vmatmul.mubr.msk.f32.vlgmr.msra.gmra.mrb[18].mxu1 %vm352_vm8, %v4595_v24  ;;  %3304 = vmatprep.mubr.f32.mxu0 %v5130_v4 }
 0xeac   :  { %3375 = vmatprep.mubr.f32.mxu1 %v5130_v4 }
 0xeb5   :  { %v2945_v22 = vpop.permute.xlu0 %2944 }
 0xf7d   :  { %v3016_v3 = vpop.f32.mrb[18].mxu0 }
 0xf7e   :  { %v3017_v28 = vadd.f32 %v3016_v3, %v2945_v22  ;;  %v3018_v13 = vpop.f32.mrb[19].mxu0  ;;  %v3087_v34 = vpop.f32.mrb[18].mxu1 }
 0xf7f   :  { %v3019_v46 = vadd.f32 %v3018_v13, %v2945_v22  ;;  %v3088_v12 = vadd.f32 %v3087_v34, %v2945_v22  ;;  %v3089_v23 = vpop.f32.mrb[19].mxu1 }
 0xf80   :  { %v7187_v15 = vadd.f32 %v5115_v29, %v3017_v28  ;;  %v3090_v57 = vadd.f32 %v3089_v23, %v2945_v22 }
 0xf81   :  { %v7192_v17 = vadd.f32 %v5116_v53, %v3019_v46  ;;  %v7197_v55 = vadd.f32 %v5117_v52, %v3088_v12 }
 0xf82   :  { %3096 = vst [vmem:[%s8157_s5] sm:$0xff] %v7187_v15  ;;  %v7206_v2 = vadd.f32 %v5118_v0, %v3090_v57  ;;  %3102 = vrot.lane.b32.xlu1 %v7187_v15, %s5123_s25 }
 0xf83   :  { %3097 = vst [vmem:[%s8157_s5 + $0x8] sm:$0xff] %v7192_v17  ;;  %3098 = vst [vmem:[%s8157_s5 + $0x10] sm:$0xff] %v7197_v55  ;;  %3104 = vrot.lane.b32.xlu0 %v7192_v17, %s5123_s25 }
 0xf84   :  { %3099 = vst [vmem:[%s8157_s5 + $0x18] sm:$0xff] %v7206_v2 }
 0xf86   :  { %3106 = vrot.lane.b32.xlu1 %v7197_v55, %s5123_s25 }
 0xf87   :  { %3108 = vrot.lane.b32.xlu0 %v7206_v2, %s5123_s25 }
 0xf8a   :  { %3118 = vrot.lane.b32.xlu1 %v7187_v15, %s5124_s30 }
 0xf8b   :  { %3120 = vrot.lane.b32.xlu0 %v7192_v17, %s5124_s30 }
 0xf8e   :  { %3122 = vrot.lane.b32.xlu1 %v7197_v55, %s5124_s30 }
 0xf8f   :  { %3124 = vrot.lane.b32.xlu0 %v7206_v2, %s5124_s30 }
 0xf92   :  { %3134 = vrot.lane.b32.xlu1 %v7187_v15, %s5125_s7 }
 0xf93   :  { %3136 = vrot.lane.b32.xlu0 %v7192_v17, %s5125_s7 }
 0xf96   :  { %3138 = vrot.lane.b32.xlu1 %v7197_v55, %s5125_s7 }
 0xf97   :  { %3140 = vrot.lane.b32.xlu0 %v7206_v2, %s5125_s7 }
 0xf9a   :  { %3150 = vrot.lane.b32.xlu1 %v7187_v15, %s5126_s8 }
 0xf9b   :  { %3152 = vrot.lane.b32.xlu0 %v7192_v17, %s5126_s8 }
 0xf9e   :  { %3154 = vrot.lane.b32.xlu1 %v7197_v55, %s5126_s8 }
 0xf9f   :  { %3156 = vrot.lane.b32.xlu0 %v7206_v2, %s5126_s8 }
 0xfa2   :  { %3166 = vrot.lane.b32.xlu1 %v7187_v15, %s5127_s9 }
 0xfa3   :  { %3168 = vrot.lane.b32.xlu0 %v7192_v17, %s5127_s9 }
 0xfa6   :  { %3170 = vrot.lane.b32.xlu1 %v7197_v55, %s5127_s9 }
 0xfa7   :  { %3172 = vrot.lane.b32.xlu0 %v7206_v2, %s5127_s9 }
 0xfaa   :  { %3182 = vrot.lane.b32.xlu1 %v7187_v15, %s5128_s10 }
 0xfab   :  { %3184 = vrot.lane.b32.xlu0 %v7192_v17, %s5128_s10 }
 0xfae   :  { %3186 = vrot.lane.b32.xlu1 %v7197_v55, %s5128_s10 }
 0xfaf   :  { %3188 = vrot.lane.b32.xlu0 %v7206_v2, %s5128_s10 }
 0xfb2   :  { %3198 = vrot.lane.b32.xlu1 %v7187_v15, %s5129_s11 }
 0xfb3   :  { %3200 = vrot.lane.b32.xlu0 %v7192_v17, %s5129_s11 }
 0xfb6   :  { %3202 = vrot.lane.b32.xlu1 %v7197_v55, %s5129_s11 }
 0xfb7   :  { %3204 = vrot.lane.b32.xlu0 %v7206_v2, %s5129_s11 }
 0xfba   :  { %3214 = vrot.lane.b32.xlu1 %v7187_v15, %s5132_s12 }
 0xfbb   :  { %3216 = vrot.lane.b32.xlu0 %v7192_v17, %s5132_s12 }
 0xfbe   :  { %3218 = vrot.lane.b32.xlu1 %v7197_v55, %s5132_s12 }
 0xfbf   :  { %3220 = vrot.lane.b32.xlu0 %v7206_v2, %s5132_s12 }
 0xfc2   :  { %3234 = vperm.xlu1 %5110, %v4600_v18  }
 0xff4   :  { %v3103_v56 = vpop.permute.xlu1 %3102 }
 0xff5   :  { %v3105_v7 = vpop.permute.xlu0 %3104 }
 0xff6   :  { %v3112_v8 = vsel %vm50_vm0, %v3103_v56, %v3105_v7 }
 0xff7   :  { %v3115_v6 = vmul.f32 %v3112_v8, %v5276_v20 }
 0xff8   :  { %v3107_v14 = vpop.permute.xlu1 %3106 }
 0xff9   :  { %v3109_v60 = vpop.permute.xlu0 %3108  ;;  %v3111_v3 = vsel %vm50_vm0, %v3105_v7, %v3107_v14 }
 0xffa   :  { %v3110_v54 = vsel %vm50_vm0, %v3107_v14, %v3109_v60  ;;  %v3113_v24 = vsel %vm50_vm0, %v3109_v60, %v3103_v56  ;;  %v3116_v0 = vmul.f32 %v3111_v3, %v5300_v31 }
 0xffb   :  { %v3114_v29 = vmul.f32 %v3113_v24, %v5284_v25  ;;  %v3117_v57 = vmul.f32 %v3110_v54, %v5290_v27 }
 0xffc   :  { %v3119_v19 = vpop.permute.xlu1 %3118 }
 0xffd   :  { %v3121_v5 = vpop.permute.xlu0 %3120 }
 0xffe   :  { %v3128_v1 = vsel %vm88_vm1, %v3119_v19, %v3121_v5 }
 0xfff   :  { %v3131_v49 = vmul.f32 %v3128_v1, %v5279_v21 }
0x1000   :  { %v3123_v22 = vpop.permute.xlu1 %3122 }
0x1001   :  { %v3127_v28 = vsel %vm88_vm1, %v3121_v5, %v3123_v22  ;;  %v3125_v13 = vpop.permute.xlu0 %3124  ;;  %v4939_v34 = vpack.c.bf16 %v3131_v49, %v3115_v6 }
0x1002   :  { %v3132_v46 = vmul.f32 %v3127_v28, %v5307_v35  ;;  %v3126_v12 = vsel %vm88_vm1, %v3123_v22, %v3125_v13  ;;  %v3129_v23 = vsel %vm88_vm1, %v3125_v13, %v3119_v19 }
0x1003   :  { %v3130_v53 = vmul.f32 %v3129_v23, %v5287_v26  ;;  %v3133_v52 = vmul.f32 %v3126_v12, %v5297_v30  ;;  %4940 = vmatprep.subr.bf16.mxu0 %v4939_v34 }
0x1004   :  { %v3135_v18 = vpop.permute.xlu1 %3134  ;;  %v4957_v60 = vpack.c.bf16 %v3132_v46, %v3116_v0 }
0x1005   :  { %v4941_v56 = vpack.c.bf16 %v3130_v53, %v3114_v29  ;;  %v3137_v7 = vpop.permute.xlu0 %3136  ;;  %v4955_v14 = vpack.c.bf16 %v3133_v52, %v3117_v57 }
0x1006   :  { %v3144_v5 = vsel %vm126_vm2, %v3135_v18, %v3137_v7 }
0x1007   :  { %4942 = vmatpush1.bf16.msra.mxu0 %v4941_v56  ;;  %4956 = vmatprep.subr.bf16.mxu1 %v4955_v14  ;;  %v3147_v54 = vmul.f32 %v3144_v5, %v5332_v58 }
0x1008   :  { %4958 = vmatpush1.bf16.msra.mxu1 %v4957_v60  ;;  %v3139_v8 = vpop.permute.xlu1 %3138 }
0x1009   :  { %v3141_v19 = vpop.permute.xlu0 %3140  ;;  %v3143_v13 = vsel %vm126_vm2, %v3137_v7, %v3139_v8 }
0x100a   :  { %v3142_v22 = vsel %vm126_vm2, %v3139_v8, %v3141_v19  ;;  %v3145_v3 = vsel %vm126_vm2, %v3141_v19, %v3135_v18  ;;  %v3148_v56 = vmul.f32 %v3143_v13, %v5343_v62 }
0x100b   :  { %v3146_v53 = vmul.f32 %v3145_v3, %v5340_v61  ;;  %v3149_v52 = vmul.f32 %v3142_v22, %v5346_v63 }
0x100c   :  { %v3151_v1 = vpop.permute.xlu1 %3150 }
0x100d   :  { %v3153_v6 = vpop.permute.xlu0 %3152 }
0x100e   :  { %v3160_v49 = vsel %vm164_vm3, %v3151_v1, %v3153_v6 }
0x100f   :  { %v3163_v24 = vmul.f32 %v3160_v49, %v5335_v59 }
0x1010   :  { %v3155_v28 = vpop.permute.xlu1 %3154 }
0x1011   :  { %v3159_v34 = vsel %vm164_vm3, %v3153_v6, %v3155_v28  ;;  %v3157_v46 = vpop.permute.xlu0 %3156  ;;  %v4943_v12 = vpack.c.bf16 %v3163_v24, %v3147_v54 }
0x1012   :  { %v3164_v23 = vmul.f32 %v3159_v34, %v5356_v10  ;;  %v3158_v29 = vsel %vm164_vm3, %v3155_v28, %v3157_v46  ;;  %v3161_v57 = vsel %vm164_vm3, %v3157_v46, %v3151_v1 }
0x1013   :  { %v3162_v0 = vmul.f32 %v3161_v57, %v5353_v9  ;;  %v3165_v18 = vmul.f32 %v3158_v29, %v5363_v16  ;;  %4944 = vmatprep.subr.bf16.mxu0 %v4943_v12 }
0x1014   :  { %v3167_v7 = vpop.permute.xlu1 %3166  ;;  %v4961_v19 = vpack.c.bf16 %v3164_v23, %v3148_v56 }
0x1015   :  { %v4945_v14 = vpack.c.bf16 %v3162_v0, %v3146_v53  ;;  %v3169_v60 = vpop.permute.xlu0 %3168  ;;  %v4959_v8 = vpack.c.bf16 %v3165_v18, %v3149_v52 }
0x1016   :  { %v3176_v5 = vsel %vm202_vm4, %v3167_v7, %v3169_v60 }
0x1017   :  { %4946 = vmatpush1.bf16.msra.mxu0 %v4945_v14  ;;  %4960 = vmatprep.subr.bf16.mxu1 %v4959_v8  ;;  %v3178_v6 = vmul.f32 %v3176_v5, %v5384_v47 }
0x1018   :  { %4962 = vmatpush1.bf16.msra.mxu1 %v4961_v19  ;;  %v3171_v1 = vpop.permute.xlu1 %3170 }
0x1019   :  { %v3175_v49 = vsel %vm202_vm4, %v3169_v60, %v3171_v1  ;;  %v3173_v54 = vpop.permute.xlu0 %3172  ;;  %v4949_v12 = vpack.c.bf16 %v3178_v6, %v7187_v15 }
0x101a   :  { %v3179_v24 = vmul.f32 %v3175_v49, %v5392_v50  ;;  %v3174_v22 = vsel %vm202_vm4, %v3171_v1, %v3173_v54  ;;  %v3177_v3 = vsel %vm202_vm4, %v3173_v54, %v3167_v7 }
0x101b   :  { %v3180_v28 = vmul.f32 %v3174_v22, %v5395_v51  ;;  %v3181_v13 = vmul.f32 %v3177_v3, %v5387_v48 }
0x101c   :  { %v3183_v34 = vpop.permute.xlu1 %3182  ;;  %v4947_v46 = vpack.c.bf16 %v3179_v24, %v7192_v17 }
0x101d   :  { %v4965_v23 = vpack.c.bf16 %v3180_v28, %v7197_v55  ;;  %v3185_v29 = vpop.permute.xlu0 %3184  ;;  %v4963_v57 = vpack.c.bf16 %v3181_v13, %v7206_v2 }
0x101e   :  { %4948 = vmatprep.subr.bf16.mxu0 %v4947_v46  ;;  %v3192_v56 = vsel %vm240_vm6, %v3183_v34, %v3185_v29 }
0x101f   :  { %4950 = vmatpush1.bf16.msra.mxu0 %v4949_v12  ;;  %4964 = vmatprep.subr.bf16.mxu1 %v4963_v57  ;;  %v3194_v5 = vmul.f32 %v3192_v56, %v5447_v45 }
0x1020   :  { %4966 = vmatpush1.bf16.msra.mxu1 %v4965_v23  ;;  %v3187_v53 = vpop.permute.xlu1 %3186 }
0x1021   :  { %v3189_v52 = vpop.permute.xlu0 %3188  ;;  %v3191_v14 = vsel %vm240_vm6, %v3185_v29, %v3187_v53 }
0x1022   :  { %v3190_v60 = vsel %vm240_vm6, %v3187_v53, %v3189_v52  ;;  %v3193_v8 = vsel %vm240_vm6, %v3189_v52, %v3183_v34  ;;  %v3195_v54 = vmul.f32 %v3191_v14, %v5423_v33 }
0x1023   :  { %v3196_v28 = vmul.f32 %v3190_v60, %v5428_v38  ;;  %v3197_v13 = vmul.f32 %v3193_v8, %v5420_v32 }
0x1024   :  { %v3199_v0 = vpop.permute.xlu1 %3198 }
0x1025   :  { %v3201_v18 = vpop.permute.xlu0 %3200 }
0x1026   :  { %v3208_v7 = vsel %vm278_vm5, %v3199_v0, %v3201_v18 }
0x1027   :  { %v3210_v1 = vmul.f32 %v3208_v7, %v5433_v40 }
0x1028   :  { %v3203_v19 = vpop.permute.xlu1 %3202 }
0x1029   :  { %v3207_v6 = vsel %vm278_vm5, %v3201_v18, %v3203_v19  ;;  %v3205_v49 = vpop.permute.xlu0 %3204  ;;  %v4953_v29 = vpack.c.bf16 %v3210_v1, %v3194_v5 }
0x102a   :  { %v3211_v24 = vmul.f32 %v3207_v6, %v5441_v43  ;;  %v3206_v22 = vsel %vm278_vm5, %v3203_v19, %v3205_v49  ;;  %v3209_v3 = vsel %vm278_vm5, %v3205_v49, %v3199_v0  ;;  %v4599_v6 = vld [vmem:[%s8155_s1 + $0x50] sm:$0xff] }
0x102b   :  { %v3212_v34 = vmul.f32 %v3206_v22, %v5444_v44  ;;  %v3213_v46 = vmul.f32 %v3209_v3, %v5438_v42 }
0x102c   :  { %v3215_v12 = vpop.permute.xlu1 %3214  ;;  %v4951_v23 = vpack.c.bf16 %v3211_v24, %v3195_v54 }
0x102d   :  { %v4969_v57 = vpack.c.bf16 %v3212_v34, %v3196_v28  ;;  %v3217_v53 = vpop.permute.xlu0 %3216  ;;  %v4967_v52 = vpack.c.bf16 %v3213_v46, %v3197_v13 }
0x102e   :  { %4952 = vmatprep.subr.bf16.mxu0 %v4951_v23  ;;  %v3224_v0 = vsel %vm316_vm7, %v3215_v12, %v3217_v53 }
0x102f   :  { %4954 = vmatpush1.bf16.msra.mxu0 %v4953_v29  ;;  %4968 = vmatprep.subr.bf16.mxu1 %v4967_v52  ;;  %v3226_v19 = vmul.f32 %v3224_v0, %v5481_v41 }
0x1030   :  { %4970 = vmatpush1.bf16.msra.mxu1 %v4969_v57  ;;  %v3219_v18 = vpop.permute.xlu1 %3218 }
0x1031   :  { %v3223_v56 = vsel %vm316_vm7, %v3217_v53, %v3219_v18  ;;  %v3221_v7 = vpop.permute.xlu0 %3220  ;;  %v4604_v53 = vld [vmem:[%s8153_s2 + $0x58] sm:$0xff] }
0x1032   :  { %v3222_v14 = vsel %vm316_vm7, %v3219_v18, %v3221_v7  ;;  %v3225_v60 = vsel %vm316_vm7, %v3221_v7, %v3215_v12  ;;  %v3227_v8 = vmul.f32 %v3223_v56, %v5472_v36 }
0x1033   :  { %v3228_v5 = vmul.f32 %v3222_v14, %v5478_v39  ;;  %v3229_v1 = vmul.f32 %v3225_v60, %v5475_v37 }
0x1034   :  { %3256 = vmatprep.subr.mxu0 %v3227_v8 }
0x1035   :  { %3257 = vmatpush1.msra.mxu0 %v3226_v19  ;;  %3327 = vmatprep.subr.mxu1 %v3229_v1 }
0x1036   :  { %4601 = vmatmul.mubr.msk.f32.vlgmr.msra.gmra.mrb[20].mxu0 %vm352_vm8, %v4599_v6  ;;  %3328 = vmatpush1.msra.mxu1 %v3228_v5 }
0x1037   :  { %4602 = vmatmul.mubr.msk.f32.vlgmr.msra.gmra.mrb[20].mxu1 %vm352_vm8, %v4599_v6  ;;  %3590 = vmatprep.mubr.f32.mxu0 %v5130_v4 }
0x1038   :  { %3661 = vmatprep.mubr.f32.mxu1 %v5130_v4 }
0x1041   :  { %v3235_v49 = vpop.permute.xlu1 %3234 }
0x1109   :  { %v3306_v54 = vpop.f32.mrb[20].mxu0 }
0x110a   :  { %v3307_v24 = vadd.f32 %v3306_v54, %v3235_v49  ;;  %v3308_v22 = vpop.f32.mrb[21].mxu0  ;;  %v3377_v3 = vpop.f32.mrb[20].mxu1 }
0x110b   :  { %v3309_v28 = vadd.f32 %v3308_v22, %v3235_v49  ;;  %v3379_v13 = vpop.f32.mrb[21].mxu1  ;;  %v3378_v46 = vadd.f32 %v3377_v3, %v3235_v49 }
0x110c   :  { %v7394_v34 = vmax.f32 %v3307_v24, 0.0  ;;  %v3380_v23 = vadd.f32 %v3379_v13, %v3235_v49 }
0x110d   :  { %v7396_v12 = vmax.f32 %v3309_v28, 0.0  ;;  %v7402_v29 = vmax.f32 %v3378_v46, 0.0 }
0x110e   :  { %3388 = vrot.lane.b32.xlu0 %v7394_v34, %s5123_s25  ;;  %v7404_v57 = vmax.f32 %v3380_v23, 0.0 }
0x110f   :  { %3390 = vrot.lane.b32.xlu1 %v7396_v12, %s5123_s25 }
0x1112   :  { %3392 = vrot.lane.b32.xlu0 %v7402_v29, %s5123_s25 }
0x1113   :  { %3394 = vrot.lane.b32.xlu1 %v7404_v57, %s5123_s25 }
0x1116   :  { %3404 = vrot.lane.b32.xlu0 %v7394_v34, %s5124_s30 }
0x1117   :  { %3406 = vrot.lane.b32.xlu1 %v7396_v12, %s5124_s30 }
0x111a   :  { %3408 = vrot.lane.b32.xlu0 %v7402_v29, %s5124_s30 }
0x111b   :  { %3410 = vrot.lane.b32.xlu1 %v7404_v57, %s5124_s30 }
0x111e   :  { %3420 = vrot.lane.b32.xlu0 %v7394_v34, %s5125_s7 }
0x111f   :  { %3422 = vrot.lane.b32.xlu1 %v7396_v12, %s5125_s7 }
0x1122   :  { %3424 = vrot.lane.b32.xlu0 %v7402_v29, %s5125_s7 }
0x1123   :  { %3426 = vrot.lane.b32.xlu1 %v7404_v57, %s5125_s7 }
0x1126   :  { %3436 = vrot.lane.b32.xlu0 %v7394_v34, %s5126_s8 }
0x1127   :  { %3438 = vrot.lane.b32.xlu1 %v7396_v12, %s5126_s8 }
0x112a   :  { %3440 = vrot.lane.b32.xlu0 %v7402_v29, %s5126_s8 }
0x112b   :  { %3442 = vrot.lane.b32.xlu1 %v7404_v57, %s5126_s8 }
0x112e   :  { %3452 = vrot.lane.b32.xlu0 %v7394_v34, %s5127_s9 }
0x112f   :  { %3454 = vrot.lane.b32.xlu1 %v7396_v12, %s5127_s9 }
0x1132   :  { %3456 = vrot.lane.b32.xlu0 %v7402_v29, %s5127_s9 }
0x1133   :  { %3458 = vrot.lane.b32.xlu1 %v7404_v57, %s5127_s9 }
0x1136   :  { %3468 = vrot.lane.b32.xlu0 %v7394_v34, %s5128_s10 }
0x1137   :  { %3470 = vrot.lane.b32.xlu1 %v7396_v12, %s5128_s10 }
0x113a   :  { %3472 = vrot.lane.b32.xlu0 %v7402_v29, %s5128_s10 }
0x113b   :  { %3474 = vrot.lane.b32.xlu1 %v7404_v57, %s5128_s10 }
0x113e   :  { %3484 = vrot.lane.b32.xlu0 %v7394_v34, %s5129_s11 }
0x113f   :  { %3486 = vrot.lane.b32.xlu1 %v7396_v12, %s5129_s11 }
0x1142   :  { %3488 = vrot.lane.b32.xlu0 %v7402_v29, %s5129_s11 }
0x1143   :  { %3490 = vrot.lane.b32.xlu1 %v7404_v57, %s5129_s11 }
0x1146   :  { %3500 = vrot.lane.b32.xlu0 %v7394_v34, %s5132_s12 }
0x1147   :  { %3502 = vrot.lane.b32.xlu1 %v7396_v12, %s5132_s12 }
0x114a   :  { %3504 = vrot.lane.b32.xlu0 %v7402_v29, %s5132_s12 }
0x114b   :  { %3506 = vrot.lane.b32.xlu1 %v7404_v57, %s5132_s12 }
0x114e   :  { %3520 = vperm.xlu0 %5109, %v4604_v53  }
0x1180   :  { %v3389_v52 = vpop.permute.xlu0 %3388 }
0x1181   :  { %v3391_v0 = vpop.permute.xlu1 %3390 }
0x1182   :  { %v3398_v7 = vsel %vm50_vm0, %v3389_v52, %v3391_v0 }
0x1183   :  { %v3401_v19 = vmul.f32 %v3398_v7, %v5276_v20 }
0x1184   :  { %v3393_v18 = vpop.permute.xlu0 %3392 }
0x1185   :  { %v3395_v56 = vpop.permute.xlu1 %3394  ;;  %v3397_v54 = vsel %vm50_vm0, %v3391_v0, %v3393_v18 }
0x1186   :  { %v3396_v1 = vsel %vm50_vm0, %v3393_v18, %v3395_v56  ;;  %v3399_v6 = vsel %vm50_vm0, %v3395_v56, %v3389_v52  ;;  %v3402_v18 = vmul.f32 %v3397_v54, %v5300_v31 }
0x1187   :  { %v3400_v23 = vmul.f32 %v3399_v6, %v5284_v25  ;;  %v3403_v53 = vmul.f32 %v3396_v1, %v5290_v27 }
0x1188   :  { %v3405_v14 = vpop.permute.xlu0 %3404 }
0x1189   :  { %v3407_v60 = vpop.permute.xlu1 %3406 }
0x118a   :  { %v3414_v8 = vsel %vm88_vm1, %v3405_v14, %v3407_v60 }
0x118b   :  { %v3417_v5 = vmul.f32 %v3414_v8, %v5279_v21 }
0x118c   :  { %v3409_v49 = vpop.permute.xlu0 %3408 }
0x118d   :  { %v3413_v24 = vsel %vm88_vm1, %v3407_v60, %v3409_v49  ;;  %v3411_v22 = vpop.permute.xlu1 %3410  ;;  %v4971_v3 = vpack.c.bf16 %v3417_v5, %v3401_v19 }
0x118e   :  { %v3418_v28 = vmul.f32 %v3413_v24, %v5307_v35  ;;  %v3412_v13 = vsel %vm88_vm1, %v3409_v49, %v3411_v22  ;;  %v3415_v46 = vsel %vm88_vm1, %v3411_v22, %v3405_v14 }
0x118f   :  { %v3416_v52 = vmul.f32 %v3415_v46, %v5287_v26  ;;  %v3419_v0 = vmul.f32 %v3412_v13, %v5297_v30  ;;  %4972 = vmatprep.subr.bf16.mxu0 %v4971_v3 }
0x1190   :  { %v3421_v56 = vpop.permute.xlu0 %3420  ;;  %v4989_v19 = vpack.c.bf16 %v3418_v28, %v3402_v18 }
0x1191   :  { %v4973_v7 = vpack.c.bf16 %v3416_v52, %v3400_v23  ;;  %v3423_v60 = vpop.permute.xlu1 %3422  ;;  %v4987_v8 = vpack.c.bf16 %v3419_v0, %v3403_v53 }
0x1192   :  { %v3430_v1 = vsel %vm126_vm2, %v3421_v56, %v3423_v60 }
0x1193   :  { %4974 = vmatpush1.bf16.msra.mxu0 %v4973_v7  ;;  %4988 = vmatprep.subr.bf16.mxu1 %v4987_v8  ;;  %v3433_v54 = vmul.f32 %v3430_v1, %v5332_v58 }
0x1194   :  { %4990 = vmatpush1.bf16.msra.mxu1 %v4989_v19  ;;  %v3425_v14 = vpop.permute.xlu0 %3424 }
0x1195   :  { %v3427_v5 = vpop.permute.xlu1 %3426  ;;  %v3429_v46 = vsel %vm126_vm2, %v3423_v60, %v3425_v14 }
0x1196   :  { %v3428_v3 = vsel %vm126_vm2, %v3425_v14, %v3427_v5  ;;  %v3431_v28 = vsel %vm126_vm2, %v3427_v5, %v3421_v56  ;;  %v3434_v14 = vmul.f32 %v3429_v46, %v5343_v62 }
0x1197   :  { %v3432_v8 = vmul.f32 %v3431_v28, %v5340_v61  ;;  %v3435_v56 = vmul.f32 %v3428_v3, %v5346_v63 }
0x1198   :  { %v3437_v6 = vpop.permute.xlu0 %3436 }
0x1199   :  { %v3439_v49 = vpop.permute.xlu1 %3438 }
0x119a   :  { %v3446_v24 = vsel %vm164_vm3, %v3437_v6, %v3439_v49 }
0x119b   :  { %v3449_v22 = vmul.f32 %v3446_v24, %v5335_v59 }
0x119c   :  { %v3441_v13 = vpop.permute.xlu0 %3440 }
0x119d   :  { %v3445_v23 = vsel %vm164_vm3, %v3439_v49, %v3441_v13  ;;  %v3443_v53 = vpop.permute.xlu1 %3442  ;;  %v4975_v52 = vpack.c.bf16 %v3449_v22, %v3433_v54 }
0x119e   :  { %v3450_v0 = vmul.f32 %v3445_v23, %v5356_v10  ;;  %v3444_v18 = vsel %vm164_vm3, %v3441_v13, %v3443_v53  ;;  %v3447_v7 = vsel %vm164_vm3, %v3443_v53, %v3437_v6 }
0x119f   :  { %v3448_v19 = vmul.f32 %v3447_v7, %v5353_v9  ;;  %v3451_v60 = vmul.f32 %v3444_v18, %v5363_v16  ;;  %4976 = vmatprep.subr.bf16.mxu0 %v4975_v52 }
0x11a0   :  { %v3453_v5 = vpop.permute.xlu0 %3452  ;;  %v4993_v54 = vpack.c.bf16 %v3450_v0, %v3434_v14 }
0x11a1   :  { %v4977_v1 = vpack.c.bf16 %v3448_v19, %v3432_v8  ;;  %v3455_v49 = vpop.permute.xlu1 %3454  ;;  %v4991_v24 = vpack.c.bf16 %v3451_v60, %v3435_v56 }
0x11a2   :  { %v3462_v22 = vsel %vm202_vm4, %v3453_v5, %v3455_v49 }
0x11a3   :  { %4978 = vmatpush1.bf16.msra.mxu0 %v4977_v1  ;;  %4992 = vmatprep.subr.bf16.mxu1 %v4991_v24  ;;  %v3464_v3 = vmul.f32 %v3462_v22, %v5384_v47 }
0x11a4   :  { %4994 = vmatpush1.bf16.msra.mxu1 %v4993_v54  ;;  %v3457_v6 = vpop.permute.xlu0 %3456 }
0x11a5   :  { %v3461_v28 = vsel %vm202_vm4, %v3455_v49, %v3457_v6  ;;  %v3459_v13 = vpop.permute.xlu1 %3458  ;;  %v4981_v8 = vpack.c.bf16 %v3464_v3, %v7394_v34 }
0x11a6   :  { %v3465_v46 = vmul.f32 %v3461_v28, %v5392_v50  ;;  %v3460_v23 = vsel %vm202_vm4, %v3457_v6, %v3459_v13  ;;  %v3463_v53 = vsel %vm202_vm4, %v3459_v13, %v3453_v5 }
0x11a7   :  { %v3466_v52 = vmul.f32 %v3460_v23, %v5395_v51  ;;  %v3467_v0 = vmul.f32 %v3463_v53, %v5387_v48 }
0x11a8   :  { %v3469_v18 = vpop.permute.xlu0 %3468  ;;  %v4979_v7 = vpack.c.bf16 %v3465_v46, %v7396_v12 }
0x11a9   :  { %v4997_v56 = vpack.c.bf16 %v3466_v52, %v7402_v29  ;;  %v3471_v19 = vpop.permute.xlu1 %3470  ;;  %v4995_v60 = vpack.c.bf16 %v3467_v0, %v7404_v57 }
0x11aa   :  { %4980 = vmatprep.subr.bf16.mxu0 %v4979_v7  ;;  %v3478_v24 = vsel %vm240_vm6, %v3469_v18, %v3471_v19 }
0x11ab   :  { %4982 = vmatpush1.bf16.msra.mxu0 %v4981_v8  ;;  %4996 = vmatprep.subr.bf16.mxu1 %v4995_v60  ;;  %v3480_v22 = vmul.f32 %v3478_v24, %v5447_v45 }
0x11ac   :  { %4998 = vmatpush1.bf16.msra.mxu1 %v4997_v56  ;;  %v3473_v14 = vpop.permute.xlu0 %3472 }
0x11ad   :  { %v3475_v5 = vpop.permute.xlu1 %3474  ;;  %v3477_v34 = vsel %vm240_vm6, %v3471_v19, %v3473_v14 }
0x11ae   :  { %v3476_v29 = vsel %vm240_vm6, %v3473_v14, %v3475_v5  ;;  %v3479_v57 = vsel %vm240_vm6, %v3475_v5, %v3469_v18  ;;  %v3481_v13 = vmul.f32 %v3477_v34, %v5423_v33 }
0x11af   :  { %v3482_v52 = vmul.f32 %v3476_v29, %v5428_v38  ;;  %v3483_v0 = vmul.f32 %v3479_v57, %v5420_v32 }
0x11b0   :  { %v3485_v1 = vpop.permute.xlu0 %3484 }
0x11b1   :  { %v3487_v49 = vpop.permute.xlu1 %3486 }
0x11b2   :  { %v3494_v12 = vsel %vm278_vm5, %v3485_v1, %v3487_v49 }
0x11b3   :  { %v3496_v6 = vmul.f32 %v3494_v12, %v5433_v40 }
0x11b4   :  { %v3489_v54 = vpop.permute.xlu0 %3488 }
0x11b5   :  { %v3493_v3 = vsel %vm278_vm5, %v3487_v49, %v3489_v54  ;;  %v3491_v28 = vpop.permute.xlu1 %3490  ;;  %v4985_v19 = vpack.c.bf16 %v3496_v6, %v3480_v22 }
0x11b6   :  { %v3497_v46 = vmul.f32 %v3493_v3, %v5441_v43  ;;  %v3492_v23 = vsel %vm278_vm5, %v3489_v54, %v3491_v28  ;;  %v3495_v53 = vsel %vm278_vm5, %v3491_v28, %v3485_v1  ;;  %v4603_v3 = vld [vmem:[%s8155_s1 + $0x58] sm:$0xff] }
0x11b7   :  { %v3498_v18 = vmul.f32 %v3492_v23, %v5444_v44  ;;  %v3499_v7 = vmul.f32 %v3495_v53, %v5438_v42 }
0x11b8   :  { %v3501_v8 = vpop.permute.xlu0 %3500  ;;  %v4983_v56 = vpack.c.bf16 %v3497_v46, %v3481_v13 }
0x11b9   :  { %v5001_v60 = vpack.c.bf16 %v3498_v18, %v3482_v52  ;;  %v3503_v14 = vpop.permute.xlu1 %3502  ;;  %v4999_v5 = vpack.c.bf16 %v3499_v7, %v3483_v0 }
0x11ba   :  { %4984 = vmatprep.subr.bf16.mxu0 %v4983_v56  ;;  %v3510_v1 = vsel %vm316_vm7, %v3501_v8, %v3503_v14 }
0x11bb   :  { %4986 = vmatpush1.bf16.msra.mxu0 %v4985_v19  ;;  %5000 = vmatprep.subr.bf16.mxu1 %v4999_v5  ;;  %v3512_v54 = vmul.f32 %v3510_v1, %v5481_v41 }
0x11bc   :  { %5002 = vmatpush1.bf16.msra.mxu1 %v5001_v60  ;;  %v3505_v49 = vpop.permute.xlu0 %3504 }
0x11bd   :  { %v3509_v24 = vsel %vm316_vm7, %v3503_v14, %v3505_v49  ;;  %v3507_v12 = vpop.permute.xlu1 %3506 }
0x11be   :  { %v3508_v34 = vsel %vm316_vm7, %v3505_v49, %v3507_v12  ;;  %v3511_v29 = vsel %vm316_vm7, %v3507_v12, %v3501_v8  ;;  %v3513_v57 = vmul.f32 %v3509_v24, %v5472_v36 }
0x11bf   :  { %v3514_v22 = vmul.f32 %v3508_v34, %v5478_v39  ;;  %v3515_v6 = vmul.f32 %v3511_v29, %v5475_v37 }
0x11c0   :  { %3542 = vmatprep.subr.mxu0 %v3513_v57 }
0x11c1   :  { %3543 = vmatpush1.msra.mxu0 %v3512_v54  ;;  %3613 = vmatprep.subr.mxu1 %v3515_v6 }
0x11c2   :  { %4605 = vmatmul.mubr.msk.f32.vlgmr.msra.gmra.mrb[22].mxu0 %vm352_vm8, %v4603_v3  ;;  %3614 = vmatpush1.msra.mxu1 %v3514_v22 }
0x11c3   :  { %4606 = vmatmul.mubr.msk.f32.vlgmr.msra.gmra.mrb[22].mxu1 %vm352_vm8, %v4603_v3  ;;  %3880 = vmatprep.mubr.f32.mxu0 %v5130_v4 }
0x11c4   :  { %3951 = vmatprep.mubr.f32.mxu1 %v5130_v4 }
0x11cd   :  { %v3521_v28 = vpop.permute.xlu0 %3520 }
0x1295   :  { %v3592_v13 = vpop.f32.mrb[22].mxu0 }
0x1296   :  { %v3593_v46 = vadd.f32 %v3592_v13, %v3521_v28  ;;  %v3594_v23 = vpop.f32.mrb[23].mxu0  ;;  %v3663_v53 = vpop.f32.mrb[22].mxu1 }
0x1297   :  { %v3595_v52 = vadd.f32 %v3594_v23, %v3521_v28  ;;  %v3664_v0 = vadd.f32 %v3663_v53, %v3521_v28  ;;  %v3665_v18 = vpop.f32.mrb[23].mxu1 }
0x1298   :  { %v3668_v7 = vadd.f32 %v3593_v46, %v7187_v15  ;;  %v3666_v8 = vadd.f32 %v3665_v18, %v3521_v28 }
0x1299   :  { %v3669_v56 = vadd.f32 %v3595_v52, %v7192_v17  ;;  %v3670_v60 = vadd.f32 %v3664_v0, %v7197_v55  ;;  %v4608_v17 = vld [vmem:[%s8153_s2 + $0x60] sm:$0xff] }
0x129a   :  { %v7578_v19 = vmax.f32 %v3668_v7, 0.0  ;;  %v3671_v5 = vadd.f32 %v3666_v8, %v7206_v2 }
0x129b   :  { %v7581_v14 = vmax.f32 %v3669_v56, 0.0  ;;  %v7588_v1 = vmax.f32 %v3670_v60, 0.0 }
0x129c   :  { %3678 = vrot.lane.b32.xlu1 %v7578_v19, %s5123_s25  ;;  %v7590_v15 = vmax.f32 %v3671_v5, 0.0 }
0x129d   :  { %3680 = vrot.lane.b32.xlu0 %v7581_v14, %s5123_s25 }
0x12a0   :  { %3682 = vrot.lane.b32.xlu1 %v7588_v1, %s5123_s25 }
0x12a1   :  { %3684 = vrot.lane.b32.xlu0 %v7590_v15, %s5123_s25 }
0x12a4   :  { %3694 = vrot.lane.b32.xlu1 %v7578_v19, %s5124_s30 }
0x12a5   :  { %3696 = vrot.lane.b32.xlu0 %v7581_v14, %s5124_s30 }
0x12a8   :  { %3698 = vrot.lane.b32.xlu1 %v7588_v1, %s5124_s30 }
0x12a9   :  { %3700 = vrot.lane.b32.xlu0 %v7590_v15, %s5124_s30 }
0x12ac   :  { %3710 = vrot.lane.b32.xlu1 %v7578_v19, %s5125_s7 }
0x12ad   :  { %3712 = vrot.lane.b32.xlu0 %v7581_v14, %s5125_s7 }
0x12b0   :  { %3714 = vrot.lane.b32.xlu1 %v7588_v1, %s5125_s7 }
0x12b1   :  { %3716 = vrot.lane.b32.xlu0 %v7590_v15, %s5125_s7 }
0x12b4   :  { %3726 = vrot.lane.b32.xlu1 %v7578_v19, %s5126_s8 }
0x12b5   :  { %3728 = vrot.lane.b32.xlu0 %v7581_v14, %s5126_s8 }
0x12b8   :  { %3730 = vrot.lane.b32.xlu1 %v7588_v1, %s5126_s8 }
0x12b9   :  { %3732 = vrot.lane.b32.xlu0 %v7590_v15, %s5126_s8 }
0x12bc   :  { %3742 = vrot.lane.b32.xlu1 %v7578_v19, %s5127_s9 }
0x12bd   :  { %3744 = vrot.lane.b32.xlu0 %v7581_v14, %s5127_s9 }
0x12c0   :  { %3746 = vrot.lane.b32.xlu1 %v7588_v1, %s5127_s9 }
0x12c1   :  { %3748 = vrot.lane.b32.xlu0 %v7590_v15, %s5127_s9 }
0x12c4   :  { %3758 = vrot.lane.b32.xlu1 %v7578_v19, %s5128_s10 }
0x12c5   :  { %3760 = vrot.lane.b32.xlu0 %v7581_v14, %s5128_s10 }
0x12c8   :  { %3762 = vrot.lane.b32.xlu1 %v7588_v1, %s5128_s10 }
0x12c9   :  { %3764 = vrot.lane.b32.xlu0 %v7590_v15, %s5128_s10 }
0x12cc   :  { %3774 = vrot.lane.b32.xlu1 %v7578_v19, %s5129_s11 }
0x12cd   :  { %3776 = vrot.lane.b32.xlu0 %v7581_v14, %s5129_s11 }
0x12d0   :  { %3778 = vrot.lane.b32.xlu1 %v7588_v1, %s5129_s11 }
0x12d1   :  { %3780 = vrot.lane.b32.xlu0 %v7590_v15, %s5129_s11 }
0x12d4   :  { %3790 = vrot.lane.b32.xlu1 %v7578_v19, %s5132_s12 }
0x12d5   :  { %3792 = vrot.lane.b32.xlu0 %v7581_v14, %s5132_s12 }
0x12d8   :  { %3794 = vrot.lane.b32.xlu1 %v7588_v1, %s5132_s12 }
0x12d9   :  { %3796 = vrot.lane.b32.xlu0 %v7590_v15, %s5132_s12 }
0x12dc   :  { %3810 = vperm.xlu1 %5110, %v4608_v17  }
0x130e   :  { %v3679_v55 = vpop.permute.xlu1 %3678 }
0x130f   :  { %v3681_v2 = vpop.permute.xlu0 %3680 }
0x1310   :  { %v3688_v12 = vsel %vm50_vm0, %v3679_v55, %v3681_v2 }
0x1311   :  { %v3691_v54 = vmul.f32 %v3688_v12, %v5276_v20 }
0x1312   :  { %v3683_v49 = vpop.permute.xlu1 %3682 }
0x1313   :  { %v3685_v24 = vpop.permute.xlu0 %3684  ;;  %v3687_v13 = vsel %vm50_vm0, %v3681_v2, %v3683_v49 }
0x1314   :  { %v3686_v6 = vsel %vm50_vm0, %v3683_v49, %v3685_v24  ;;  %v3689_v3 = vsel %vm50_vm0, %v3685_v24, %v3679_v55  ;;  %v3692_v5 = vmul.f32 %v3687_v13, %v5300_v31 }
0x1315   :  { %v3690_v7 = vmul.f32 %v3689_v3, %v5284_v25  ;;  %v3693_v8 = vmul.f32 %v3686_v6, %v5290_v27 }
0x1316   :  { %v3695_v34 = vpop.permute.xlu1 %3694 }
0x1317   :  { %v3697_v29 = vpop.permute.xlu0 %3696 }
0x1318   :  { %v3704_v57 = vsel %vm88_vm1, %v3695_v34, %v3697_v29 }
0x1319   :  { %v3707_v22 = vmul.f32 %v3704_v57, %v5279_v21 }
0x131a   :  { %v3699_v28 = vpop.permute.xlu1 %3698 }
0x131b   :  { %v3703_v46 = vsel %vm88_vm1, %v3697_v29, %v3699_v28  ;;  %v3701_v23 = vpop.permute.xlu0 %3700  ;;  %v5003_v53 = vpack.c.bf16 %v3707_v22, %v3691_v54 }
0x131c   :  { %v3708_v52 = vmul.f32 %v3703_v46, %v5307_v35  ;;  %v3702_v0 = vsel %vm88_vm1, %v3699_v28, %v3701_v23  ;;  %v3705_v18 = vsel %vm88_vm1, %v3701_v23, %v3695_v34 }
0x131d   :  { %v3706_v56 = vmul.f32 %v3705_v18, %v5287_v26  ;;  %v3709_v60 = vmul.f32 %v3702_v0, %v5297_v30  ;;  %5004 = vmatprep.subr.bf16.mxu0 %v5003_v53 }
0x131e   :  { %v3711_v17 = vpop.permute.xlu1 %3710  ;;  %v5021_v24 = vpack.c.bf16 %v3708_v52, %v3692_v5 }
0x131f   :  { %v5005_v55 = vpack.c.bf16 %v3706_v56, %v3690_v7  ;;  %v3713_v2 = vpop.permute.xlu0 %3712  ;;  %v5019_v49 = vpack.c.bf16 %v3709_v60, %v3693_v8 }
0x1320   :  { %v3720_v29 = vsel %vm126_vm2, %v3711_v17, %v3713_v2 }
0x1321   :  { %5006 = vmatpush1.bf16.msra.mxu0 %v5005_v55  ;;  %5020 = vmatprep.subr.bf16.mxu1 %v5019_v49  ;;  %v3723_v6 = vmul.f32 %v3720_v29, %v5332_v58 }
0x1322   :  { %5022 = vmatpush1.bf16.msra.mxu1 %v5021_v24  ;;  %v3715_v12 = vpop.permute.xlu1 %3714 }
0x1323   :  { %v3717_v34 = vpop.permute.xlu0 %3716  ;;  %v3719_v23 = vsel %vm126_vm2, %v3713_v2, %v3715_v12 }
0x1324   :  { %v3718_v28 = vsel %vm126_vm2, %v3715_v12, %v3717_v34  ;;  %v3721_v13 = vsel %vm126_vm2, %v3717_v34, %v3711_v17  ;;  %v3724_v55 = vmul.f32 %v3719_v23, %v5343_v62 }
0x1325   :  { %v3722_v56 = vmul.f32 %v3721_v13, %v5340_v61  ;;  %v3725_v60 = vmul.f32 %v3718_v28, %v5346_v63 }
0x1326   :  { %v3727_v57 = vpop.permute.xlu1 %3726 }
0x1327   :  { %v3729_v54 = vpop.permute.xlu0 %3728 }
0x1328   :  { %v3736_v22 = vsel %vm164_vm3, %v3727_v57, %v3729_v54 }
0x1329   :  { %v3739_v3 = vmul.f32 %v3736_v22, %v5335_v59 }
0x132a   :  { %v3731_v46 = vpop.permute.xlu1 %3730 }
0x132b   :  { %v3735_v53 = vsel %vm164_vm3, %v3729_v54, %v3731_v46  ;;  %v3733_v52 = vpop.permute.xlu0 %3732  ;;  %v5007_v0 = vpack.c.bf16 %v3739_v3, %v3723_v6 }
0x132c   :  { %v3740_v18 = vmul.f32 %v3735_v53, %v5356_v10  ;;  %v3734_v7 = vsel %vm164_vm3, %v3731_v46, %v3733_v52  ;;  %v3737_v8 = vsel %vm164_vm3, %v3733_v52, %v3727_v57 }
0x132d   :  { %v3738_v5 = vmul.f32 %v3737_v8, %v5353_v9  ;;  %v3741_v17 = vmul.f32 %v3734_v7, %v5363_v16  ;;  %5008 = vmatprep.subr.bf16.mxu0 %v5007_v0 }
0x132e   :  { %v3743_v2 = vpop.permute.xlu1 %3742  ;;  %v5025_v34 = vpack.c.bf16 %v3740_v18, %v3724_v55 }
0x132f   :  { %v5009_v49 = vpack.c.bf16 %v3738_v5, %v3722_v56  ;;  %v3745_v24 = vpop.permute.xlu0 %3744  ;;  %v5023_v12 = vpack.c.bf16 %v3741_v17, %v3725_v60 }
0x1330   :  { %v3752_v29 = vsel %vm202_vm4, %v3743_v2, %v3745_v24 }
0x1331   :  { %5010 = vmatpush1.bf16.msra.mxu0 %v5009_v49  ;;  %5024 = vmatprep.subr.bf16.mxu1 %v5023_v12  ;;  %v3754_v54 = vmul.f32 %v3752_v29, %v5384_v47 }
0x1332   :  { %5026 = vmatpush1.bf16.msra.mxu1 %v5025_v34  ;;  %v3747_v57 = vpop.permute.xlu1 %3746 }
0x1333   :  { %v3751_v22 = vsel %vm202_vm4, %v3745_v24, %v3747_v57  ;;  %v3749_v6 = vpop.permute.xlu0 %3748  ;;  %v5013_v0 = vpack.c.bf16 %v3754_v54, %v7578_v19 }
0x1334   :  { %v3755_v3 = vmul.f32 %v3751_v22, %v5392_v50  ;;  %v3750_v28 = vsel %vm202_vm4, %v3747_v57, %v3749_v6  ;;  %v3753_v13 = vsel %vm202_vm4, %v3749_v6, %v3743_v2 }
0x1335   :  { %v3756_v46 = vmul.f32 %v3750_v28, %v5395_v51  ;;  %v3757_v23 = vmul.f32 %v3753_v13, %v5387_v48 }
0x1336   :  { %v3759_v53 = vpop.permute.xlu1 %3758  ;;  %v5011_v52 = vpack.c.bf16 %v3755_v3, %v7581_v14 }
0x1337   :  { %v5029_v18 = vpack.c.bf16 %v3756_v46, %v7588_v1  ;;  %v3761_v7 = vpop.permute.xlu0 %3760  ;;  %v5027_v8 = vpack.c.bf16 %v3757_v23, %v7590_v15 }
0x1338   :  { %5012 = vmatprep.subr.bf16.mxu0 %v5011_v52  ;;  %v3768_v55 = vsel %vm240_vm6, %v3759_v53, %v3761_v7 }
0x1339   :  { %5014 = vmatpush1.bf16.msra.mxu0 %v5013_v0  ;;  %5028 = vmatprep.subr.bf16.mxu1 %v5027_v8  ;;  %v3770_v29 = vmul.f32 %v3768_v55, %v5447_v45 }
0x133a   :  { %5030 = vmatpush1.bf16.msra.mxu1 %v5029_v18  ;;  %v3763_v56 = vpop.permute.xlu1 %3762 }
0x133b   :  { %v3765_v60 = vpop.permute.xlu0 %3764  ;;  %v3767_v49 = vsel %vm240_vm6, %v3761_v7, %v3763_v56 }
0x133c   :  { %v3766_v24 = vsel %vm240_vm6, %v3763_v56, %v3765_v60  ;;  %v3769_v12 = vsel %vm240_vm6, %v3765_v60, %v3759_v53  ;;  %v3771_v6 = vmul.f32 %v3767_v49, %v5423_v33 }
0x133d   :  { %v3772_v46 = vmul.f32 %v3766_v24, %v5428_v38  ;;  %v3773_v23 = vmul.f32 %v3769_v12, %v5420_v32 }
0x133e   :  { %v3775_v5 = vpop.permute.xlu1 %3774 }
0x133f   :  { %v3777_v17 = vpop.permute.xlu0 %3776 }
0x1340   :  { %v3784_v2 = vsel %vm278_vm5, %v3775_v5, %v3777_v17 }
0x1341   :  { %v3786_v57 = vmul.f32 %v3784_v2, %v5433_v40 }
0x1342   :  { %v3779_v34 = vpop.permute.xlu1 %3778 }
0x1343   :  { %v3783_v54 = vsel %vm278_vm5, %v3777_v17, %v3779_v34  ;;  %v3781_v22 = vpop.permute.xlu0 %3780  ;;  %v5017_v7 = vpack.c.bf16 %v3786_v57, %v3770_v29 }
0x1344   :  { %v3787_v3 = vmul.f32 %v3783_v54, %v5441_v43  ;;  %v3782_v28 = vsel %vm278_vm5, %v3779_v34, %v3781_v22  ;;  %v3785_v13 = vsel %vm278_vm5, %v3781_v22, %v3775_v5  ;;  %v4607_v54 = vld [vmem:[%s8155_s1 + $0x60] sm:$0xff] }
0x1345   :  { %v3788_v53 = vmul.f32 %v3782_v28, %v5444_v44  ;;  %v3789_v52 = vmul.f32 %v3785_v13, %v5438_v42 }
0x1346   :  { %v3791_v0 = vpop.permute.xlu1 %3790  ;;  %v5015_v18 = vpack.c.bf16 %v3787_v3, %v3771_v6 }
0x1347   :  { %v5033_v8 = vpack.c.bf16 %v3788_v53, %v3772_v46  ;;  %v3793_v56 = vpop.permute.xlu0 %3792  ;;  %v5031_v60 = vpack.c.bf16 %v3789_v52, %v3773_v23 }
0x1348   :  { %5016 = vmatprep.subr.bf16.mxu0 %v5015_v18  ;;  %v3800_v5 = vsel %vm316_vm7, %v3791_v0, %v3793_v56 }
0x1349   :  { %5018 = vmatpush1.bf16.msra.mxu0 %v5017_v7  ;;  %5032 = vmatprep.subr.bf16.mxu1 %v5031_v60  ;;  %v3802_v34 = vmul.f32 %v3800_v5, %v5481_v41 }
0x134a   :  { %5034 = vmatpush1.bf16.msra.mxu1 %v5033_v8  ;;  %v3795_v17 = vpop.permute.xlu1 %3794 }
0x134b   :  { %v3799_v55 = vsel %vm316_vm7, %v3793_v56, %v3795_v17  ;;  %v3797_v2 = vpop.permute.xlu0 %3796  ;;  %v4612_v56 = vld [vmem:[%s8153_s2 + $0x68] sm:$0xff] }
0x134c   :  { %v3803_v49 = vmul.f32 %v3799_v55, %v5472_v36  ;;  %v3798_v24 = vsel %vm316_vm7, %v3795_v17, %v3797_v2  ;;  %v3801_v12 = vsel %vm316_vm7, %v3797_v2, %v3791_v0 }
0x134d   :  { %v3804_v29 = vmul.f32 %v3798_v24, %v5478_v39  ;;  %v3805_v57 = vmul.f32 %v3801_v12, %v5475_v37 }
0x134e   :  { %3832 = vmatprep.subr.mxu0 %v3803_v49 }
0x134f   :  { %3833 = vmatpush1.msra.mxu0 %v3802_v34  ;;  %3903 = vmatprep.subr.mxu1 %v3805_v57 }
0x1350   :  { %4609 = vmatmul.mubr.msk.f32.vlgmr.msra.gmra.mrb[24].mxu0 %vm352_vm8, %v4607_v54  ;;  %3904 = vmatpush1.msra.mxu1 %v3804_v29 }
0x1351   :  { %4610 = vmatmul.mubr.msk.f32.vlgmr.msra.gmra.mrb[24].mxu1 %vm352_vm8, %v4607_v54  ;;  %4166 = vmatprep.mubr.f32.mxu0 %v5130_v4 }
0x1352   :  { %4237 = vmatprep.mubr.f32.mxu1 %v5130_v4 }
0x135b   :  { %v3811_v22 = vpop.permute.xlu1 %3810 }
0x1423   :  { %v3882_v6 = vpop.f32.mrb[24].mxu0 }
0x1424   :  { %v3883_v3 = vadd.f32 %v3882_v6, %v3811_v22  ;;  %v3884_v28 = vpop.f32.mrb[25].mxu0  ;;  %v3953_v13 = vpop.f32.mrb[24].mxu1 }
0x1425   :  { %v3885_v46 = vadd.f32 %v3884_v28, %v3811_v22  ;;  %v3955_v23 = vpop.f32.mrb[25].mxu1  ;;  %v3954_v52 = vadd.f32 %v3953_v13, %v3811_v22 }
0x1426   :  { %v7762_v53 = vmax.f32 %v3883_v3, 0.0  ;;  %v3956_v18 = vadd.f32 %v3955_v23, %v3811_v22 }
0x1427   :  { %v7764_v0 = vmax.f32 %v3885_v46, 0.0  ;;  %v7770_v7 = vmax.f32 %v3954_v52, 0.0 }
0x1428   :  { %3964 = vrot.lane.b32.xlu0 %v7762_v53, %s5123_s25  ;;  %v7772_v8 = vmax.f32 %v3956_v18, 0.0 }
0x1429   :  { %3966 = vrot.lane.b32.xlu1 %v7764_v0, %s5123_s25 }
0x142c   :  { %3968 = vrot.lane.b32.xlu0 %v7770_v7, %s5123_s25 }
0x142d   :  { %3970 = vrot.lane.b32.xlu1 %v7772_v8, %s5123_s25 }
0x1430   :  { %3980 = vrot.lane.b32.xlu0 %v7762_v53, %s5124_s30 }
0x1431   :  { %3982 = vrot.lane.b32.xlu1 %v7764_v0, %s5124_s30 }
0x1434   :  { %3984 = vrot.lane.b32.xlu0 %v7770_v7, %s5124_s30 }
0x1435   :  { %3986 = vrot.lane.b32.xlu1 %v7772_v8, %s5124_s30 }
0x1438   :  { %3996 = vrot.lane.b32.xlu0 %v7762_v53, %s5125_s7 }
0x1439   :  { %3998 = vrot.lane.b32.xlu1 %v7764_v0, %s5125_s7 }
0x143c   :  { %4000 = vrot.lane.b32.xlu0 %v7770_v7, %s5125_s7 }
0x143d   :  { %4002 = vrot.lane.b32.xlu1 %v7772_v8, %s5125_s7 }
0x1440   :  { %4012 = vrot.lane.b32.xlu0 %v7762_v53, %s5126_s8 }
0x1441   :  { %4014 = vrot.lane.b32.xlu1 %v7764_v0, %s5126_s8 }
0x1444   :  { %4016 = vrot.lane.b32.xlu0 %v7770_v7, %s5126_s8 }
0x1445   :  { %4018 = vrot.lane.b32.xlu1 %v7772_v8, %s5126_s8 }
0x1448   :  { %4028 = vrot.lane.b32.xlu0 %v7762_v53, %s5127_s9 }
0x1449   :  { %4030 = vrot.lane.b32.xlu1 %v7764_v0, %s5127_s9 }
0x144c   :  { %4032 = vrot.lane.b32.xlu0 %v7770_v7, %s5127_s9 }
0x144d   :  { %4034 = vrot.lane.b32.xlu1 %v7772_v8, %s5127_s9 }
0x1450   :  { %4044 = vrot.lane.b32.xlu0 %v7762_v53, %s5128_s10 }
0x1451   :  { %4046 = vrot.lane.b32.xlu1 %v7764_v0, %s5128_s10 }
0x1454   :  { %4048 = vrot.lane.b32.xlu0 %v7770_v7, %s5128_s10 }
0x1455   :  { %4050 = vrot.lane.b32.xlu1 %v7772_v8, %s5128_s10 }
0x1458   :  { %4060 = vrot.lane.b32.xlu0 %v7762_v53, %s5129_s11 }
0x1459   :  { %4062 = vrot.lane.b32.xlu1 %v7764_v0, %s5129_s11 }
0x145c   :  { %4064 = vrot.lane.b32.xlu0 %v7770_v7, %s5129_s11 }
0x145d   :  { %4066 = vrot.lane.b32.xlu1 %v7772_v8, %s5129_s11 }
0x1460   :  { %4076 = vrot.lane.b32.xlu0 %v7762_v53, %s5132_s12 }
0x1461   :  { %4078 = vrot.lane.b32.xlu1 %v7764_v0, %s5132_s12 }
0x1464   :  { %4080 = vrot.lane.b32.xlu0 %v7770_v7, %s5132_s12 }
0x1465   :  { %4082 = vrot.lane.b32.xlu1 %v7772_v8, %s5132_s12 }
0x1468   :  { %4096 = vperm.xlu0 %5109, %v4612_v56  }
0x149a   :  { %v3965_v60 = vpop.permute.xlu0 %3964 }
0x149b   :  { %v3967_v5 = vpop.permute.xlu1 %3966 }
0x149c   :  { %v3974_v2 = vsel %vm50_vm0, %v3965_v60, %v3967_v5 }
0x149d   :  { %v3977_v34 = vmul.f32 %v3974_v2, %v5276_v20 }
0x149e   :  { %v3969_v17 = vpop.permute.xlu0 %3968 }
0x149f   :  { %v3971_v55 = vpop.permute.xlu1 %3970  ;;  %v3973_v6 = vsel %vm50_vm0, %v3967_v5, %v3969_v17 }
0x14a0   :  { %v3972_v57 = vsel %vm50_vm0, %v3969_v17, %v3971_v55  ;;  %v3975_v54 = vsel %vm50_vm0, %v3971_v55, %v3965_v60  ;;  %v3978_v17 = vmul.f32 %v3973_v6, %v5300_v31 }
0x14a1   :  { %v3976_v18 = vmul.f32 %v3975_v54, %v5284_v25  ;;  %v3979_v56 = vmul.f32 %v3972_v57, %v5290_v27 }
0x14a2   :  { %v3981_v49 = vpop.permute.xlu0 %3980 }
0x14a3   :  { %v3983_v24 = vpop.permute.xlu1 %3982 }
0x14a4   :  { %v3990_v12 = vsel %vm88_vm1, %v3981_v49, %v3983_v24 }
0x14a5   :  { %v3993_v29 = vmul.f32 %v3990_v12, %v5279_v21 }
0x14a6   :  { %v3985_v22 = vpop.permute.xlu0 %3984 }
0x14a7   :  { %v3989_v3 = vsel %vm88_vm1, %v3983_v24, %v3985_v22  ;;  %v3987_v28 = vpop.permute.xlu1 %3986  ;;  %v5035_v13 = vpack.c.bf16 %v3993_v29, %v3977_v34 }
0x14a8   :  { %v3994_v46 = vmul.f32 %v3989_v3, %v5307_v35  ;;  %v3988_v23 = vsel %vm88_vm1, %v3985_v22, %v3987_v28  ;;  %v3991_v52 = vsel %vm88_vm1, %v3987_v28, %v3981_v49 }
0x14a9   :  { %v3992_v60 = vmul.f32 %v3991_v52, %v5287_v26  ;;  %v3995_v5 = vmul.f32 %v3988_v23, %v5297_v30  ;;  %5036 = vmatprep.subr.bf16.mxu0 %v5035_v13 }
0x14aa   :  { %v3997_v55 = vpop.permute.xlu0 %3996  ;;  %v5053_v34 = vpack.c.bf16 %v3994_v46, %v3978_v17 }
0x14ab   :  { %v5037_v2 = vpack.c.bf16 %v3992_v60, %v3976_v18  ;;  %v3999_v24 = vpop.permute.xlu1 %3998  ;;  %v5051_v12 = vpack.c.bf16 %v3995_v5, %v3979_v56 }
0x14ac   :  { %v4006_v57 = vsel %vm126_vm2, %v3997_v55, %v3999_v24 }
0x14ad   :  { %5038 = vmatpush1.bf16.msra.mxu0 %v5037_v2  ;;  %5052 = vmatprep.subr.bf16.mxu1 %v5051_v12  ;;  %v4009_v6 = vmul.f32 %v4006_v57, %v5332_v58 }
0x14ae   :  { %5054 = vmatpush1.bf16.msra.mxu1 %v5053_v34  ;;  %v4001_v49 = vpop.permute.xlu0 %4000 }
0x14af   :  { %v4003_v29 = vpop.permute.xlu1 %4002  ;;  %v4005_v52 = vsel %vm126_vm2, %v3999_v24, %v4001_v49 }
0x14b0   :  { %v4004_v13 = vsel %vm126_vm2, %v4001_v49, %v4003_v29  ;;  %v4007_v46 = vsel %vm126_vm2, %v4003_v29, %v3997_v55  ;;  %v4010_v49 = vmul.f32 %v4005_v52, %v5343_v62 }
0x14b1   :  { %v4008_v12 = vmul.f32 %v4007_v46, %v5340_v61  ;;  %v4011_v55 = vmul.f32 %v4004_v13, %v5346_v63 }
0x14b2   :  { %v4013_v54 = vpop.permute.xlu0 %4012 }
0x14b3   :  { %v4015_v22 = vpop.permute.xlu1 %4014 }
0x14b4   :  { %v4022_v3 = vsel %vm164_vm3, %v4013_v54, %v4015_v22 }
0x14b5   :  { %v4025_v28 = vmul.f32 %v4022_v3, %v5335_v59 }
0x14b6   :  { %v4017_v23 = vpop.permute.xlu0 %4016 }
0x14b7   :  { %v4021_v18 = vsel %vm164_vm3, %v4015_v22, %v4017_v23  ;;  %v4019_v56 = vpop.permute.xlu1 %4018  ;;  %v5039_v60 = vpack.c.bf16 %v4025_v28, %v4009_v6 }
0x14b8   :  { %v4026_v5 = vmul.f32 %v4021_v18, %v5356_v10  ;;  %v4020_v17 = vsel %vm164_vm3, %v4017_v23, %v4019_v56  ;;  %v4023_v2 = vsel %vm164_vm3, %v4019_v56, %v4013_v54 }
0x14b9   :  { %v4024_v34 = vmul.f32 %v4023_v2, %v5353_v9  ;;  %v4027_v24 = vmul.f32 %v4020_v17, %v5363_v16  ;;  %5040 = vmatprep.subr.bf16.mxu0 %v5039_v60 }
0x14ba   :  { %v4029_v29 = vpop.permute.xlu0 %4028  ;;  %v5057_v6 = vpack.c.bf16 %v4026_v5, %v4010_v49 }
0x14bb   :  { %v5041_v57 = vpack.c.bf16 %v4024_v34, %v4008_v12  ;;  %v4031_v22 = vpop.permute.xlu1 %4030  ;;  %v5055_v3 = vpack.c.bf16 %v4027_v24, %v4011_v55 }
0x14bc   :  { %v4038_v28 = vsel %vm202_vm4, %v4029_v29, %v4031_v22 }
0x14bd   :  { %5042 = vmatpush1.bf16.msra.mxu0 %v5041_v57  ;;  %5056 = vmatprep.subr.bf16.mxu1 %v5055_v3  ;;  %v4040_v13 = vmul.f32 %v4038_v28, %v5384_v47 }
0x14be   :  { %5058 = vmatpush1.bf16.msra.mxu1 %v5057_v6  ;;  %v4033_v54 = vpop.permute.xlu0 %4032 }
0x14bf   :  { %v4037_v46 = vsel %vm202_vm4, %v4031_v22, %v4033_v54  ;;  %v4035_v23 = vpop.permute.xlu1 %4034  ;;  %v5045_v12 = vpack.c.bf16 %v4040_v13, %v7762_v53 }
0x14c0   :  { %v4041_v52 = vmul.f32 %v4037_v46, %v5392_v50  ;;  %v4036_v18 = vsel %vm202_vm4, %v4033_v54, %v4035_v23  ;;  %v4039_v56 = vsel %vm202_vm4, %v4035_v23, %v4029_v29 }
0x14c1   :  { %v4042_v60 = vmul.f32 %v4036_v18, %v5395_v51  ;;  %v4043_v5 = vmul.f32 %v4039_v56, %v5387_v48 }
0x14c2   :  { %v4045_v17 = vpop.permute.xlu0 %4044  ;;  %v5043_v2 = vpack.c.bf16 %v4041_v52, %v7764_v0 }
0x14c3   :  { %v5061_v55 = vpack.c.bf16 %v4042_v60, %v7770_v7  ;;  %v4047_v34 = vpop.permute.xlu1 %4046  ;;  %v5059_v24 = vpack.c.bf16 %v4043_v5, %v7772_v8 }
0x14c4   :  { %5044 = vmatprep.subr.bf16.mxu0 %v5043_v2  ;;  %v4054_v3 = vsel %vm240_vm6, %v4045_v17, %v4047_v34 }
0x14c5   :  { %5046 = vmatpush1.bf16.msra.mxu0 %v5045_v12  ;;  %5060 = vmatprep.subr.bf16.mxu1 %v5059_v24  ;;  %v4056_v28 = vmul.f32 %v4054_v3, %v5447_v45 }
0x14c6   :  { %5062 = vmatpush1.bf16.msra.mxu1 %v5061_v55  ;;  %v4049_v49 = vpop.permute.xlu0 %4048 }
0x14c7   :  { %v4051_v29 = vpop.permute.xlu1 %4050  ;;  %v4053_v53 = vsel %vm240_vm6, %v4047_v34, %v4049_v49 }
0x14c8   :  { %v4052_v7 = vsel %vm240_vm6, %v4049_v49, %v4051_v29  ;;  %v4055_v8 = vsel %vm240_vm6, %v4051_v29, %v4045_v17  ;;  %v4057_v23 = vmul.f32 %v4053_v53, %v5423_v33 }
0x14c9   :  { %v4058_v60 = vmul.f32 %v4052_v7, %v5428_v38  ;;  %v4059_v5 = vmul.f32 %v4055_v8, %v5420_v32 }
0x14ca   :  { %v4061_v57 = vpop.permute.xlu0 %4060 }
0x14cb   :  { %v4063_v22 = vpop.permute.xlu1 %4062 }
0x14cc   :  { %v4070_v0 = vsel %vm278_vm5, %v4061_v57, %v4063_v22 }
0x14cd   :  { %v4072_v54 = vmul.f32 %v4070_v0, %v5433_v40 }
0x14ce   :  { %v4065_v6 = vpop.permute.xlu0 %4064 }
0x14cf   :  { %v4069_v13 = vsel %vm278_vm5, %v4063_v22, %v4065_v6  ;;  %v4067_v46 = vpop.permute.xlu1 %4066  ;;  %v5049_v34 = vpack.c.bf16 %v4072_v54, %v4056_v28 }
0x14d0   :  { %v4073_v52 = vmul.f32 %v4069_v13, %v5441_v43  ;;  %v4068_v18 = vsel %vm278_vm5, %v4065_v6, %v4067_v46  ;;  %v4071_v56 = vsel %vm278_vm5, %v4067_v46, %v4061_v57  ;;  %v4611_v13 = vld [vmem:[%s8155_s1 + $0x68] sm:$0xff] }
0x14d1   :  { %v4074_v17 = vmul.f32 %v4068_v18, %v5444_v44  ;;  %v4075_v2 = vmul.f32 %v4071_v56, %v5438_v42 }
0x14d2   :  { %v4077_v12 = vpop.permute.xlu0 %4076  ;;  %v5047_v55 = vpack.c.bf16 %v4073_v52, %v4057_v23 }
0x14d3   :  { %v5065_v24 = vpack.c.bf16 %v4074_v17, %v4058_v60  ;;  %v4079_v49 = vpop.permute.xlu1 %4078  ;;  %v5063_v29 = vpack.c.bf16 %v4075_v2, %v4059_v5 }
0x14d4   :  { %5048 = vmatprep.subr.bf16.mxu0 %v5047_v55  ;;  %v4086_v57 = vsel %vm316_vm7, %v4077_v12, %v4079_v49 }
0x14d5   :  { %5050 = vmatpush1.bf16.msra.mxu0 %v5049_v34  ;;  %5064 = vmatprep.subr.bf16.mxu1 %v5063_v29  ;;  %v4088_v6 = vmul.f32 %v4086_v57, %v5481_v41 }
0x14d6   :  { %5066 = vmatpush1.bf16.msra.mxu1 %v5065_v24  ;;  %v4081_v22 = vpop.permute.xlu0 %4080 }
0x14d7   :  { %v4085_v3 = vsel %vm316_vm7, %v4079_v49, %v4081_v22  ;;  %v4083_v0 = vpop.permute.xlu1 %4082 }
0x14d8   :  { %v4089_v53 = vmul.f32 %v4085_v3, %v5472_v36  ;;  %v4084_v7 = vsel %vm316_vm7, %v4081_v22, %v4083_v0  ;;  %v4087_v8 = vsel %vm316_vm7, %v4083_v0, %v4077_v12 }
0x14d9   :  { %v4090_v28 = vmul.f32 %v4084_v7, %v5478_v39  ;;  %v4091_v54 = vmul.f32 %v4087_v8, %v5475_v37 }
0x14da   :  { %4118 = vmatprep.subr.mxu0 %v4089_v53 }
0x14db   :  { %4119 = vmatpush1.msra.mxu0 %v4088_v6  ;;  %4189 = vmatprep.subr.mxu1 %v4091_v54 }
0x14dc   :  { %4613 = vmatmul.mubr.msk.f32.vlgmr.msra.gmra.mrb[26].mxu0 %vm352_vm8, %v4611_v13  ;;  %4190 = vmatpush1.msra.mxu1 %v4090_v28 }
0x14dd   :  { %4614 = vmatmul.mubr.msk.f32.vlgmr.msra.gmra.mrb[26].mxu1 %vm352_vm8, %v4611_v13  ;;  %4456 = vmatprep.mubr.f32.mxu0 %v5130_v4 }
0x14de   :  { %4527 = vmatprep.mubr.f32.mxu1 %v5130_v4 }
0x14e7   :  { %v4097_v46 = vpop.permute.xlu0 %4096 }
0x15af   :  { %v4168_v23 = vpop.f32.mrb[26].mxu0 }
0x15b0   :  { %v4169_v52 = vadd.f32 %v4168_v23, %v4097_v46  ;;  %v4170_v18 = vpop.f32.mrb[27].mxu0  ;;  %v4239_v56 = vpop.f32.mrb[26].mxu1 }
0x15b1   :  { %v4171_v60 = vadd.f32 %v4170_v18, %v4097_v46  ;;  %v4240_v5 = vadd.f32 %v4239_v56, %v4097_v46  ;;  %v4241_v17 = vpop.f32.mrb[27].mxu1 }
0x15b2   :  { %v4244_v2 = vadd.f32 %v4169_v52, %v7578_v19  ;;  %v4242_v12 = vadd.f32 %v4241_v17, %v4097_v46 }
0x15b3   :  { %v4245_v55 = vadd.f32 %v4171_v60, %v7581_v14  ;;  %v4246_v24 = vadd.f32 %v4240_v5, %v7588_v1  ;;  %v4616_v14 = vld [vmem:[%s8153_s2 + $0x70] sm:$0xff] }
0x15b4   :  { %v7946_v34 = vmax.f32 %v4244_v2, 0.0  ;;  %v4247_v4 = vadd.f32 %v4242_v12, %v7590_v15 }
0x15b5   :  { %v7949_v49 = vmax.f32 %v4245_v55, 0.0  ;;  %v7956_v29 = vmax.f32 %v4246_v24, 0.0 }
0x15b6   :  { %4254 = vrot.lane.b32.xlu1 %v7946_v34, %s5123_s25  ;;  %v7958_v19 = vmax.f32 %v4247_v4, 0.0 }
0x15b7   :  { %4256 = vrot.lane.b32.xlu0 %v7949_v49, %s5123_s25 }
0x15ba   :  { %4258 = vrot.lane.b32.xlu1 %v7956_v29, %s5123_s25 }
0x15bb   :  { %4260 = vrot.lane.b32.xlu0 %v7958_v19, %s5123_s25 }
0x15be   :  { %4270 = vrot.lane.b32.xlu1 %v7946_v34, %s5124_s30 }
0x15bf   :  { %4272 = vrot.lane.b32.xlu0 %v7949_v49, %s5124_s30 }
0x15c2   :  { %4274 = vrot.lane.b32.xlu1 %v7956_v29, %s5124_s30 }
0x15c3   :  { %4276 = vrot.lane.b32.xlu0 %v7958_v19, %s5124_s30 }
0x15c6   :  { %4286 = vrot.lane.b32.xlu1 %v7946_v34, %s5125_s7 }
0x15c7   :  { %4288 = vrot.lane.b32.xlu0 %v7949_v49, %s5125_s7 }
0x15ca   :  { %4290 = vrot.lane.b32.xlu1 %v7956_v29, %s5125_s7 }
0x15cb   :  { %4292 = vrot.lane.b32.xlu0 %v7958_v19, %s5125_s7 }
0x15ce   :  { %4302 = vrot.lane.b32.xlu1 %v7946_v34, %s5126_s8 }
0x15cf   :  { %4304 = vrot.lane.b32.xlu0 %v7949_v49, %s5126_s8 }
0x15d2   :  { %4306 = vrot.lane.b32.xlu1 %v7956_v29, %s5126_s8 }
0x15d3   :  { %4308 = vrot.lane.b32.xlu0 %v7958_v19, %s5126_s8 }
0x15d6   :  { %4318 = vrot.lane.b32.xlu1 %v7946_v34, %s5127_s9 }
0x15d7   :  { %4320 = vrot.lane.b32.xlu0 %v7949_v49, %s5127_s9 }
0x15da   :  { %4322 = vrot.lane.b32.xlu1 %v7956_v29, %s5127_s9 }
0x15db   :  { %4324 = vrot.lane.b32.xlu0 %v7958_v19, %s5127_s9 }
0x15de   :  { %4334 = vrot.lane.b32.xlu1 %v7946_v34, %s5128_s10 }
0x15df   :  { %4336 = vrot.lane.b32.xlu0 %v7949_v49, %s5128_s10 }
0x15e2   :  { %4338 = vrot.lane.b32.xlu1 %v7956_v29, %s5128_s10 }
0x15e3   :  { %4340 = vrot.lane.b32.xlu0 %v7958_v19, %s5128_s10 }
0x15e6   :  { %4350 = vrot.lane.b32.xlu1 %v7946_v34, %s5129_s11 }
0x15e7   :  { %4352 = vrot.lane.b32.xlu0 %v7949_v49, %s5129_s11 }
0x15ea   :  { %4354 = vrot.lane.b32.xlu1 %v7956_v29, %s5129_s11 }
0x15eb   :  { %4356 = vrot.lane.b32.xlu0 %v7958_v19, %s5129_s11 }
0x15ee   :  { %4366 = vrot.lane.b32.xlu1 %v7946_v34, %s5132_s12 }
0x15ef   :  { %4368 = vrot.lane.b32.xlu0 %v7949_v49, %s5132_s12 }
0x15f2   :  { %4370 = vrot.lane.b32.xlu1 %v7956_v29, %s5132_s12 }
0x15f3   :  { %4372 = vrot.lane.b32.xlu0 %v7958_v19, %s5132_s12 }
0x15f6   :  { %4386 = vperm.xlu1 %5110, %v4616_v14  }
0x1628   :  { %v4255_v1 = vpop.permute.xlu1 %4254 }
0x1629   :  { %v4257_v15 = vpop.permute.xlu0 %4256 }
0x162a   :  { %v4264_v3 = vsel %vm50_vm0, %v4255_v1, %v4257_v15 }
0x162b   :  { %v4267_v8 = vmul.f32 %v4264_v3, %v5276_v20 }
0x162c   :  { %v4259_v57 = vpop.permute.xlu1 %4258 }
0x162d   :  { %v4261_v22 = vpop.permute.xlu0 %4260  ;;  %v4263_v46 = vsel %vm50_vm0, %v4257_v15, %v4259_v57 }
0x162e   :  { %v4262_v28 = vsel %vm50_vm0, %v4259_v57, %v4261_v22  ;;  %v4265_v54 = vsel %vm50_vm0, %v4261_v22, %v4255_v1  ;;  %v4268_v12 = vmul.f32 %v4263_v46, %v5300_v31 }
0x162f   :  { %v4266_v60 = vmul.f32 %v4265_v54, %v5284_v25  ;;  %v4269_v5 = vmul.f32 %v4262_v28, %v5290_v27 }
0x1630   :  { %v4271_v0 = vpop.permute.xlu1 %4270 }
0x1631   :  { %v4273_v53 = vpop.permute.xlu0 %4272 }
0x1632   :  { %v4280_v7 = vsel %vm88_vm1, %v4271_v0, %v4273_v53 }
0x1633   :  { %v4283_v6 = vmul.f32 %v4280_v7, %v5279_v21 }
0x1634   :  { %v4275_v13 = vpop.permute.xlu1 %4274 }
0x1635   :  { %v4279_v23 = vsel %vm88_vm1, %v4273_v53, %v4275_v13  ;;  %v4277_v52 = vpop.permute.xlu0 %4276  ;;  %v5067_v18 = vpack.c.bf16 %v4283_v6, %v4267_v8 }
0x1636   :  { %v4284_v56 = vmul.f32 %v4279_v23, %v5307_v35  ;;  %v4278_v20 = vsel %vm88_vm1, %v4275_v13, %v4277_v52  ;;  %v4281_v21 = vsel %vm88_vm1, %v4277_v52, %v4271_v0 }
0x1637   :  { %v4282_v17 = vmul.f32 %v4281_v21, %v5287_v26  ;;  %v4285_v2 = vmul.f32 %v4278_v20, %v5297_v30  ;;  %5068 = vmatprep.subr.bf16.mxu0 %v5067_v18 }
0x1638   :  { %v4287_v55 = vpop.permute.xlu1 %4286  ;;  %v5085_v14 = vpack.c.bf16 %v4284_v56, %v4268_v12 }
0x1639   :  { %v5069_v24 = vpack.c.bf16 %v4282_v17, %v4266_v60  ;;  %v4289_v35 = vpop.permute.xlu0 %4288  ;;  %v5083_v4 = vpack.c.bf16 %v4285_v2, %v4269_v5 }
0x163a   :  { %v4296_v25 = vsel %vm126_vm2, %v4287_v55, %v4289_v35 }
0x163b   :  { %5070 = vmatpush1.bf16.msra.mxu0 %v5069_v24  ;;  %5084 = vmatprep.subr.bf16.mxu1 %v5083_v4  ;;  %v4299_v31 = vmul.f32 %v4296_v25, %v5332_v58 }
0x163c   :  { %5086 = vmatpush1.bf16.msra.mxu1 %v5085_v14  ;;  %v4291_v1 = vpop.permute.xlu1 %4290 }
0x163d   :  { %v4293_v15 = vpop.permute.xlu0 %4292  ;;  %v4295_v53 = vsel %vm126_vm2, %v4289_v35, %v4291_v1 }
0x163e   :  { %v4294_v22 = vsel %vm126_vm2, %v4291_v1, %v4293_v15  ;;  %v4297_v3 = vsel %vm126_vm2, %v4293_v15, %v4287_v55  ;;  %v4300_v52 = vmul.f32 %v4295_v53, %v5343_v62 }
0x163f   :  { %v4298_v54 = vmul.f32 %v4297_v3, %v5340_v61  ;;  %v4301_v13 = vmul.f32 %v4294_v22, %v5346_v63 }
0x1640   :  { %v4303_v27 = vpop.permute.xlu1 %4302 }
0x1641   :  { %v4305_v26 = vpop.permute.xlu0 %4304 }
0x1642   :  { %v4312_v30 = vsel %vm164_vm3, %v4303_v27, %v4305_v26 }
0x1643   :  { %v4315_v57 = vmul.f32 %v4312_v30, %v5335_v59 }
0x1644   :  { %v4307_v0 = vpop.permute.xlu1 %4306 }
0x1645   :  { %v4311_v7 = vsel %vm164_vm3, %v4305_v26, %v4307_v0  ;;  %v4309_v8 = vpop.permute.xlu0 %4308  ;;  %v5071_v6 = vpack.c.bf16 %v4315_v57, %v4299_v31 }
0x1646   :  { %v4316_v28 = vmul.f32 %v4311_v7, %v5356_v10  ;;  %v4310_v58 = vsel %vm164_vm3, %v4307_v0, %v4309_v8  ;;  %v4313_v59 = vsel %vm164_vm3, %v4309_v8, %v4303_v27 }
0x1647   :  { %v4314_v46 = vmul.f32 %v4313_v59, %v5353_v9  ;;  %v4317_v23 = vmul.f32 %v4310_v58, %v5363_v16  ;;  %5072 = vmatprep.subr.bf16.mxu0 %v5071_v6 }
0x1648   :  { %v4319_v18 = vpop.permute.xlu1 %4318  ;;  %v5089_v21 = vpack.c.bf16 %v4316_v28, %v4300_v52 }
0x1649   :  { %v5073_v56 = vpack.c.bf16 %v4314_v46, %v4298_v54  ;;  %v4321_v10 = vpop.permute.xlu0 %4320  ;;  %v5087_v20 = vpack.c.bf16 %v4317_v23, %v4301_v13 }
0x164a   :  { %v4328_v60 = vsel %vm202_vm4, %v4319_v18, %v4321_v10 }
0x164b   :  { %5074 = vmatpush1.bf16.msra.mxu0 %v5073_v56  ;;  %5088 = vmatprep.subr.bf16.mxu1 %v5087_v20  ;;  %v4330_v63 = vmul.f32 %v4328_v60, %v5384_v47 }
0x164c   :  { %5090 = vmatpush1.bf16.msra.mxu1 %v5089_v21  ;;  %v4323_v61 = vpop.permute.xlu1 %4322  ;;  %v5119_v21 = vld [vmem:[%s8157_s5] sm:$0xff] }
0x164d   :  { %v4327_v9 = vsel %vm202_vm4, %v4321_v10, %v4323_v61  ;;  %v4325_v16 = vpop.permute.xlu0 %4324  ;;  %v5077_v47 = vpack.c.bf16 %v4330_v63, %v7946_v34  ;;  %v5120_v63 = vld [vmem:[%s8157_s5 + $0x8] sm:$0xff] }
0x164e   :  { %v4331_v62 = vmul.f32 %v4327_v9, %v5392_v50  ;;  %v4326_v5 = vsel %vm202_vm4, %v4323_v61, %v4325_v16  ;;  %v4329_v17 = vsel %vm202_vm4, %v4325_v16, %v4319_v18  ;;  %v4615_v18 = vld [vmem:[%s8155_s1 + $0x70] sm:$0xff] }
0x164f   :  { %v4332_v2 = vmul.f32 %v4326_v5, %v5395_v51  ;;  %v4333_v12 = vmul.f32 %v4329_v17, %v5387_v48  ;;  %v5121_v16 = vld [vmem:[%s8157_s5 + $0x10] sm:$0xff]  ;;  %v5122_v5 = vld [vmem:[%s8157_s5 + $0x18] sm:$0xff] }
0x1650   :  { %v4335_v55 = vpop.permute.xlu1 %4334  ;;  %v5075_v24 = vpack.c.bf16 %v4331_v62, %v7949_v49 }
0x1651   :  { %v5093_v35 = vpack.c.bf16 %v4332_v2, %v7956_v29  ;;  %v4337_v4 = vpop.permute.xlu0 %4336  ;;  %v5091_v50 = vpack.c.bf16 %v4333_v12, %v7958_v19 }
0x1652   :  { %5076 = vmatprep.subr.bf16.mxu0 %v5075_v24  ;;  %v4344_v48 = vsel %vm240_vm6, %v4335_v55, %v4337_v4 }
0x1653   :  { %5078 = vmatpush1.bf16.msra.mxu0 %v5077_v47  ;;  %5092 = vmatprep.subr.bf16.mxu1 %v5091_v50  ;;  %v4346_v27 = vmul.f32 %v4344_v48, %v5447_v45 }
0x1654   :  { %5094 = vmatpush1.bf16.msra.mxu1 %v5093_v35  ;;  %v4339_v14 = vpop.permute.xlu1 %4338 }
0x1655   :  { %v4341_v1 = vpop.permute.xlu0 %4340  ;;  %v4343_v34 = vsel %vm240_vm6, %v4337_v4, %v4339_v14 }
0x1656   :  { %v4342_v29 = vsel %vm240_vm6, %v4339_v14, %v4341_v1  ;;  %v4345_v19 = vsel %vm240_vm6, %v4341_v1, %v4335_v55  ;;  %v4347_v57 = vmul.f32 %v4343_v34, %v5423_v33 }
0x1657   :  { %v4348_v53 = vmul.f32 %v4342_v29, %v5428_v38  ;;  %v4349_v45 = vmul.f32 %v4345_v19, %v5420_v32 }
0x1658   :  { %v4351_v15 = vpop.permute.xlu1 %4350 }
0x1659   :  { %v4353_v51 = vpop.permute.xlu0 %4352 }
0x165a   :  { %v4360_v49 = vsel %vm278_vm5, %v4351_v15, %v4353_v51 }
0x165b   :  { %v4362_v26 = vmul.f32 %v4360_v49, %v5433_v40 }
0x165c   :  { %v4355_v25 = vpop.permute.xlu1 %4354 }
0x165d   :  { %v4359_v30 = vsel %vm278_vm5, %v4353_v51, %v4355_v25  ;;  %v4357_v31 = vpop.permute.xlu0 %4356  ;;  %v5081_v28 = vpack.c.bf16 %v4362_v26, %v4346_v27 }
0x165e   :  { %v4363_v22 = vmul.f32 %v4359_v30, %v5441_v43  ;;  %v4358_v3 = vsel %vm278_vm5, %v4355_v25, %v4357_v31  ;;  %v4361_v0 = vsel %vm278_vm5, %v4357_v31, %v4351_v15 }
0x165f   :  { %v4364_v40 = vmul.f32 %v4358_v3, %v5444_v44  ;;  %v4365_v7 = vmul.f32 %v4361_v0, %v5438_v42 }
0x1660   :  { %v4367_v8 = vpop.permute.xlu1 %4366  ;;  %v5079_v6 = vpack.c.bf16 %v4363_v22, %v4347_v57 }
0x1661   :  { %v5097_v33 = vpack.c.bf16 %v4364_v40, %v4348_v53  ;;  %v4369_v58 = vpop.permute.xlu0 %4368  ;;  %v5095_v43 = vpack.c.bf16 %v4365_v7, %v4349_v45 }
0x1662   :  { %5080 = vmatprep.subr.bf16.mxu0 %v5079_v6  ;;  %v4376_v59 = vsel %vm316_vm7, %v4367_v8, %v4369_v58 }
0x1663   :  { %5082 = vmatpush1.bf16.msra.mxu0 %v5081_v28  ;;  %5096 = vmatprep.subr.bf16.mxu1 %v5095_v43  ;;  %v4378_v46 = vmul.f32 %v4376_v59, %v5481_v41 }
0x1664   :  { %5098 = vmatpush1.bf16.msra.mxu1 %v5097_v33  ;;  %v4371_v38 = vpop.permute.xlu1 %4370 }
0x1665   :  { %v4375_v32 = vsel %vm316_vm7, %v4369_v58, %v4371_v38  ;;  %v4373_v44 = vpop.permute.xlu0 %4372 }
0x1666   :  { %v4379_v42 = vmul.f32 %v4375_v32, %v5472_v36  ;;  %v4374_v54 = vsel %vm316_vm7, %v4371_v38, %v4373_v44  ;;  %v4377_v13 = vsel %vm316_vm7, %v4373_v44, %v4367_v8 }
0x1667   :  { %v4380_v23 = vmul.f32 %v4374_v54, %v5478_v39  ;;  %v4381_v52 = vmul.f32 %v4377_v13, %v5475_v37 }
0x1668   :  { %4408 = vmatprep.subr.mxu0 %v4379_v42 }
0x1669   :  { %4409 = vmatpush1.msra.mxu0 %v4378_v46  ;;  %4479 = vmatprep.subr.mxu1 %v4381_v52 }
0x166a   :  { %4617 = vmatmul.mubr.msk.f32.vlgmr.msra.gmra.mrb[28].mxu0 %vm352_vm8, %v4615_v18  ;;  %4480 = vmatpush1.msra.mxu1 %v4380_v23 }
0x166b   :  { %4618 = vmatmul.mubr.msk.f32.vlgmr.msra.gmra.mrb[28].mxu1 %vm352_vm8, %v4615_v18 }
0x1675   :  { %v4387_v11 = vpop.permute.xlu1 %4386 }
0x173d   :  { %v4458_v36 = vpop.f32.mrb[28].mxu0 }
0x173e   :  { %v4459_v56 = vadd.f32 %v4458_v36, %v4387_v11  ;;  %v4460_v41 = vpop.f32.mrb[29].mxu0  ;;  %v4529_v10 = vpop.f32.mrb[28].mxu1 }
0x173f   :  { %v4461_v39 = vadd.f32 %v4460_v41, %v4387_v11  ;;  %v4530_v20 = vadd.f32 %v4529_v10, %v4387_v11  ;;  %v4531_v37 = vpop.f32.mrb[29].mxu1 }
0x1740   :  { %v4534_v60 = vadd.f32 %v5119_v21, %v4459_v56  ;;  %v4532_v61 = vadd.f32 %v4531_v37, %v4387_v11 }
0x1741   :  { %v4535_v9 = vadd.f32 %v5120_v63, %v4461_v39  ;;  %v4536_v62 = vadd.f32 %v5121_v16, %v4530_v20 }
0x1742   :  { %4538 = vst [vmem:[%s8158_s6] sm:$0xff] %v4534_v60  ;;  %v4537_v17 = vadd.f32 %v5122_v5, %v4532_v61 }
0x1743   :  { %4539 = vst [vmem:[%s8158_s6 + $0x8] sm:$0xff] %v4535_v9  ;;  %4540 = vst [vmem:[%s8158_s6 + $0x10] sm:$0xff] %v4536_v62 }
0x1744   :  { %4541 = vst [vmem:[%s8158_s6 + $0x18] sm:$0xff] %v4537_v17 }

</bundles_post_ra>
